<compile_context>
chip_gen: v6e
topology: v6e:2x2x1
jax: 0.10.0
libtpu: 0.0.40
codegen_flags: <defaults>
</compile_context>

<pallas_src>
import functools

import jax
import jax.numpy as jnp
from jax.experimental import pallas as pl
from jax.experimental.pallas import tpu as pltpu

EPS = 1e-5      # nn.BatchNorm2d default
LANE = 128      # TPU lane width; channel axis is zero-padded to this


# ------------------------------ small helpers ------------------------------ #

def _round_up(v, m):
    return (v + m - 1) // m * m


def _pad_axis(a, axis, new_size):
    pad = [(0, 0)] * a.ndim
    pad[axis] = (0, new_size - a.shape[axis])
    return jnp.pad(a, pad)


def _fold_conv_input(x, s):
    """Zero-pad (pad=1, k=3) and fold the stride-s phases of H and W.

    x: (N, H, W, C) -> (N*HPB, s, WPB, s*C) so that every tap of a stride-s
    3x3 conv becomes a *contiguous* slice inside the kernel.  Element map:
        out[n*HPB + a, ph, b, pw*C + c] == xpad[n, a*s + ph, b*s + pw, c]
    """
    n, h, w, c = x.shape
    ho = (h - 1) // s + 1
    wo = (w - 1) // s + 1
    hp = _round_up(s * (ho - 1) + 3, s)
    wp = _round_up(s * (wo - 1) + 3, s)
    xp = jnp.pad(x, ((0, 0), (1, hp - h - 1), (1, wp - w - 1), (0, 0)))
    xf = xp.reshape(n * (hp // s), s, wp // s, s * c)
    return xf, ho, wo, hp // s


def _bn_fold(s_sum, s_sq, count, gamma, beta):
    """Training-mode BatchNorm (biased variance) folded to per-channel scale/shift.

    Note: E[x^2]-E[x]^2 in f32 is fine at these scales; prefer a centered /
    higher-precision accumulation when scaling N*H*W up (per review)."""
    mean = s_sum / count
    var = jnp.maximum(s_sq / count - mean * mean, 0.0)
    scale = gamma / jnp.sqrt(var + EPS)
    shift = beta - mean * scale
    return scale.reshape(1, -1), shift.reshape(1, -1)


def _num_tensorcores():
    """TensorCores a 'parallel' grid axis can shard across (megacore parts)."""
    try:
        kind = jax.devices()[0].device_kind.lower()
    except Exception:
        return 1
    return 2 if any(t in kind for t in ("v7", "v4", "v5p")) else 1


def _pick_batch_block(n, spatial, cp, n_tc):
    """Batch block B (a divisor of n) that fills the MXU M dimension while
    (a) keeping >= n_tc grid blocks so 2-TC parts can shard the parallel axis
    and (b) keeping the f32 (B*spatial, cp) accumulator <= ~128 KiB so it can
    live in vregs without spilling."""
    min_blocks = min(n, max(1, n_tc))
    row_cap = max(spatial, (128 * 1024) // (4 * cp))
    best = 1
    for b in range(1, n + 1):
        if n % b != 0:
            continue
        if n // b < min_blocks or (b > 1 and b * spatial > row_cap):
            break
        best = b
    return best


def _pack_stat_rows(cp, rows):
    """Pack a few (1, cp) f32 rows into one (8, cp) block (single aligned store)."""
    out = jnp.zeros((8, cp), jnp.float32)
    ridx = jax.lax.broadcasted_iota(jnp.int32, (8, cp), 0)
    for k, r in enumerate(rows):
        out = jnp.where(ridx == k, r, out)
    return out


# ----------------------------- Pallas kernels ------------------------------ #

def _conv1_shortcut_kernel(xf_ref, w_ref, b_ref, y_ref, e_ref, st_ref, lhs_ref,
                           *, s, ho, wo, cin, hpb, bsz, cp):
    """K-fused 3x3/stride-s conv + 1x1/stride-s shortcut + BN partial sums.

    Single (M, 9*cin) x (9*cin, 2*cp) MXU matmul: columns [:cp] are the 3x3
    conv, columns [cp:] are the 1x1 shortcut (its weight lives in the
    centre-tap rows of w_ref, zero elsewhere)."""
    m = ho * wo
    # im2col assembly — every tap is a contiguous slice of the folded input.
    for b in range(bsz):
        for t in range(9):
            ki, kj = t // 3, t % 3
            tap = xf_ref[pl.ds(b * hpb + ki // s, ho), ki % s,
                         pl.ds(kj // s, wo), pl.ds((kj % s) * cin, cin)]
            lhs_ref[b * m:(b + 1) * m, t * cin:(t + 1) * cin] = tap.reshape(m, cin)
    res = jnp.dot(lhs_ref[...], w_ref[...],
                  preferred_element_type=jnp.float32) + b_ref[...]
    y = res[:, :cp]        # 3x3 conv output, (M, cp) f32
    e = res[:, cp:]        # 1x1 shortcut,    (M, cp) f32
    y_ref[...] = y.astype(y_ref.dtype).reshape(bsz, ho, wo, cp)
    e_ref[...] = e.astype(e_ref.dtype).reshape(bsz, ho, wo, cp)
    # per-block BN partial sums, one aligned (8, cp) store
    st_ref[...] = _pack_stat_rows(cp, [
        jnp.sum(y, axis=0, keepdims=True),
        jnp.sum(y * y, axis=0, keepdims=True),
        jnp.sum(e, axis=0, keepdims=True),
        jnp.sum(e * e, axis=0, keepdims=True),
    ]).reshape(1, 8, cp)


def _conv2_fused_kernel(y1_ref, sc_ref, sh_ref, w3_ref, b3_ref, y_ref, st_ref,
                        zpad_ref, *, ho, wo, bsz, cp):
    """Second 3x3/stride-1 conv with BN1-affine + ReLU fused into its prologue."""
    m = bsz * ho * wo

    # The bf16 canvas border (and sublane-padding columns) only needs zeroing
    # once: the scratch persists across grid steps and the interior is fully
    # overwritten every step.
    @pl.when(pl.program_id(0) == 0)
    def _():
        zpad_ref[...] = jnp.zeros(zpad_ref.shape, zpad_ref.dtype)

    # prologue: z1 = relu(y1*scale + shift) in f32, one cast into the canvas
    z = jnp.maximum(
        y1_ref[...].astype(jnp.float32) * sc_ref[...].reshape(1, 1, 1, cp)
        + sh_ref[...].reshape(1, 1, 1, cp), 0.0)
    zpad_ref[:, 1:1 + ho, 1:1 + wo, :] = z.astype(zpad_ref.dtype)

    acc = None
    for t in range(9):                         # 9 K=cp taps, accumulate MXU results
        i, j = t // 3, t % 3
        tap = zpad_ref[:, i:i + ho, j:j + wo, :].reshape(m, cp)
        d = jnp.dot(tap, w3_ref[t], preferred_element_type=jnp.float32)
        acc = d if acc is None else acc + d
    y = acc + b3_ref[...]
    y_ref[...] = y.astype(y_ref.dtype).reshape(bsz, ho, wo, cp)
    st_ref[...] = _pack_stat_rows(cp, [
        jnp.sum(y, axis=0, keepdims=True),
        jnp.sum(y * y, axis=0, keepdims=True),
    ]).reshape(1, 8, cp)


# --------------------------------- wrapper ---------------------------------- #

@functools.partial(jax.jit, static_argnames=("stride",))
def restnet_down_block(x_nchw, params, *, stride):
    s0, s1 = stride
    if s1 != 1:
        # TODO(synk): stride[1] != 1 makes the residual add shape-invalid in this
        # block (shortcut/main spatial sizes differ); dead strided path removed.
        raise NotImplementedError("RestNetDownBlock requires stride[1] == 1")

    x = jnp.transpose(x_nchw, (0, 2, 3, 1)).astype(jnp.bfloat16)   # NCHW -> NHWC
    n, h, w, cin = x.shape
    cout = params["b1"].shape[0]
    cp = _round_up(cout, LANE)                  # lane-dense channel padding
    # TODO(synk): at production widths (cout >= 256) tile the matmul N dim to 256
    # for v6e/v7x's 2x256 MXU and single-buffer the constant weight BlockSpecs.

    # ---- parameter packing -------------------------------------------------
    # conv1 (3x3) and the 1x1 shortcut share one (9*cin, 2*cp) weight: the
    # shortcut weight sits in the centre-tap rows of the second cp columns.
    w1r = params["w1"].reshape(9 * cin, cout).astype(jnp.float32)
    wer = params["we"].reshape(cin, cout).astype(jnp.float32)
    wcomb = jnp.zeros((9 * cin, 2 * cp), jnp.float32)
    wcomb = wcomb.at[:, :cout].set(w1r)
    wcomb = wcomb.at[4 * cin:5 * cin, cp:cp + cout].set(wer)
    wcomb = wcomb.astype(jnp.bfloat16)
    bcomb = jnp.zeros((1, 2 * cp), jnp.float32)
    bcomb = bcomb.at[0, :cout].set(params["b1"]).at[0, cp:cp + cout].set(params["be"])

    w2p = _pad_axis(_pad_axis(params["w2"], 3, cp), 2, cp)
    w2p = w2p.reshape(9, cp, cp).astype(jnp.bfloat16)
    b2p = _pad_axis(params["b2"], 0, cp).reshape(1, cp).astype(jnp.float32)

    g1p = _pad_axis(params["g1"], 0, cp).astype(jnp.float32)
    be1p = _pad_axis(params["beta1"], 0, cp).astype(jnp.float32)
    g2p = _pad_axis(params["g2"], 0, cp).astype(jnp.float32)
    be2p = _pad_axis(params["beta2"], 0, cp).astype(jnp.float32)
    gep = _pad_axis(params["ge"], 0, cp).astype(jnp.float32)
    beep = _pad_axis(params["betae"], 0, cp).astype(jnp.float32)

    # ---- batch blocking to fill the MXU M dimension ------------------------
    xf, ho1, wo1, hpb = _fold_conv_input(x, s0)         # bf16, lane dim = s0*cin
    wpb, lane_in = xf.shape[2], xf.shape[3]
    bsz = _pick_batch_block(n, ho1 * wo1, cp, _num_tensorcores())
    grid = n // bsz
    m1 = bsz * ho1 * wo1

    # ---- stage 1: conv1 + 1x1 shortcut (one K-fused matmul) + BN sums ------
    y1, e, st_a = pl.pallas_call(
        functools.partial(_conv1_shortcut_kernel, s=s0, ho=ho1, wo=wo1,
                          cin=cin, hpb=hpb, bsz=bsz, cp=cp),
        out_shape=(jax.ShapeDtypeStruct((n, ho1, wo1, cp), jnp.bfloat16),
                   jax.ShapeDtypeStruct((n, ho1, wo1, cp), jnp.bfloat16),
                   jax.ShapeDtypeStruct((grid, 8, cp), jnp.float32)),
        grid=(grid,),
        in_specs=[
            pl.BlockSpec((bsz * hpb, s0, wpb, lane_in), lambda i: (i, 0, 0, 0)),
            pl.BlockSpec((9 * cin, 2 * cp), lambda i: (0, 0)),
            pl.BlockSpec((1, 2 * cp), lambda i: (0, 0)),
        ],
        out_specs=(
            pl.BlockSpec((bsz, ho1, wo1, cp), lambda i: (i, 0, 0, 0)),
            pl.BlockSpec((bsz, ho1, wo1, cp), lambda i: (i, 0, 0, 0)),
            pl.BlockSpec((1, 8, cp), lambda i: (i, 0, 0)),
        ),
        scratch_shapes=[pltpu.VMEM((m1, 9 * cin), jnp.bfloat16)],   # im2col LHS
        compiler_params=pltpu.CompilerParams(
            dimension_semantics=("parallel",),
            vmem_limit_bytes=32 * 1024 * 1024),
    )(xf, wcomb, bcomb)

    st_a = jnp.sum(st_a, axis=0)
    cnt1 = float(n * ho1 * wo1)
    sc1, sh1 = _bn_fold(st_a[0], st_a[1], cnt1, g1p, be1p)
    sce, she = _bn_fold(st_a[2], st_a[3], cnt1, gep, beep)
    # TODO(synk): nn.BatchNorm2d running_mean/running_var updates are a training
    # side effect that does not affect this forward output; not modeled.

    # ---- stage 2: conv2 (3x3/s1=1) with fused BN1-affine + ReLU prologue ---
    ho2, wo2 = ho1, wo1
    wp2 = _round_up(wo1 + 2, 8)                 # sublane-aligned canvas width
    y2, st_b = pl.pallas_call(
        functools.partial(_conv2_fused_kernel, ho=ho2, wo=wo2, bsz=bsz, cp=cp),
        out_shape=(jax.ShapeDtypeStruct((n, ho2, wo2, cp), jnp.bfloat16),
                   jax.ShapeDtypeStruct((grid, 8, cp), jnp.float32)),
        grid=(grid,),
        in_specs=[
            pl.BlockSpec((bsz, ho1, wo1, cp), lambda i: (i, 0, 0, 0)),
            pl.BlockSpec((1, cp), lambda i: (0, 0)),
            pl.BlockSpec((1, cp), lambda i: (0, 0)),
            pl.BlockSpec((9, cp, cp), lambda i: (0, 0, 0)),
            pl.BlockSpec((1, cp), lambda i: (0, 0)),
        ],
        out_specs=(
            pl.BlockSpec((bsz, ho2, wo2, cp), lambda i: (i, 0, 0, 0)),
            pl.BlockSpec((1, 8, cp), lambda i: (i, 0, 0)),
        ),
        scratch_shapes=[pltpu.VMEM((bsz, ho1 + 2, wp2, cp), jnp.bfloat16)],
        compiler_params=pltpu.CompilerParams(
            dimension_semantics=("parallel",),
            vmem_limit_bytes=32 * 1024 * 1024),
    )(y1, sc1, sh1, w2p, b2p)

    st_b = jnp.sum(st_b, axis=0)
    cnt2 = float(n * ho2 * wo2)
    sc2, sh2 = _bn_fold(st_b[0], st_b[1], cnt2, g2p, be2p)

    # ---- stage 3 (plain jnp, fused by XLA): residual BN + add + ReLU -------
    ef = e[..., :cout].astype(jnp.float32)
    yf = y2[..., :cout].astype(jnp.float32)
    out = jnp.maximum(ef * sce[0, :cout] + she[0, :cout]
                      + yf * sc2[0, :cout] + sh2[0, :cout], 0.0)
    return jnp.transpose(out, (0, 3, 1, 2))     # NHWC -> NCHW


# ------------------------------ pure-JAX ref -------------------------------- #

def _ref_forward(x_nchw, params, stride):
    s0, s1 = stride
    x = jnp.transpose(x_nchw, (0, 2, 3, 1)).astype(jnp.float32)

    def conv(xx, w_hwio, b, s, pad):
        y = jax.lax.conv_general_dilated(
            xx, w_hwio, (s, s), pad,
            dimension_numbers=("NHWC", "HWIO", "NHWC"),
            precision=jax.lax.Precision.HIGHEST)
        return y + b.reshape(1, 1, 1, -1)

    def bn(y, g, b):
        m = jnp.mean(y, axis=(0, 1, 2))
        v = jnp.var(y, axis=(0, 1, 2))
        return (y - m) / jnp.sqrt(v + EPS) * g + b

    y1 = conv(x, params["w1"], params["b1"], s0, ((1, 1), (1, 1)))
    z1 = jnp.maximum(bn(y1, params["g1"], params["beta1"]), 0.0)
    y2 = conv(z1, params["w2"], params["b2"], s1, ((1, 1), (1, 1)))
    y2 = bn(y2, params["g2"], params["beta2"])
    e = conv(x, params["we"], params["be"], s0, "VALID")
    e = bn(e, params["ge"], params["betae"])
    out = jnp.maximum(e + y2, 0.0)
    return jnp.transpose(out, (0, 3, 1, 2))


# --------------------------------- main ------------------------------------ #

if __name__ == "__main__":
    N, CIN, COUT, H, W = 2, 4, 8, 16, 16
    STRIDE = (2, 1)

    key = jax.random.PRNGKey(0)
    ks = jax.random.split(key, 12)

    params = {
        "w1": jax.random.normal(ks[0], (3, 3, CIN, COUT), jnp.float32) * 0.1,
        "b1": jax.random.normal(ks[1], (COUT,), jnp.float32) * 0.1,
        "w2": jax.random.normal(ks[2], (3, 3, COUT, COUT), jnp.float32) * 0.1,
        "b2": jax.random.normal(ks[3], (COUT,), jnp.float32) * 0.1,
        "we": jax.random.normal(ks[4], (1, 1, CIN, COUT), jnp.float32) * 0.1,
        "be": jax.random.normal(ks[5], (COUT,), jnp.float32) * 0.1,
        "g1": 1.0 + 0.1 * jax.random.normal(ks[6], (COUT,), jnp.float32),
        "beta1": 0.1 * jax.random.normal(ks[7], (COUT,), jnp.float32),
        "g2": 1.0 + 0.1 * jax.random.normal(ks[8], (COUT,), jnp.float32),
        "beta2": 0.1 * jax.random.normal(ks[9], (COUT,), jnp.float32),
        "ge": 1.0 + 0.1 * jax.random.normal(ks[10], (COUT,), jnp.float32),
        "betae": 0.1 * jax.random.normal(ks[11], (COUT,), jnp.float32),
    }

    x = jax.random.normal(key, (N, CIN, H, W), jnp.float32)

    out = jax.block_until_ready(restnet_down_block(x, params, stride=STRIDE))
    ref = jax.block_until_ready(_ref_forward(x, params, STRIDE))

    assert out.shape == (N, COUT, H // STRIDE[0], W // STRIDE[0]), out.shape
    err = float(jnp.max(jnp.abs(out - ref)))
    # bf16 MXU inputs + bf16 inter-stage intermediates -> loose-but-meaningful tol
    assert jnp.allclose(out, ref, rtol=5e-2, atol=5e-2), err

    print("KERNEL_OK")
</pallas_src>

<mosaic_0001>
module attributes {stable_mosaic.version = 11 : i64} {
  func.func @_conv1_shortcut_kernel(%arg0: i32, %arg1: memref<18x2x9x8xbf16, #tpu.memory_space<vmem>>, %arg2: memref<36x256xbf16, #tpu.memory_space<vmem>>, %arg3: memref<1x256xf32, #tpu.memory_space<vmem>>, %arg4: memref<2x8x8x128xbf16, #tpu.memory_space<vmem>>, %arg5: memref<2x8x8x128xbf16, #tpu.memory_space<vmem>>, %arg6: memref<1x8x128xf32, #tpu.memory_space<vmem>>, %arg7: memref<128x36xbf16, #tpu.memory_space<vmem>>) attributes {dimension_semantics = [#tpu.dimension_semantics<parallel>], iteration_bounds = array<i64: 1>, scalar_prefetch = 0 : i64, scratch_operands = 1 : i64, tpu.core_type = #tpu.core_type<tc>, window_params = [{transform_indices = @transform_0, window_bounds = array<i64: 18, 2, 9, 8>}, {pipeline_mode = #tpu.pipeline_mode<synchronous>, transform_indices = @transform_1, window_bounds = array<i64: 36, 256>}, {pipeline_mode = #tpu.pipeline_mode<synchronous>, transform_indices = @transform_2, window_bounds = array<i64: 1, 256>}, {transform_indices = @transform_3, window_bounds = array<i64: 2, 8, 8, 128>}, {transform_indices = @transform_4, window_bounds = array<i64: 2, 8, 8, 128>}, {transform_indices = @transform_5, window_bounds = array<i64: 1, 8, 128>}]} {
    %c0 = arith.constant 0 : index
    %c0_0 = arith.constant 0 : index
    %c0_1 = arith.constant 0 : index
    %c0_2 = arith.constant 0 : index
    %0 = vector.load %arg1[%c0, %c0_0, %c0_1, %c0_2] : memref<18x2x9x8xbf16, #tpu.memory_space<vmem>>, vector<8x1x8x4xbf16>
    %1 = vector.shape_cast %0 : vector<8x1x8x4xbf16> to vector<8x8x4xbf16>
    %2 = vector.shape_cast %1 : vector<8x8x4xbf16> to vector<64x4xbf16>
    %c0_3 = arith.constant 0 : index
    %c0_4 = arith.constant 0 : index
    %3 = vector.load %arg7[%c0_3, %c0_4] : memref<128x36xbf16, #tpu.memory_space<vmem>>, vector<64x4xbf16>
    tpu.vector_store %arg7[%c0_3, %c0_4], %2 {strides = array<i32>} : memref<128x36xbf16, #tpu.memory_space<vmem>>, vector<64x4xbf16>,
    %c0_5 = arith.constant 0 : index
    %c0_6 = arith.constant 0 : index
    %c0_7 = arith.constant 0 : index
    %c4 = arith.constant 4 : index
    %4 = vector.load %arg1[%c0_5, %c0_6, %c0_7, %c4] : memref<18x2x9x8xbf16, #tpu.memory_space<vmem>>, vector<8x1x8x4xbf16>
    %5 = vector.shape_cast %4 : vector<8x1x8x4xbf16> to vector<8x8x4xbf16>
    %6 = vector.shape_cast %5 : vector<8x8x4xbf16> to vector<64x4xbf16>
    %c0_8 = arith.constant 0 : index
    %c4_9 = arith.constant 4 : index
    %7 = vector.load %arg7[%c0_8, %c4_9] : memref<128x36xbf16, #tpu.memory_space<vmem>>, vector<64x4xbf16>
    tpu.vector_store %arg7[%c0_8, %c4_9], %6 {strides = array<i32>} : memref<128x36xbf16, #tpu.memory_space<vmem>>, vector<64x4xbf16>,
    %c0_10 = arith.constant 0 : index
    %c0_11 = arith.constant 0 : index
    %c1 = arith.constant 1 : index
    %c0_12 = arith.constant 0 : index
    %8 = vector.load %arg1[%c0_10, %c0_11, %c1, %c0_12] : memref<18x2x9x8xbf16, #tpu.memory_space<vmem>>, vector<8x1x8x4xbf16>
    %9 = vector.shape_cast %8 : vector<8x1x8x4xbf16> to vector<8x8x4xbf16>
    %10 = vector.shape_cast %9 : vector<8x8x4xbf16> to vector<64x4xbf16>
    %c0_13 = arith.constant 0 : index
    %c8 = arith.constant 8 : index
    %11 = vector.load %arg7[%c0_13, %c8] : memref<128x36xbf16, #tpu.memory_space<vmem>>, vector<64x4xbf16>
    tpu.vector_store %arg7[%c0_13, %c8], %10 {strides = array<i32>} : memref<128x36xbf16, #tpu.memory_space<vmem>>, vector<64x4xbf16>,
    %c0_14 = arith.constant 0 : index
    %c1_15 = arith.constant 1 : index
    %c0_16 = arith.constant 0 : index
    %c0_17 = arith.constant 0 : index
    %12 = vector.load %arg1[%c0_14, %c1_15, %c0_16, %c0_17] : memref<18x2x9x8xbf16, #tpu.memory_space<vmem>>, vector<8x1x8x4xbf16>
    %13 = vector.shape_cast %12 : vector<8x1x8x4xbf16> to vector<8x8x4xbf16>
    %14 = vector.shape_cast %13 : vector<8x8x4xbf16> to vector<64x4xbf16>
    %c0_18 = arith.constant 0 : index
    %c12 = arith.constant 12 : index
    %15 = vector.load %arg7[%c0_18, %c12] : memref<128x36xbf16, #tpu.memory_space<vmem>>, vector<64x4xbf16>
    tpu.vector_store %arg7[%c0_18, %c12], %14 {strides = array<i32>} : memref<128x36xbf16, #tpu.memory_space<vmem>>, vector<64x4xbf16>,
    %c0_19 = arith.constant 0 : index
    %c1_20 = arith.constant 1 : index
    %c0_21 = arith.constant 0 : index
    %c4_22 = arith.constant 4 : index
    %16 = vector.load %arg1[%c0_19, %c1_20, %c0_21, %c4_22] : memref<18x2x9x8xbf16, #tpu.memory_space<vmem>>, vector<8x1x8x4xbf16>
    %17 = vector.shape_cast %16 : vector<8x1x8x4xbf16> to vector<8x8x4xbf16>
    %18 = vector.shape_cast %17 : vector<8x8x4xbf16> to vector<64x4xbf16>
    %c0_23 = arith.constant 0 : index
    %c16 = arith.constant 16 : index
    %19 = vector.load %arg7[%c0_23, %c16] : memref<128x36xbf16, #tpu.memory_space<vmem>>, vector<64x4xbf16>
    tpu.vector_store %arg7[%c0_23, %c16], %18 {strides = array<i32>} : memref<128x36xbf16, #tpu.memory_space<vmem>>, vector<64x4xbf16>,
    %c0_24 = arith.constant 0 : index
    %c1_25 = arith.constant 1 : index
    %c1_26 = arith.constant 1 : index
    %c0_27 = arith.constant 0 : index
    %20 = vector.load %arg1[%c0_24, %c1_25, %c1_26, %c0_27] : memref<18x2x9x8xbf16, #tpu.memory_space<vmem>>, vector<8x1x8x4xbf16>
    %21 = vector.shape_cast %20 : vector<8x1x8x4xbf16> to vector<8x8x4xbf16>
    %22 = vector.shape_cast %21 : vector<8x8x4xbf16> to vector<64x4xbf16>
    %c0_28 = arith.constant 0 : index
    %c20 = arith.constant 20 : index
    %23 = vector.load %arg7[%c0_28, %c20] : memref<128x36xbf16, #tpu.memory_space<vmem>>, vector<64x4xbf16>
    tpu.vector_store %arg7[%c0_28, %c20], %22 {strides = array<i32>} : memref<128x36xbf16, #tpu.memory_space<vmem>>, vector<64x4xbf16>,
    %c1_29 = arith.constant 1 : index
    %c0_30 = arith.constant 0 : index
    %c0_31 = arith.constant 0 : index
    %c0_32 = arith.constant 0 : index
    %24 = vector.load %arg1[%c1_29, %c0_30, %c0_31, %c0_32] : memref<18x2x9x8xbf16, #tpu.memory_space<vmem>>, vector<8x1x8x4xbf16>
    %25 = vector.shape_cast %24 : vector<8x1x8x4xbf16> to vector<8x8x4xbf16>
    %26 = vector.shape_cast %25 : vector<8x8x4xbf16> to vector<64x4xbf16>
    %c0_33 = arith.constant 0 : index
    %c24 = arith.constant 24 : index
    %27 = vector.load %arg7[%c0_33, %c24] : memref<128x36xbf16, #tpu.memory_space<vmem>>, vector<64x4xbf16>
    tpu.vector_store %arg7[%c0_33, %c24], %26 {strides = array<i32>} : memref<128x36xbf16, #tpu.memory_space<vmem>>, vector<64x4xbf16>,
    %c1_34 = arith.constant 1 : index
    %c0_35 = arith.constant 0 : index
    %c0_36 = arith.constant 0 : index
    %c4_37 = arith.constant 4 : index
    %28 = vector.load %arg1[%c1_34, %c0_35, %c0_36, %c4_37] : memref<18x2x9x8xbf16, #tpu.memory_space<vmem>>, vector<8x1x8x4xbf16>
    %29 = vector.shape_cast %28 : vector<8x1x8x4xbf16> to vector<8x8x4xbf16>
    %30 = vector.shape_cast %29 : vector<8x8x4xbf16> to vector<64x4xbf16>
    %c0_38 = arith.constant 0 : index
    %c28 = arith.constant 28 : index
    %31 = vector.load %arg7[%c0_38, %c28] : memref<128x36xbf16, #tpu.memory_space<vmem>>, vector<64x4xbf16>
    tpu.vector_store %arg7[%c0_38, %c28], %30 {strides = array<i32>} : memref<128x36xbf16, #tpu.memory_space<vmem>>, vector<64x4xbf16>,
    %c1_39 = arith.constant 1 : index
    %c0_40 = arith.constant 0 : index
    %c1_41 = arith.constant 1 : index
    %c0_42 = arith.constant 0 : index
    %32 = vector.load %arg1[%c1_39, %c0_40, %c1_41, %c0_42] : memref<18x2x9x8xbf16, #tpu.memory_space<vmem>>, vector<8x1x8x4xbf16>
    %33 = vector.shape_cast %32 : vector<8x1x8x4xbf16> to vector<8x8x4xbf16>
    %34 = vector.shape_cast %33 : vector<8x8x4xbf16> to vector<64x4xbf16>
    %c0_43 = arith.constant 0 : index
    %c32 = arith.constant 32 : index
    %35 = vector.load %arg7[%c0_43, %c32] : memref<128x36xbf16, #tpu.memory_space<vmem>>, vector<64x4xbf16>
    tpu.vector_store %arg7[%c0_43, %c32], %34 {strides = array<i32>} : memref<128x36xbf16, #tpu.memory_space<vmem>>, vector<64x4xbf16>,
    %c9 = arith.constant 9 : index
    %c0_44 = arith.constant 0 : index
    %c0_45 = arith.constant 0 : index
    %c0_46 = arith.constant 0 : index
    %36 = vector.load %arg1[%c9, %c0_44, %c0_45, %c0_46] : memref<18x2x9x8xbf16, #tpu.memory_space<vmem>>, vector<8x1x8x4xbf16>
    %37 = vector.shape_cast %36 : vector<8x1x8x4xbf16> to vector<8x8x4xbf16>
    %38 = vector.shape_cast %37 : vector<8x8x4xbf16> to vector<64x4xbf16>
    %c64 = arith.constant 64 : index
    %c0_47 = arith.constant 0 : index
    %39 = vector.load %arg7[%c64, %c0_47] : memref<128x36xbf16, #tpu.memory_space<vmem>>, vector<64x4xbf16>
    tpu.vector_store %arg7[%c64, %c0_47], %38 {strides = array<i32>} : memref<128x36xbf16, #tpu.memory_space<vmem>>, vector<64x4xbf16>,
    %c9_48 = arith.constant 9 : index
    %c0_49 = arith.constant 0 : index
    %c0_50 = arith.constant 0 : index
    %c4_51 = arith.constant 4 : index
    %40 = vector.load %arg1[%c9_48, %c0_49, %c0_50, %c4_51] : memref<18x2x9x8xbf16, #tpu.memory_space<vmem>>, vector<8x1x8x4xbf16>
    %41 = vector.shape_cast %40 : vector<8x1x8x4xbf16> to vector<8x8x4xbf16>
    %42 = vector.shape_cast %41 : vector<8x8x4xbf16> to vector<64x4xbf16>
    %c64_52 = arith.constant 64 : index
    %c4_53 = arith.constant 4 : index
    %43 = vector.load %arg7[%c64_52, %c4_53] : memref<128x36xbf16, #tpu.memory_space<vmem>>, vector<64x4xbf16>
    tpu.vector_store %arg7[%c64_52, %c4_53], %42 {strides = array<i32>} : memref<128x36xbf16, #tpu.memory_space<vmem>>, vector<64x4xbf16>,
    %c9_54 = arith.constant 9 : index
    %c0_55 = arith.constant 0 : index
    %c1_56 = arith.constant 1 : index
    %c0_57 = arith.constant 0 : index
    %44 = vector.load %arg1[%c9_54, %c0_55, %c1_56, %c0_57] : memref<18x2x9x8xbf16, #tpu.memory_space<vmem>>, vector<8x1x8x4xbf16>
    %45 = vector.shape_cast %44 : vector<8x1x8x4xbf16> to vector<8x8x4xbf16>
    %46 = vector.shape_cast %45 : vector<8x8x4xbf16> to vector<64x4xbf16>
    %c64_58 = arith.constant 64 : index
    %c8_59 = arith.constant 8 : index
    %47 = vector.load %arg7[%c64_58, %c8_59] : memref<128x36xbf16, #tpu.memory_space<vmem>>, vector<64x4xbf16>
    tpu.vector_store %arg7[%c64_58, %c8_59], %46 {strides = array<i32>} : memref<128x36xbf16, #tpu.memory_space<vmem>>, vector<64x4xbf16>,
    %c9_60 = arith.constant 9 : index
    %c1_61 = arith.constant 1 : index
    %c0_62 = arith.constant 0 : index
    %c0_63 = arith.constant 0 : index
    %48 = vector.load %arg1[%c9_60, %c1_61, %c0_62, %c0_63] : memref<18x2x9x8xbf16, #tpu.memory_space<vmem>>, vector<8x1x8x4xbf16>
    %49 = vector.shape_cast %48 : vector<8x1x8x4xbf16> to vector<8x8x4xbf16>
    %50 = vector.shape_cast %49 : vector<8x8x4xbf16> to vector<64x4xbf16>
    %c64_64 = arith.constant 64 : index
    %c12_65 = arith.constant 12 : index
    %51 = vector.load %arg7[%c64_64, %c12_65] : memref<128x36xbf16, #tpu.memory_space<vmem>>, vector<64x4xbf16>
    tpu.vector_store %arg7[%c64_64, %c12_65], %50 {strides = array<i32>} : memref<128x36xbf16, #tpu.memory_space<vmem>>, vector<64x4xbf16>,
    %c9_66 = arith.constant 9 : index
    %c1_67 = arith.constant 1 : index
    %c0_68 = arith.constant 0 : index
    %c4_69 = arith.constant 4 : index
    %52 = vector.load %arg1[%c9_66, %c1_67, %c0_68, %c4_69] : memref<18x2x9x8xbf16, #tpu.memory_space<vmem>>, vector<8x1x8x4xbf16>
    %53 = vector.shape_cast %52 : vector<8x1x8x4xbf16> to vector<8x8x4xbf16>
    %54 = vector.shape_cast %53 : vector<8x8x4xbf16> to vector<64x4xbf16>
    %c64_70 = arith.constant 64 : index
    %c16_71 = arith.constant 16 : index
    %55 = vector.load %arg7[%c64_70, %c16_71] : memref<128x36xbf16, #tpu.memory_space<vmem>>, vector<64x4xbf16>
    tpu.vector_store %arg7[%c64_70, %c16_71], %54 {strides = array<i32>} : memref<128x36xbf16, #tpu.memory_space<vmem>>, vector<64x4xbf16>,
    %c9_72 = arith.constant 9 : index
    %c1_73 = arith.constant 1 : index
    %c1_74 = arith.constant 1 : index
    %c0_75 = arith.constant 0 : index
    %56 = vector.load %arg1[%c9_72, %c1_73, %c1_74, %c0_75] : memref<18x2x9x8xbf16, #tpu.memory_space<vmem>>, vector<8x1x8x4xbf16>
    %57 = vector.shape_cast %56 : vector<8x1x8x4xbf16> to vector<8x8x4xbf16>
    %58 = vector.shape_cast %57 : vector<8x8x4xbf16> to vector<64x4xbf16>
    %c64_76 = arith.constant 64 : index
    %c20_77 = arith.constant 20 : index
    %59 = vector.load %arg7[%c64_76, %c20_77] : memref<128x36xbf16, #tpu.memory_space<vmem>>, vector<64x4xbf16>
    tpu.vector_store %arg7[%c64_76, %c20_77], %58 {strides = array<i32>} : memref<128x36xbf16, #tpu.memory_space<vmem>>, vector<64x4xbf16>,
    %c10 = arith.constant 10 : index
    %c0_78 = arith.constant 0 : index
    %c0_79 = arith.constant 0 : index
    %c0_80 = arith.constant 0 : index
    %60 = vector.load %arg1[%c10, %c0_78, %c0_79, %c0_80] : memref<18x2x9x8xbf16, #tpu.memory_space<vmem>>, vector<8x1x8x4xbf16>
    %61 = vector.shape_cast %60 : vector<8x1x8x4xbf16> to vector<8x8x4xbf16>
    %62 = vector.shape_cast %61 : vector<8x8x4xbf16> to vector<64x4xbf16>
    %c64_81 = arith.constant 64 : index
    %c24_82 = arith.constant 24 : index
    %63 = vector.load %arg7[%c64_81, %c24_82] : memref<128x36xbf16, #tpu.memory_space<vmem>>, vector<64x4xbf16>
    tpu.vector_store %arg7[%c64_81, %c24_82], %62 {strides = array<i32>} : memref<128x36xbf16, #tpu.memory_space<vmem>>, vector<64x4xbf16>,
    %c10_83 = arith.constant 10 : index
    %c0_84 = arith.constant 0 : index
    %c0_85 = arith.constant 0 : index
    %c4_86 = arith.constant 4 : index
    %64 = vector.load %arg1[%c10_83, %c0_84, %c0_85, %c4_86] : memref<18x2x9x8xbf16, #tpu.memory_space<vmem>>, vector<8x1x8x4xbf16>
    %65 = vector.shape_cast %64 : vector<8x1x8x4xbf16> to vector<8x8x4xbf16>
    %66 = vector.shape_cast %65 : vector<8x8x4xbf16> to vector<64x4xbf16>
    %c64_87 = arith.constant 64 : index
    %c28_88 = arith.constant 28 : index
    %67 = vector.load %arg7[%c64_87, %c28_88] : memref<128x36xbf16, #tpu.memory_space<vmem>>, vector<64x4xbf16>
    tpu.vector_store %arg7[%c64_87, %c28_88], %66 {strides = array<i32>} : memref<128x36xbf16, #tpu.memory_space<vmem>>, vector<64x4xbf16>,
    %c10_89 = arith.constant 10 : index
    %c0_90 = arith.constant 0 : index
    %c1_91 = arith.constant 1 : index
    %c0_92 = arith.constant 0 : index
    %68 = vector.load %arg1[%c10_89, %c0_90, %c1_91, %c0_92] : memref<18x2x9x8xbf16, #tpu.memory_space<vmem>>, vector<8x1x8x4xbf16>
    %69 = vector.shape_cast %68 : vector<8x1x8x4xbf16> to vector<8x8x4xbf16>
    %70 = vector.shape_cast %69 : vector<8x8x4xbf16> to vector<64x4xbf16>
    %c64_93 = arith.constant 64 : index
    %c32_94 = arith.constant 32 : index
    %71 = vector.load %arg7[%c64_93, %c32_94] : memref<128x36xbf16, #tpu.memory_space<vmem>>, vector<64x4xbf16>
    tpu.vector_store %arg7[%c64_93, %c32_94], %70 {strides = array<i32>} : memref<128x36xbf16, #tpu.memory_space<vmem>>, vector<64x4xbf16>,
    %c0_95 = arith.constant 0 : index
    %c0_96 = arith.constant 0 : index
    %72 = vector.load %arg7[%c0_95, %c0_96] : memref<128x36xbf16, #tpu.memory_space<vmem>>, vector<128x36xbf16>
    %c0_97 = arith.constant 0 : index
    %c0_98 = arith.constant 0 : index
    %73 = vector.load %arg2[%c0_97, %c0_98] : memref<36x256xbf16, #tpu.memory_space<vmem>>, vector<36x256xbf16>
    %cst = arith.constant dense<0.000000e+00> : vector<128x256xf32>
    %74 = tpu.matmul %72, %73, %cst {dimension_numbers = #tpu.dot_dimension_numbers<[1], [0], [0], [1], [0, 0, 1, 1], [], []>} : vector<128x36xbf16>, vector<36x256xbf16>, vector<128x256xf32> -> vector<128x256xf32>
    %c0_99 = arith.constant 0 : index
    %c0_100 = arith.constant 0 : index
    %75 = vector.load %arg3[%c0_99, %c0_100] : memref<1x256xf32, #tpu.memory_space<vmem>>, vector<1x256xf32>
    %76 = vector.broadcast %75 : vector<1x256xf32> to vector<128x256xf32>
    %77 = arith.addf %74, %76 : vector<128x256xf32>
    %78 = vector.extract_strided_slice %77 {offsets = [0, 0], sizes = [128, 128], strides = [1, 1]} : vector<128x256xf32> to vector<128x128xf32>
    %79 = vector.extract_strided_slice %77 {offsets = [0, 128], sizes = [128, 128], strides = [1, 1]} : vector<128x256xf32> to vector<128x128xf32>
    %80 = arith.truncf %78 : vector<128x128xf32> to vector<128x128xbf16>
    %81 = vector.shape_cast %80 : vector<128x128xbf16> to vector<2x8x8x128xbf16>
    %c0_101 = arith.constant 0 : index
    %c0_102 = arith.constant 0 : index
    %c0_103 = arith.constant 0 : index
    %c0_104 = arith.constant 0 : index
    %82 = vector.load %arg4[%c0_101, %c0_102, %c0_103, %c0_104] : memref<2x8x8x128xbf16, #tpu.memory_space<vmem>>, vector<2x8x8x128xbf16>
    tpu.vector_store %arg4[%c0_101, %c0_102, %c0_103, %c0_104], %81 {strides = array<i32>} : memref<2x8x8x128xbf16, #tpu.memory_space<vmem>>, vector<2x8x8x128xbf16>,
    %83 = arith.truncf %79 : vector<128x128xf32> to vector<128x128xbf16>
    %84 = vector.shape_cast %83 : vector<128x128xbf16> to vector<2x8x8x128xbf16>
    %c0_105 = arith.constant 0 : index
    %c0_106 = arith.constant 0 : index
    %c0_107 = arith.constant 0 : index
    %c0_108 = arith.constant 0 : index
    %85 = vector.load %arg5[%c0_105, %c0_106, %c0_107, %c0_108] : memref<2x8x8x128xbf16, #tpu.memory_space<vmem>>, vector<2x8x8x128xbf16>
    tpu.vector_store %arg5[%c0_105, %c0_106, %c0_107, %c0_108], %84 {strides = array<i32>} : memref<2x8x8x128xbf16, #tpu.memory_space<vmem>>, vector<2x8x8x128xbf16>,
    %cst_109 = arith.constant dense<0.000000e+00> : vector<128xf32>
    %86 = vector.multi_reduction <add>, %78, %cst_109 [0] : vector<128x128xf32> to vector<128xf32>
    %87 = vector.shape_cast %86 : vector<128xf32> to vector<1x128xf32>
    %88 = arith.mulf %78, %78 : vector<128x128xf32>
    %cst_110 = arith.constant dense<0.000000e+00> : vector<128xf32>
    %89 = vector.multi_reduction <add>, %88, %cst_110 [0] : vector<128x128xf32> to vector<128xf32>
    %90 = vector.shape_cast %89 : vector<128xf32> to vector<1x128xf32>
    %cst_111 = arith.constant dense<0.000000e+00> : vector<128xf32>
    %91 = vector.multi_reduction <add>, %79, %cst_111 [0] : vector<128x128xf32> to vector<128xf32>
    %92 = vector.shape_cast %91 : vector<128xf32> to vector<1x128xf32>
    %93 = arith.mulf %79, %79 : vector<128x128xf32>
    %cst_112 = arith.constant dense<0.000000e+00> : vector<128xf32>
    %94 = vector.multi_reduction <add>, %93, %cst_112 [0] : vector<128x128xf32> to vector<128xf32>
    %95 = vector.shape_cast %94 : vector<128xf32> to vector<1x128xf32>
    %cst_113 = arith.constant 0.000000e+00 : f32
    %96 = vector.broadcast %cst_113 : f32 to vector<8x128xf32>
    %97 = tpu.iota {dimensions = array<i32: 0>} : vector<8x128xi32>
    %c0_i32 = arith.constant 0 : i32
    %98 = vector.broadcast %c0_i32 : i32 to vector<8x128xi32>
    %99 = arith.cmpi eq, %97, %98 : vector<8x128xi32>
    %100 = vector.shape_cast %87 : vector<1x128xf32> to vector<1x128xf32>
    %101 = vector.broadcast %100 : vector<1x128xf32> to vector<8x128xf32>
    %102 = arith.select %99, %101, %96 : vector<8x128xi1>, vector<8x128xf32>
    %c1_i32 = arith.constant 1 : i32
    %103 = vector.broadcast %c1_i32 : i32 to vector<8x128xi32>
    %104 = arith.cmpi eq, %97, %103 : vector<8x128xi32>
    %105 = vector.shape_cast %90 : vector<1x128xf32> to vector<1x128xf32>
    %106 = vector.broadcast %105 : vector<1x128xf32> to vector<8x128xf32>
    %107 = arith.select %104, %106, %102 : vector<8x128xi1>, vector<8x128xf32>
    %c2_i32 = arith.constant 2 : i32
    %108 = vector.broadcast %c2_i32 : i32 to vector<8x128xi32>
    %109 = arith.cmpi eq, %97, %108 : vector<8x128xi32>
    %110 = vector.shape_cast %92 : vector<1x128xf32> to vector<1x128xf32>
    %111 = vector.broadcast %110 : vector<1x128xf32> to vector<8x128xf32>
    %112 = arith.select %109, %111, %107 : vector<8x128xi1>, vector<8x128xf32>
    %c3_i32 = arith.constant 3 : i32
    %113 = vector.broadcast %c3_i32 : i32 to vector<8x128xi32>
    %114 = arith.cmpi eq, %97, %113 : vector<8x128xi32>
    %115 = vector.shape_cast %95 : vector<1x128xf32> to vector<1x128xf32>
    %116 = vector.broadcast %115 : vector<1x128xf32> to vector<8x128xf32>
    %117 = arith.select %114, %116, %112 : vector<8x128xi1>, vector<8x128xf32>
    %118 = vector.shape_cast %117 : vector<8x128xf32> to vector<1x8x128xf32>
    %c0_114 = arith.constant 0 : index
    %c0_115 = arith.constant 0 : index
    %c0_116 = arith.constant 0 : index
    %119 = vector.load %arg6[%c0_114, %c0_115, %c0_116] : memref<1x8x128xf32, #tpu.memory_space<vmem>>, vector<1x8x128xf32>
    tpu.vector_store %arg6[%c0_114, %c0_115, %c0_116], %118 {strides = array<i32>} : memref<1x8x128xf32, #tpu.memory_space<vmem>>, vector<1x8x128xf32>,
    return
  }
  func.func @transform_0(%arg0: i32) -> (i32, i32, i32, i32) {
    %c0_i32 = arith.constant 0 : i32
    %c0_i32_0 = arith.constant 0 : i32
    %c0_i32_1 = arith.constant 0 : i32
    %c0_i32_2 = arith.constant 0 : i32
    return %arg0, %c0_i32, %c0_i32_0, %c0_i32_1 : i32, i32, i32, i32
  }
  func.func @transform_1(%arg0: i32) -> (i32, i32) {
    %c0_i32 = arith.constant 0 : i32
    %c0_i32_0 = arith.constant 0 : i32
    %c0_i32_1 = arith.constant 0 : i32
    return %c0_i32, %c0_i32_0 : i32, i32
  }
  func.func @transform_2(%arg0: i32) -> (i32, i32) {
    %c0_i32 = arith.constant 0 : i32
    %c0_i32_0 = arith.constant 0 : i32
    %c0_i32_1 = arith.constant 0 : i32
    return %c0_i32, %c0_i32_0 : i32, i32
  }
  func.func @transform_3(%arg0: i32) -> (i32, i32, i32, i32) {
    %c0_i32 = arith.constant 0 : i32
    %c0_i32_0 = arith.constant 0 : i32
    %c0_i32_1 = arith.constant 0 : i32
    %c0_i32_2 = arith.constant 0 : i32
    return %arg0, %c0_i32, %c0_i32_0, %c0_i32_1 : i32, i32, i32, i32
  }
  func.func @transform_4(%arg0: i32) -> (i32, i32, i32, i32) {
    %c0_i32 = arith.constant 0 : i32
    %c0_i32_0 = arith.constant 0 : i32
    %c0_i32_1 = arith.constant 0 : i32
    %c0_i32_2 = arith.constant 0 : i32
    return %arg0, %c0_i32, %c0_i32_0, %c0_i32_1 : i32, i32, i32, i32
  }
  func.func @transform_5(%arg0: i32) -> (i32, i32, i32) {
    %c0_i32 = arith.constant 0 : i32
    %c0_i32_0 = arith.constant 0 : i32
    %c0_i32_1 = arith.constant 0 : i32
    return %arg0, %c0_i32, %c0_i32_0 : i32, i32, i32
  }
}

module attributes {stable_mosaic.version = 11 : i64} {
  func.func @_conv2_fused_kernel(%arg0: i32, %arg1: memref<2x8x8x128xbf16, #tpu.memory_space<vmem>>, %arg2: memref<1x128xf32, #tpu.memory_space<vmem>>, %arg3: memref<1x128xf32, #tpu.memory_space<vmem>>, %arg4: memref<9x128x128xbf16, #tpu.memory_space<vmem>>, %arg5: memref<1x128xf32, #tpu.memory_space<vmem>>, %arg6: memref<2x8x8x128xbf16, #tpu.memory_space<vmem>>, %arg7: memref<1x8x128xf32, #tpu.memory_space<vmem>>, %arg8: memref<2x10x16x128xbf16, #tpu.memory_space<vmem>>) attributes {dimension_semantics = [#tpu.dimension_semantics<parallel>], iteration_bounds = array<i64: 1>, scalar_prefetch = 0 : i64, scratch_operands = 1 : i64, tpu.core_type = #tpu.core_type<tc>, window_params = [{transform_indices = @transform_0, window_bounds = array<i64: 2, 8, 8, 128>}, {pipeline_mode = #tpu.pipeline_mode<synchronous>, transform_indices = @transform_1, window_bounds = array<i64: 1, 128>}, {pipeline_mode = #tpu.pipeline_mode<synchronous>, transform_indices = @transform_2, window_bounds = array<i64: 1, 128>}, {pipeline_mode = #tpu.pipeline_mode<synchronous>, transform_indices = @transform_3, window_bounds = array<i64: 9, 128, 128>}, {pipeline_mode = #tpu.pipeline_mode<synchronous>, transform_indices = @transform_4, window_bounds = array<i64: 1, 128>}, {transform_indices = @transform_5, window_bounds = array<i64: 2, 8, 8, 128>}, {transform_indices = @transform_6, window_bounds = array<i64: 1, 8, 128>}]} {
    %c0_i32 = arith.constant 0 : i32
    %0 = arith.cmpi eq, %arg0, %c0_i32 : i32
    %1 = arith.extui %0 : i1 to i32
    %c0_i32_0 = arith.constant 0 : i32
    %2 = arith.cmpi ne, %1, %c0_i32_0 : i32
    scf.if %2 {
      %cst_89 = arith.constant 0.000000e+00 : bf16
      %95 = vector.broadcast %cst_89 : bf16 to vector<2x10x16x128xbf16>
      %c0_90 = arith.constant 0 : index
      %c0_91 = arith.constant 0 : index
      %c0_92 = arith.constant 0 : index
      %c0_93 = arith.constant 0 : index
      %96 = vector.load %arg8[%c0_90, %c0_91, %c0_92, %c0_93] : memref<2x10x16x128xbf16, #tpu.memory_space<vmem>>, vector<2x10x16x128xbf16>
      tpu.vector_store %arg8[%c0_90, %c0_91, %c0_92, %c0_93], %95 {strides = array<i32>} : memref<2x10x16x128xbf16, #tpu.memory_space<vmem>>, vector<2x10x16x128xbf16>,
    } else {
    }
    %c0 = arith.constant 0 : index
    %c0_1 = arith.constant 0 : index
    %c0_2 = arith.constant 0 : index
    %c0_3 = arith.constant 0 : index
    %3 = vector.load %arg1[%c0, %c0_1, %c0_2, %c0_3] : memref<2x8x8x128xbf16, #tpu.memory_space<vmem>>, vector<2x8x8x128xbf16>
    %4 = arith.extf %3 : vector<2x8x8x128xbf16> to vector<2x8x8x128xf32>
    %c0_4 = arith.constant 0 : index
    %c0_5 = arith.constant 0 : index
    %5 = vector.load %arg2[%c0_4, %c0_5] : memref<1x128xf32, #tpu.memory_space<vmem>>, vector<1x128xf32>
    %6 = vector.shape_cast %5 : vector<1x128xf32> to vector<1x1x1x128xf32>
    %7 = vector.broadcast %6 : vector<1x1x1x128xf32> to vector<2x8x8x128xf32>
    %8 = arith.mulf %4, %7 : vector<2x8x8x128xf32>
    %c0_6 = arith.constant 0 : index
    %c0_7 = arith.constant 0 : index
    %9 = vector.load %arg3[%c0_6, %c0_7] : memref<1x128xf32, #tpu.memory_space<vmem>>, vector<1x128xf32>
    %10 = vector.shape_cast %9 : vector<1x128xf32> to vector<1x1x1x128xf32>
    %11 = vector.broadcast %10 : vector<1x1x1x128xf32> to vector<2x8x8x128xf32>
    %12 = arith.addf %8, %11 : vector<2x8x8x128xf32>
    %cst = arith.constant 0.000000e+00 : f32
    %13 = vector.broadcast %cst : f32 to vector<2x8x8x128xf32>
    %14 = arith.maximumf %12, %13 : vector<2x8x8x128xf32>
    %15 = arith.truncf %14 : vector<2x8x8x128xf32> to vector<2x8x8x128xbf16>
    %c0_8 = arith.constant 0 : index
    %c1 = arith.constant 1 : index
    %c1_9 = arith.constant 1 : index
    %c0_10 = arith.constant 0 : index
    %16 = vector.load %arg8[%c0_8, %c1, %c1_9, %c0_10] : memref<2x10x16x128xbf16, #tpu.memory_space<vmem>>, vector<2x8x8x128xbf16>
    tpu.vector_store %arg8[%c0_8, %c1, %c1_9, %c0_10], %15 {strides = array<i32>} : memref<2x10x16x128xbf16, #tpu.memory_space<vmem>>, vector<2x8x8x128xbf16>,
    %c0_11 = arith.constant 0 : index
    %c0_12 = arith.constant 0 : index
    %c0_13 = arith.constant 0 : index
    %c0_14 = arith.constant 0 : index
    %17 = vector.load %arg8[%c0_11, %c0_12, %c0_13, %c0_14] : memref<2x10x16x128xbf16, #tpu.memory_space<vmem>>, vector<2x8x8x128xbf16>
    %18 = vector.shape_cast %17 : vector<2x8x8x128xbf16> to vector<128x128xbf16>
    %c0_15 = arith.constant 0 : index
    %c0_16 = arith.constant 0 : index
    %c0_17 = arith.constant 0 : index
    %19 = vector.load %arg4[%c0_15, %c0_16, %c0_17] : memref<9x128x128xbf16, #tpu.memory_space<vmem>>, vector<1x128x128xbf16>
    %20 = vector.shape_cast %19 : vector<1x128x128xbf16> to vector<128x128xbf16>
    %cst_18 = arith.constant dense<0.000000e+00> : vector<128x128xf32>
    %21 = tpu.matmul %18, %20, %cst_18 {dimension_numbers = #tpu.dot_dimension_numbers<[1], [0], [0], [1], [0, 0, 1, 1], [], []>} : vector<128x128xbf16>, vector<128x128xbf16>, vector<128x128xf32> -> vector<128x128xf32>
    %c0_19 = arith.constant 0 : index
    %c0_20 = arith.constant 0 : index
    %c1_21 = arith.constant 1 : index
    %c0_22 = arith.constant 0 : index
    %22 = vector.load %arg8[%c0_19, %c0_20, %c1_21, %c0_22] : memref<2x10x16x128xbf16, #tpu.memory_space<vmem>>, vector<2x8x8x128xbf16>
    %23 = vector.shape_cast %22 : vector<2x8x8x128xbf16> to vector<128x128xbf16>
    %c1_23 = arith.constant 1 : index
    %c0_24 = arith.constant 0 : index
    %c0_25 = arith.constant 0 : index
    %24 = vector.load %arg4[%c1_23, %c0_24, %c0_25] : memref<9x128x128xbf16, #tpu.memory_space<vmem>>, vector<1x128x128xbf16>
    %25 = vector.shape_cast %24 : vector<1x128x128xbf16> to vector<128x128xbf16>
    %cst_26 = arith.constant dense<0.000000e+00> : vector<128x128xf32>
    %26 = tpu.matmul %23, %25, %cst_26 {dimension_numbers = #tpu.dot_dimension_numbers<[1], [0], [0], [1], [0, 0, 1, 1], [], []>} : vector<128x128xbf16>, vector<128x128xbf16>, vector<128x128xf32> -> vector<128x128xf32>
    %27 = arith.addf %21, %26 : vector<128x128xf32>
    %c0_27 = arith.constant 0 : index
    %c0_28 = arith.constant 0 : index
    %c2 = arith.constant 2 : index
    %c0_29 = arith.constant 0 : index
    %28 = vector.load %arg8[%c0_27, %c0_28, %c2, %c0_29] : memref<2x10x16x128xbf16, #tpu.memory_space<vmem>>, vector<2x8x8x128xbf16>
    %29 = vector.shape_cast %28 : vector<2x8x8x128xbf16> to vector<128x128xbf16>
    %c2_30 = arith.constant 2 : index
    %c0_31 = arith.constant 0 : index
    %c0_32 = arith.constant 0 : index
    %30 = vector.load %arg4[%c2_30, %c0_31, %c0_32] : memref<9x128x128xbf16, #tpu.memory_space<vmem>>, vector<1x128x128xbf16>
    %31 = vector.shape_cast %30 : vector<1x128x128xbf16> to vector<128x128xbf16>
    %cst_33 = arith.constant dense<0.000000e+00> : vector<128x128xf32>
    %32 = tpu.matmul %29, %31, %cst_33 {dimension_numbers = #tpu.dot_dimension_numbers<[1], [0], [0], [1], [0, 0, 1, 1], [], []>} : vector<128x128xbf16>, vector<128x128xbf16>, vector<128x128xf32> -> vector<128x128xf32>
    %33 = arith.addf %27, %32 : vector<128x128xf32>
    %c0_34 = arith.constant 0 : index
    %c1_35 = arith.constant 1 : index
    %c0_36 = arith.constant 0 : index
    %c0_37 = arith.constant 0 : index
    %34 = vector.load %arg8[%c0_34, %c1_35, %c0_36, %c0_37] : memref<2x10x16x128xbf16, #tpu.memory_space<vmem>>, vector<2x8x8x128xbf16>
    %35 = vector.shape_cast %34 : vector<2x8x8x128xbf16> to vector<128x128xbf16>
    %c3 = arith.constant 3 : index
    %c0_38 = arith.constant 0 : index
    %c0_39 = arith.constant 0 : index
    %36 = vector.load %arg4[%c3, %c0_38, %c0_39] : memref<9x128x128xbf16, #tpu.memory_space<vmem>>, vector<1x128x128xbf16>
    %37 = vector.shape_cast %36 : vector<1x128x128xbf16> to vector<128x128xbf16>
    %cst_40 = arith.constant dense<0.000000e+00> : vector<128x128xf32>
    %38 = tpu.matmul %35, %37, %cst_40 {dimension_numbers = #tpu.dot_dimension_numbers<[1], [0], [0], [1], [0, 0, 1, 1], [], []>} : vector<128x128xbf16>, vector<128x128xbf16>, vector<128x128xf32> -> vector<128x128xf32>
    %39 = arith.addf %33, %38 : vector<128x128xf32>
    %c0_41 = arith.constant 0 : index
    %c1_42 = arith.constant 1 : index
    %c1_43 = arith.constant 1 : index
    %c0_44 = arith.constant 0 : index
    %40 = vector.load %arg8[%c0_41, %c1_42, %c1_43, %c0_44] : memref<2x10x16x128xbf16, #tpu.memory_space<vmem>>, vector<2x8x8x128xbf16>
    %41 = vector.shape_cast %40 : vector<2x8x8x128xbf16> to vector<128x128xbf16>
    %c4 = arith.constant 4 : index
    %c0_45 = arith.constant 0 : index
    %c0_46 = arith.constant 0 : index
    %42 = vector.load %arg4[%c4, %c0_45, %c0_46] : memref<9x128x128xbf16, #tpu.memory_space<vmem>>, vector<1x128x128xbf16>
    %43 = vector.shape_cast %42 : vector<1x128x128xbf16> to vector<128x128xbf16>
    %cst_47 = arith.constant dense<0.000000e+00> : vector<128x128xf32>
    %44 = tpu.matmul %41, %43, %cst_47 {dimension_numbers = #tpu.dot_dimension_numbers<[1], [0], [0], [1], [0, 0, 1, 1], [], []>} : vector<128x128xbf16>, vector<128x128xbf16>, vector<128x128xf32> -> vector<128x128xf32>
    %45 = arith.addf %39, %44 : vector<128x128xf32>
    %c0_48 = arith.constant 0 : index
    %c1_49 = arith.constant 1 : index
    %c2_50 = arith.constant 2 : index
    %c0_51 = arith.constant 0 : index
    %46 = vector.load %arg8[%c0_48, %c1_49, %c2_50, %c0_51] : memref<2x10x16x128xbf16, #tpu.memory_space<vmem>>, vector<2x8x8x128xbf16>
    %47 = vector.shape_cast %46 : vector<2x8x8x128xbf16> to vector<128x128xbf16>
    %c5 = arith.constant 5 : index
    %c0_52 = arith.constant 0 : index
    %c0_53 = arith.constant 0 : index
    %48 = vector.load %arg4[%c5, %c0_52, %c0_53] : memref<9x128x128xbf16, #tpu.memory_space<vmem>>, vector<1x128x128xbf16>
    %49 = vector.shape_cast %48 : vector<1x128x128xbf16> to vector<128x128xbf16>
    %cst_54 = arith.constant dense<0.000000e+00> : vector<128x128xf32>
    %50 = tpu.matmul %47, %49, %cst_54 {dimension_numbers = #tpu.dot_dimension_numbers<[1], [0], [0], [1], [0, 0, 1, 1], [], []>} : vector<128x128xbf16>, vector<128x128xbf16>, vector<128x128xf32> -> vector<128x128xf32>
    %51 = arith.addf %45, %50 : vector<128x128xf32>
    %c0_55 = arith.constant 0 : index
    %c2_56 = arith.constant 2 : index
    %c0_57 = arith.constant 0 : index
    %c0_58 = arith.constant 0 : index
    %52 = vector.load %arg8[%c0_55, %c2_56, %c0_57, %c0_58] : memref<2x10x16x128xbf16, #tpu.memory_space<vmem>>, vector<2x8x8x128xbf16>
    %53 = vector.shape_cast %52 : vector<2x8x8x128xbf16> to vector<128x128xbf16>
    %c6 = arith.constant 6 : index
    %c0_59 = arith.constant 0 : index
    %c0_60 = arith.constant 0 : index
    %54 = vector.load %arg4[%c6, %c0_59, %c0_60] : memref<9x128x128xbf16, #tpu.memory_space<vmem>>, vector<1x128x128xbf16>
    %55 = vector.shape_cast %54 : vector<1x128x128xbf16> to vector<128x128xbf16>
    %cst_61 = arith.constant dense<0.000000e+00> : vector<128x128xf32>
    %56 = tpu.matmul %53, %55, %cst_61 {dimension_numbers = #tpu.dot_dimension_numbers<[1], [0], [0], [1], [0, 0, 1, 1], [], []>} : vector<128x128xbf16>, vector<128x128xbf16>, vector<128x128xf32> -> vector<128x128xf32>
    %57 = arith.addf %51, %56 : vector<128x128xf32>
    %c0_62 = arith.constant 0 : index
    %c2_63 = arith.constant 2 : index
    %c1_64 = arith.constant 1 : index
    %c0_65 = arith.constant 0 : index
    %58 = vector.load %arg8[%c0_62, %c2_63, %c1_64, %c0_65] : memref<2x10x16x128xbf16, #tpu.memory_space<vmem>>, vector<2x8x8x128xbf16>
    %59 = vector.shape_cast %58 : vector<2x8x8x128xbf16> to vector<128x128xbf16>
    %c7 = arith.constant 7 : index
    %c0_66 = arith.constant 0 : index
    %c0_67 = arith.constant 0 : index
    %60 = vector.load %arg4[%c7, %c0_66, %c0_67] : memref<9x128x128xbf16, #tpu.memory_space<vmem>>, vector<1x128x128xbf16>
    %61 = vector.shape_cast %60 : vector<1x128x128xbf16> to vector<128x128xbf16>
    %cst_68 = arith.constant dense<0.000000e+00> : vector<128x128xf32>
    %62 = tpu.matmul %59, %61, %cst_68 {dimension_numbers = #tpu.dot_dimension_numbers<[1], [0], [0], [1], [0, 0, 1, 1], [], []>} : vector<128x128xbf16>, vector<128x128xbf16>, vector<128x128xf32> -> vector<128x128xf32>
    %63 = arith.addf %57, %62 : vector<128x128xf32>
    %c0_69 = arith.constant 0 : index
    %c2_70 = arith.constant 2 : index
    %c2_71 = arith.constant 2 : index
    %c0_72 = arith.constant 0 : index
    %64 = vector.load %arg8[%c0_69, %c2_70, %c2_71, %c0_72] : memref<2x10x16x128xbf16, #tpu.memory_space<vmem>>, vector<2x8x8x128xbf16>
    %65 = vector.shape_cast %64 : vector<2x8x8x128xbf16> to vector<128x128xbf16>
    %c8 = arith.constant 8 : index
    %c0_73 = arith.constant 0 : index
    %c0_74 = arith.constant 0 : index
    %66 = vector.load %arg4[%c8, %c0_73, %c0_74] : memref<9x128x128xbf16, #tpu.memory_space<vmem>>, vector<1x128x128xbf16>
    %67 = vector.shape_cast %66 : vector<1x128x128xbf16> to vector<128x128xbf16>
    %cst_75 = arith.constant dense<0.000000e+00> : vector<128x128xf32>
    %68 = tpu.matmul %65, %67, %cst_75 {dimension_numbers = #tpu.dot_dimension_numbers<[1], [0], [0], [1], [0, 0, 1, 1], [], []>} : vector<128x128xbf16>, vector<128x128xbf16>, vector<128x128xf32> -> vector<128x128xf32>
    %69 = arith.addf %63, %68 : vector<128x128xf32>
    %c0_76 = arith.constant 0 : index
    %c0_77 = arith.constant 0 : index
    %70 = vector.load %arg5[%c0_76, %c0_77] : memref<1x128xf32, #tpu.memory_space<vmem>>, vector<1x128xf32>
    %71 = vector.broadcast %70 : vector<1x128xf32> to vector<128x128xf32>
    %72 = arith.addf %69, %71 : vector<128x128xf32>
    %73 = arith.truncf %72 : vector<128x128xf32> to vector<128x128xbf16>
    %74 = vector.shape_cast %73 : vector<128x128xbf16> to vector<2x8x8x128xbf16>
    %c0_78 = arith.constant 0 : index
    %c0_79 = arith.constant 0 : index
    %c0_80 = arith.constant 0 : index
    %c0_81 = arith.constant 0 : index
    %75 = vector.load %arg6[%c0_78, %c0_79, %c0_80, %c0_81] : memref<2x8x8x128xbf16, #tpu.memory_space<vmem>>, vector<2x8x8x128xbf16>
    tpu.vector_store %arg6[%c0_78, %c0_79, %c0_80, %c0_81], %74 {strides = array<i32>} : memref<2x8x8x128xbf16, #tpu.memory_space<vmem>>, vector<2x8x8x128xbf16>,
    %cst_82 = arith.constant dense<0.000000e+00> : vector<128xf32>
    %76 = vector.multi_reduction <add>, %72, %cst_82 [0] : vector<128x128xf32> to vector<128xf32>
    %77 = vector.shape_cast %76 : vector<128xf32> to vector<1x128xf32>
    %78 = arith.mulf %72, %72 : vector<128x128xf32>
    %cst_83 = arith.constant dense<0.000000e+00> : vector<128xf32>
    %79 = vector.multi_reduction <add>, %78, %cst_83 [0] : vector<128x128xf32> to vector<128xf32>
    %80 = vector.shape_cast %79 : vector<128xf32> to vector<1x128xf32>
    %cst_84 = arith.constant 0.000000e+00 : f32
    %81 = vector.broadcast %cst_84 : f32 to vector<8x128xf32>
    %82 = tpu.iota {dimensions = array<i32: 0>} : vector<8x128xi32>
    %c0_i32_85 = arith.constant 0 : i32
    %83 = vector.broadcast %c0_i32_85 : i32 to vector<8x128xi32>
    %84 = arith.cmpi eq, %82, %83 : vector<8x128xi32>
    %85 = vector.shape_cast %77 : vector<1x128xf32> to vector<1x128xf32>
    %86 = vector.broadcast %85 : vector<1x128xf32> to vector<8x128xf32>
    %87 = arith.select %84, %86, %81 : vector<8x128xi1>, vector<8x128xf32>
    %c1_i32 = arith.constant 1 : i32
    %88 = vector.broadcast %c1_i32 : i32 to vector<8x128xi32>
    %89 = arith.cmpi eq, %82, %88 : vector<8x128xi32>
    %90 = vector.shape_cast %80 : vector<1x128xf32> to vector<1x128xf32>
    %91 = vector.broadcast %90 : vector<1x128xf32> to vector<8x128xf32>
    %92 = arith.select %89, %91, %87 : vector<8x128xi1>, vector<8x128xf32>
    %93 = vector.shape_cast %92 : vector<8x128xf32> to vector<1x8x128xf32>
    %c0_86 = arith.constant 0 : index
    %c0_87 = arith.constant 0 : index
    %c0_88 = arith.constant 0 : index
    %94 = vector.load %arg7[%c0_86, %c0_87, %c0_88] : memref<1x8x128xf32, #tpu.memory_space<vmem>>, vector<1x8x128xf32>
    tpu.vector_store %arg7[%c0_86, %c0_87, %c0_88], %93 {strides = array<i32>} : memref<1x8x128xf32, #tpu.memory_space<vmem>>, vector<1x8x128xf32>,
    return
  }
  func.func @transform_0(%arg0: i32) -> (i32, i32, i32, i32) {
    %c0_i32 = arith.constant 0 : i32
    %c0_i32_0 = arith.constant 0 : i32
    %c0_i32_1 = arith.constant 0 : i32
    %c0_i32_2 = arith.constant 0 : i32
    return %arg0, %c0_i32, %c0_i32_0, %c0_i32_1 : i32, i32, i32, i32
  }
  func.func @transform_1(%arg0: i32) -> (i32, i32) {
    %c0_i32 = arith.constant 0 : i32
    %c0_i32_0 = arith.constant 0 : i32
    %c0_i32_1 = arith.constant 0 : i32
    return %c0_i32, %c0_i32_0 : i32, i32
  }
  func.func @transform_2(%arg0: i32) -> (i32, i32) {
    %c0_i32 = arith.constant 0 : i32
    %c0_i32_0 = arith.constant 0 : i32
    %c0_i32_1 = arith.constant 0 : i32
    return %c0_i32, %c0_i32_0 : i32, i32
  }
  func.func @transform_3(%arg0: i32) -> (i32, i32, i32) {
    %c0_i32 = arith.constant 0 : i32
    %c0_i32_0 = arith.constant 0 : i32
    %c0_i32_1 = arith.constant 0 : i32
    %c0_i32_2 = arith.constant 0 : i32
    return %c0_i32, %c0_i32_0, %c0_i32_1 : i32, i32, i32
  }
  func.func @transform_4(%arg0: i32) -> (i32, i32) {
    %c0_i32 = arith.constant 0 : i32
    %c0_i32_0 = arith.constant 0 : i32
    %c0_i32_1 = arith.constant 0 : i32
    return %c0_i32, %c0_i32_0 : i32, i32
  }
  func.func @transform_5(%arg0: i32) -> (i32, i32, i32, i32) {
    %c0_i32 = arith.constant 0 : i32
    %c0_i32_0 = arith.constant 0 : i32
    %c0_i32_1 = arith.constant 0 : i32
    %c0_i32_2 = arith.constant 0 : i32
    return %arg0, %c0_i32, %c0_i32_0, %c0_i32_1 : i32, i32, i32, i32
  }
  func.func @transform_6(%arg0: i32) -> (i32, i32, i32) {
    %c0_i32 = arith.constant 0 : i32
    %c0_i32_0 = arith.constant 0 : i32
    %c0_i32_1 = arith.constant 0 : i32
    return %arg0, %c0_i32, %c0_i32_0 : i32, i32, i32
  }
}

</mosaic_0001>

<bundles_post_ra>
// kernel: restnet_down_block.2
= control target key start
LH: loop header
LB: loop body
LE: loop exit
PB: predicated region body
PF: predicated region fallthrough
CT: control target
= control target key end

     0   :  { %vm68_vm0 = vsmask.f32 3328  ;;  %s2354_s22 = smov 12   ;;  %vm69_vm1 = vsmask.f32 7440  ;;  %s2355_s20 = smov 8   ;;  %s3462_s0 = inlined_call_operand.vmem [shape: bf16[18,2,9,8], index: 0, kind: input, shape index: {}]   ;;  %s3463_s1 = inlined_call_operand.vmem [shape: bf16[36,256], index: 1, kind: input, shape index: {}]   ;;  %s3464_s2 = inlined_call_operand.vmem [shape: f32[1,256], index: 2, kind: input, shape index: {}]   ;;  %s3465_s3 = inlined_call_operand.vmem [shape: bf16[2,8,8,128], index: 3, kind: output, shape index: {0}]   ;;  %s3466_s4 = inlined_call_operand.vmem [shape: bf16[2,8,8,128], index: 4, kind: output, shape index: {1}]   ;;  %s3467_s5 = inlined_call_operand.vmem [shape: f32[1,8,128], index: 5, kind: output, shape index: {2}]  }
   0x1   :  { %v1993_v0 = vld [vmem:[%s3462_s0 + $0x8] sm:$0xf]  ;;  %v52_v2 = vld [vmem:[%s3462_s0] sm:$0xf]  ;;  %v53_v3 = vld [vmem:[%s3462_s0 + $0x4] sm:$0x1] }
   0x2   :  { %v1985_v1 = vld [vmem:[%s3462_s0 + $0x8] sm:$0xf]  ;;  %282 = vrot.lane.b32.xlu0 %v1993_v0, %s2354_s22  ;;  %v1986_v4 = vld [vmem:[%s3462_s0 + $0x18] sm:$0xf]  ;;  %v72_v5 = vshrl.u32 %v52_v2, 16  ;;  %v75_v6 = vshll.u32 %v52_v2, 16  ;;  %vm2431_vm2 = vmor %vm68_vm0, %vm69_vm1 }
   0x3   :  { %233 = vrot.lane.b32.xlu1 %v1985_v1, %s2354_s22  ;;  %v81_v7 = vshll.u32 %v53_v3, 16  ;;  %v54_v8 = vld [vmem:[%s3462_s0 + $0x10] sm:$0xf]  ;;  %v55_v9 = vld [vmem:[%s3462_s0 + $0x14] sm:$0x1]  ;;  %s2356_s7 = smov 20  }
   0x4   :  { %v2003_v10 = vld [vmem:[%s3462_s0 + $0x18] sm:$0xf]  ;;  %v74_v11 = vrot.slane %v72_v5, 4  ;;  %v77_v12 = vrot.slane %v75_v6, 5  ;;  %v86_v15 = vshrl.u32 %v54_v8, 16  ;;  %v89_v17 = vshll.u32 %v54_v8, 16 }
   0x5   :  { %v83_v13 = vrot.slane %v81_v7, 5  ;;  %v1994_v14 = vld [vmem:[%s3462_s0 + $0x18] sm:$0xf]  ;;  %v2004_v16 = vld [vmem:[%s3462_s0 + $0x1c] sm:$0x1]  ;;  %v95_v18 = vshll.u32 %v55_v9, 16 }
   0x6   :  { %v346_v19 = vshrl.u32 %v2003_v10, 16  ;;  %v349_v20 = vshll.u32 %v2003_v10, 16  ;;  %v2001_v21 = vld [vmem:[%s3462_s0 + $0x8] sm:$0xf]  ;;  %v78_v22 = vor.u32 %v77_v12, %v74_v11  ;;  %v88_v23 = vrot.slane %v86_v15, 4  ;;  %s2357_s12 = smov 24  }
   0x7   :  { %235 = vrot.lane.b32.xlu1 %v1986_v4, %s2354_s22  ;;  %v355_v24 = vshll.u32 %v2004_v16, 16  ;;  %v2002_v25 = vld [vmem:[%s3462_s0 + $0xc] sm:$0x1]  ;;  %v332_v26 = vshrl.u32 %v2001_v21, 16  ;;  %v91_v28 = vrot.slane %v89_v17, 5  ;;  %v97_v32 = vrot.slane %v95_v18, 5 }
   0x8   :  { %v348_v29 = vrot.slane %v346_v19, 4  ;;  %v351_v30 = vrot.slane %v349_v20, 5  ;;  %v79_v31 = vrot.slane %v78_v22, 4  ;;  %v335_v34 = vshll.u32 %v2001_v21, 16  ;;  %v2035_v41 = vld [vmem:[%s3462_s0 + $0x20] sm:$0xf] }
   0x9   :  { %v334_v33 = vrot.slane %v332_v26, 4  ;;  %v92_v35 = vor.u32 %v91_v28, %v88_v23  ;;  %v357_v37 = vrot.slane %v355_v24, 5  ;;  %v341_v38 = vshll.u32 %v2002_v25, 16  ;;  %v2033_v45 = vld [vmem:[%s3462_s0 + $0x10] sm:$0xf]  ;;  %s2358_s27 = smov 32  }
   0xa   :  { %v352_v36 = vor.u32 %v351_v30, %v348_v29  ;;  %v84_v39 = vsel %vm2431_vm2, %v79_v31, %v83_v13  ;;  %v337_v40 = vrot.slane %v335_v34, 5  ;;  %v606_v44 = vshrl.u32 %v2035_v41, 16  ;;  %v2036_v48 = vld [vmem:[%s3462_s0 + $0x24] sm:$0x1]  ;;  %v2018_v53 = vld [vmem:[%s3462_s0 + $0x20] sm:$0xf] }
   0xb   :  { %284 = vrot.lane.b32.xlu1 %v1994_v14, %s2354_s22  ;;  %183 = vrot.lane.b32.xlu0 %v84_v39, %s2355_s20  ;;  %v93_v42 = vrot.slane %v92_v35, 4  ;;  %v343_v47 = vrot.slane %v341_v38, 5  ;;  %v609_v49 = vshll.u32 %v2035_v41, 16  ;;  %v592_v50 = vshrl.u32 %v2033_v45, 16  ;;  %v2034_v55 = vld [vmem:[%s3462_s0 + $0x14] sm:$0x1] }
   0xc   :  { %v353_v43 = vrot.slane %v352_v36, 4  ;;  %v338_v46 = vor.u32 %v337_v40, %v334_v33  ;;  %v608_v54 = vrot.slane %v606_v44, 4  ;;  %v595_v56 = vshll.u32 %v2033_v45, 16  ;;  %v58_v57 = vld [vmem:[%s3462_s0 + $0x30] sm:$0xf] }
   0xd   :  { %v98_v51 = vsel %vm2431_vm2, %v93_v42, %v97_v32  ;;  %v611_v59 = vrot.slane %v609_v49, 5  ;;  %v594_v60 = vrot.slane %v592_v50, 4  ;;  %v56_v61 = vld [vmem:[%s3462_s0 + $0x20] sm:$0xf]  ;;  %v615_v62 = vshll.u32 %v2036_v48, 16 }
   0xe   :  { %v358_v52 = vsel %vm2431_vm2, %v353_v43, %v357_v37  ;;  %v339_v58 = vrot.slane %v338_v46, 4  ;;  %v597_v63 = vrot.slane %v595_v56, 5  ;;  %v59_v0 = vld [vmem:[%s3462_s0 + $0x34] sm:$0x1]  ;;  %v114_v1 = vshrl.u32 %v58_v57, 16 }
   0xf   :  { %445 = vrot.lane.b32.xlu1 %v358_v52, %s2356_s7  ;;  %185 = vrot.lane.b32.xlu0 %v98_v51, %s2355_s20  ;;  %v117_v2 = vshll.u32 %v58_v57, 16  ;;  %v612_v4 = vor.u32 %v611_v59, %v608_v54  ;;  %v100_v5 = vshrl.u32 %v56_v61, 16  ;;  %v601_v9 = vshll.u32 %v2034_v55, 16  ;;  %v2017_v12 = vld [vmem:[%s3462_s0 + $0x10] sm:$0xf] }
  0x10   :  { %v344_v3 = vsel %vm2431_vm2, %v339_v58, %v343_v47  ;;  %v116_v6 = vrot.slane %v114_v1, 4  ;;  %v598_v8 = vor.u32 %v597_v63, %v594_v60  ;;  %v123_v10 = vshll.u32 %v59_v0, 16  ;;  %v2026_v13 = vld [vmem:[%s3462_s0 + $0x20] sm:$0xf]  ;;  %v2007_v19 = vld [vmem:[%s3462_s0 + $0x38] sm:$0xf] }
  0x11   :  { %v119_v7 = vrot.slane %v117_v2, 5  ;;  %v103_v11 = vshll.u32 %v56_v61, 16  ;;  %v613_v14 = vrot.slane %v612_v4, 4  ;;  %v617_v15 = vrot.slane %v615_v62, 5  ;;  %v57_v20 = vld [vmem:[%s3462_s0 + $0x24] sm:$0x1] }
  0x12   :  { %v102_v17 = vrot.slane %v100_v5, 4  ;;  %v599_v21 = vrot.slane %v598_v8, 4  ;;  %v603_v22 = vrot.slane %v601_v9, 5  ;;  %v125_v23 = vrot.slane %v123_v10, 5  ;;  %v2025_v29 = vld [vmem:[%s3462_s0 + $0x10] sm:$0xf] }
  0x13   :  { %495 = vrot.lane.b32.xlu1 %v2018_v53, %s2357_s12  ;;  %443 = vrot.lane.b32.xlu0 %v344_v3, %s2356_s7  ;;  %v120_v16 = vor.u32 %v119_v7, %v116_v6  ;;  %v105_v18 = vrot.slane %v103_v11, 5  ;;  %v618_v24 = vsel %vm2431_vm2, %v613_v14, %v617_v15  ;;  %v374_v26 = vshrl.u32 %v2007_v19, 16  ;;  %v2005_v32 = vld [vmem:[%s3462_s0 + $0x28] sm:$0xf]  ;;  %v2008_v39 = vld [vmem:[%s3462_s0 + $0x3c] sm:$0x1] }
  0x14   :  { %v377_v28 = vshll.u32 %v2007_v19, 16  ;;  %v109_v31 = vshll.u32 %v57_v20, 16  ;;  %v604_v33 = vsel %vm2431_vm2, %v599_v21, %v603_v22  ;;  %v360_v40 = vshrl.u32 %v2005_v32, 16  ;;  %v1988_v42 = vld [vmem:[%s3462_s0 + $0x38] sm:$0xf] }
  0x15   :  { %v121_v25 = vrot.slane %v120_v16, 4  ;;  %v106_v30 = vor.u32 %v105_v18, %v102_v17  ;;  %v376_v35 = vrot.slane %v374_v26, 4  ;;  %v363_v41 = vshll.u32 %v2005_v32, 16  ;;  %v2039_v45 = vld [vmem:[%s3462_s0 + $0x40] sm:$0xf] }
  0x16   :  { %v379_v36 = vrot.slane %v377_v28, 5  ;;  %v111_v38 = vrot.slane %v109_v31, 5  ;;  %v383_v44 = vshll.u32 %v2008_v39, 16  ;;  %v362_v47 = vrot.slane %v360_v40, 4  ;;  %v2006_v49 = vld [vmem:[%s3462_s0 + $0x2c] sm:$0x1] }
  0x17   :  { %544 = vrot.lane.b32.xlu1 %v2026_v13, %s2357_s12  ;;  %493 = vrot.lane.b32.xlu0 %v2017_v12, %s2357_s12  ;;  %v126_v34 = vsel %vm2431_vm2, %v121_v25, %v125_v23  ;;  %v107_v37 = vrot.slane %v106_v30, 4  ;;  %v365_v48 = vrot.slane %v363_v41, 5  ;;  %v634_v50 = vshrl.u32 %v2039_v45, 16  ;;  %v1996_v52 = vld [vmem:[%s3462_s0 + $0x38] sm:$0xf] }
  0x18   :  { %v380_v43 = vor.u32 %v379_v36, %v376_v35  ;;  %v637_v51 = vshll.u32 %v2039_v45, 16  ;;  %v385_v54 = vrot.slane %v383_v44, 5  ;;  %v2037_v55 = vld [vmem:[%s3462_s0 + $0x30] sm:$0xf]  ;;  %v1987_v56 = vld [vmem:[%s3462_s0 + $0x28] sm:$0xf] }
  0x19   :  { %v112_v46 = vsel %vm2431_vm2, %v107_v37, %v111_v38  ;;  %v366_v57 = vor.u32 %v365_v48, %v362_v47  ;;  %v369_v58 = vshll.u32 %v2006_v49, 16  ;;  %v62_v59 = vld [vmem:[%s3462_s0 + $0x50] sm:$0xf]  ;;  %v636_v60 = vrot.slane %v634_v50, 4  ;;  %v2040_v1 = vld [vmem:[%s3462_s0 + $0x44] sm:$0x1] }
  0x1a   :  { %v381_v53 = vrot.slane %v380_v43, 4  ;;  %v639_v61 = vrot.slane %v637_v51, 5  ;;  %v620_v62 = vshrl.u32 %v2037_v55, 16  ;;  %v623_v63 = vshll.u32 %v2037_v55, 16  ;;  %v1995_v4 = vld [vmem:[%s3462_s0 + $0x28] sm:$0xf] }
  0x1b   :  { %705 = vrot.lane.b32.xlu1 %v618_v24, %s2358_s27  ;;  %542 = vrot.lane.b32.xlu0 %v2025_v29, %s2357_s12  ;;  %v142_v2 = vshrl.u32 %v62_v59, 16  ;;  %v145_v3 = vshll.u32 %v62_v59, 16  ;;  %v367_v5 = vrot.slane %v366_v57, 4  ;;  %v371_v6 = vrot.slane %v369_v58, 5  ;;  %v2067_v7 = vld [vmem:[%s3462_s0 + $0xa0] sm:$0xf] }
  0x1c   :  { %v386_v0 = vsel %vm2431_vm2, %v381_v53, %v385_v54  ;;  %v2020_v8 = vld [vmem:[%s3462_s0 + $0x40] sm:$0xf]  ;;  %v640_v10 = vor.u32 %v639_v61, %v636_v60  ;;  %v643_v11 = vshll.u32 %v2040_v1, 16  ;;  %v2038_v12 = vld [vmem:[%s3462_s0 + $0x34] sm:$0x1]  ;;  %v622_v13 = vrot.slane %v620_v62, 4 }
  0x1d   :  { %v60_v9 = vld [vmem:[%s3462_s0 + $0x40] sm:$0xf]  ;;  %v625_v14 = vrot.slane %v623_v63, 5  ;;  %v63_v15 = vld [vmem:[%s3462_s0 + $0x54] sm:$0x1]  ;;  %v144_v16 = vrot.slane %v142_v2, 4  ;;  %v372_v20 = vsel %vm2431_vm2, %v367_v5, %v371_v6 }
  0x1e   :  { %v147_v17 = vrot.slane %v145_v3, 5  ;;  %v800_v18 = vshrl.u32 %v2067_v7, 16  ;;  %v803_v19 = vshll.u32 %v2067_v7, 16  ;;  %v128_v21 = vshrl.u32 %v60_v9, 16  ;;  %v2065_v23 = vld [vmem:[%s3462_s0 + $0x90] sm:$0xf] }
  0x1f   :  { %189 = vrot.lane.b32.xlu1 %v126_v34, %s2355_s20  ;;  %703 = vrot.lane.b32.xlu0 %v604_v33, %s2358_s27  ;;  %v131_v22 = vshll.u32 %v60_v9, 16  ;;  %v2019_v24 = vld [vmem:[%s3462_s0 + $0x30] sm:$0xf]  ;;  %v645_v25 = vrot.slane %v643_v11, 5  ;;  %v626_v26 = vor.u32 %v625_v14, %v622_v13  ;;  %v629_v28 = vshll.u32 %v2038_v12, 16 }
  0x20   :  { %v151_v29 = vshll.u32 %v63_v15, 16  ;;  %v2028_v30 = vld [vmem:[%s3462_s0 + $0x40] sm:$0xf]  ;;  %v641_v31 = vrot.slane %v640_v10, 4  ;;  %v148_v32 = vor.u32 %v147_v17, %v144_v16  ;;  %v802_v33 = vrot.slane %v800_v18, 4 }
  0x21   :  { %v805_v34 = vrot.slane %v803_v19, 5  ;;  %v130_v35 = vrot.slane %v128_v21, 4  ;;  %v133_v36 = vrot.slane %v131_v22, 5  ;;  %v2068_v37 = vld [vmem:[%s3462_s0 + $0xa4] sm:$0x1]  ;;  %v786_v38 = vshrl.u32 %v2065_v23, 16 }
  0x22   :  { %v789_v39 = vshll.u32 %v2065_v23, 16  ;;  %v61_v40 = vld [vmem:[%s3462_s0 + $0x44] sm:$0x1]  ;;  %v627_v41 = vrot.slane %v626_v26, 4  ;;  %v153_v43 = vrot.slane %v151_v29, 5  ;;  %v646_v44 = vsel %vm2431_vm2, %v641_v31, %v645_v25 }
  0x23   :  { %239 = vrot.lane.b32.xlu1 %v1988_v42, %s2354_s22  ;;  %187 = vrot.lane.b32.xlu0 %v112_v46, %s2355_s20  ;;  %v631_v42 = vrot.slane %v629_v28, 5  ;;  %v149_v45 = vrot.slane %v148_v32, 4  ;;  %v806_v46 = vor.u32 %v805_v34, %v802_v33  ;;  %v809_v47 = vshll.u32 %v2068_v37, 16  ;;  %v2027_v48 = vld [vmem:[%s3462_s0 + $0x30] sm:$0xf] }
  0x24   :  { %v134_v49 = vor.u32 %v133_v36, %v130_v35  ;;  %v137_v50 = vshll.u32 %v61_v40, 16  ;;  %v788_v51 = vrot.slane %v786_v38, 4  ;;  %v2066_v53 = vld [vmem:[%s3462_s0 + $0x94] sm:$0x1]  ;;  %v2011_v2 = vld [vmem:[%s3462_s0 + $0x58] sm:$0xf] }
  0x25   :  { %v632_v54 = vsel %vm2431_vm2, %v627_v41, %v631_v42  ;;  %v154_v55 = vsel %vm2431_vm2, %v149_v45, %v153_v43  ;;  %v811_v57 = vrot.slane %v809_v47, 5  ;;  %v795_v61 = vshll.u32 %v2066_v53, 16  ;;  %v1990_v3 = vld [vmem:[%s3462_s0 + $0x58] sm:$0xf]  ;;  %v2099_v7 = vld [vmem:[%s3462_s0 + $0xa8] sm:$0xf] }
  0x26   :  { %v135_v58 = vrot.slane %v134_v49, 4  ;;  %v139_v59 = vrot.slane %v137_v50, 5  ;;  %vm26_vm3 = vcmask 27648   ;;  %v405_v5 = vshll.u32 %v2011_v2, 16  ;;  %v2009_v9 = vld [vmem:[%s3462_s0 + $0x48] sm:$0xf] }
  0x27   :  { %288 = vrot.lane.b32.xlu1 %v1996_v52, %s2354_s22  ;;  %237 = vrot.lane.b32.xlu0 %v1987_v56, %s2354_s22  ;;  %v791_v52 = vrot.slane %v789_v39, 5  ;;  %v807_v56 = vrot.slane %v806_v46, 4  ;;  %v797_v1 = vrot.slane %v795_v61, 5  ;;  %vm43_vm4 = vcmask 60448   ;;  %v35_v10 = vld [vmem:[%s3462_s0] sm:$0xf] }
  0x28   :  { %v140_v63 = vsel %vm2431_vm2, %v135_v58, %v139_v59  ;;  %v1989_v11 = vld [vmem:[%s3462_s0 + $0x48] sm:$0xf]  ;;  %v2012_v13 = vld [vmem:[%s3462_s0 + $0x5c] sm:$0x1]  ;;  %v407_v15 = vrot.slane %v405_v5, 5  ;;  %v1057_v16 = vshrl.u32 %v2099_v7, 16 }
  0x29   :  { %v792_v60 = vor.u32 %v791_v52, %v788_v51  ;;  %v812_v62 = vsel %vm2431_vm2, %v807_v56, %v811_v57  ;;  %v2082_v12 = vld [vmem:[%s3462_s0 + $0xa8] sm:$0xf]  ;;  %v1060_v17 = vshll.u32 %v2099_v7, 16  ;;  %v388_v18 = vshrl.u32 %v2009_v9, 16  ;;  %v36_v21 = vld [vmem:[%s3462_s0 + $0x10] sm:$0xf] }
  0x2a   :  { %v391_v19 = vshll.u32 %v2009_v9, 16  ;;  %v2097_v22 = vld [vmem:[%s3462_s0 + $0x98] sm:$0xf]  ;;  %v2010_v28 = vld [vmem:[%s3462_s0 + $0x4c] sm:$0x1]  ;;  %v1059_v29 = vrot.slane %v1057_v16, 4 }
  0x2b   :  { %449 = vrot.lane.b32.xlu1 %v386_v0, %s2356_s7  ;;  %286 = vrot.lane.b32.xlu0 %v1995_v4, %s2354_s22  ;;  %v793_v0 = vrot.slane %v792_v60, 4  ;;  %v402_v4 = vshrl.u32 %v2011_v2, 16  ;;  %v2081_v23 = vld [vmem:[%s3462_s0 + $0x98] sm:$0xf]  ;;  %v390_v31 = vrot.slane %v388_v18, 4  ;;  %v1043_v34 = vshrl.u32 %v2097_v22, 16 }
  0x2c   :  { %v1998_v25 = vld [vmem:[%s3462_s0 + $0x58] sm:$0xf]  ;;  %v393_v32 = vrot.slane %v391_v19, 5  ;;  %v2100_v33 = vld [vmem:[%s3462_s0 + $0xac] sm:$0x1]  ;;  %v1046_v35 = vshll.u32 %v2097_v22, 16 }
  0x2d   :  { %v798_v6 = vsel %vm2431_vm2, %v793_v0, %v797_v1  ;;  %v404_v14 = vrot.slane %v402_v4, 4  ;;  %v397_v37 = vshll.u32 %v2010_v28, 16  ;;  %v1463_v38 = vld [vmem:[%s3463_s1 + $0x20] sm:$0x33]  ;;  %v2090_v39 = vld [vmem:[%s3462_s0 + $0xa8] sm:$0xf] }
  0x2e   :  { %v1066_v42 = vshll.u32 %v2100_v33, 16  ;;  %vm1566_vm5 = vcmask 1041408   ;;  %v1997_v43 = vld [vmem:[%s3462_s0 + $0x48] sm:$0xf]  ;;  %v1045_v45 = vrot.slane %v1043_v34, 4  ;;  %v1048_v46 = vrot.slane %v1046_v35, 5 }
  0x2f   :  { %499 = vrot.lane.b32.xlu1 %v2020_v8, %s2357_s12  ;;  %447 = vrot.lane.b32.xlu0 %v372_v20, %s2356_s7  ;;  %v18_v8 = vld [vmem:[%s3462_s0] sm:$0xf]  ;;  %v19_v20 = vld [vmem:[%s3462_s0 + $0x10] sm:$0xf]  ;;  %v408_v26 = vor.u32 %v407_v15, %v404_v14  ;;  %v2158_v47 = vcombine.high %v1463_v38, %v1463_v38  ;;  %v2157_v49 = vcombine.low %v1463_v38, %v1463_v38  ;;  %v399_v50 = vrot.slane %v397_v37, 5 }
  0x30   :  { %27 = vst.msk [vmem:[#allocation2] sm:$0xf] %vm26_vm3, %v18_v8  ;;  %28 = vst.msk [vmem:[#allocation2 + $0x4] sm:$0xf] %vm26_vm3, %v19_v20  ;;  %v2340_v51 = vld [vmem:[%s3463_s1 + $0x14] ss:$8 sps:$4 sm:$0xff]   ;;  %v1049_v58 = vor.u32 %v1048_v46, %v1045_v45 }
  0x31   :  { %44 = vst.msk [vmem:[#allocation2] sm:$0xf] %vm43_vm4, %v35_v10  ;;  %45 = vst.msk [vmem:[#allocation2 + $0x4] sm:$0xf] %vm43_vm4, %v36_v21  ;;  %v409_v40 = vrot.slane %v408_v26, 4  ;;  %2159 = vmatprep.subr.msk.bf16.mxu0 %vm1566_vm5, %v2158_v47  ;;  %v1568_v56 = vsel %vm1566_vm5, %v2157_v49, 0  ;;  %2326 = vmatprep.subr.msk.bf16.mxu1 %vm1566_vm5, %v2158_v47 }
  0x32   :  { %v2089_v52 = vld [vmem:[%s3462_s0 + $0x98] sm:$0xf]  ;;  %1584 = vmatpush1.bf16.msra.mxu0 %v1568_v56  ;;  %v21_v61 = vld [vmem:[%s3462_s0 + $0x30] sm:$0xf]  ;;  %2329 = vmatpush1.bf16.msra.mxu1 %v1568_v56  ;;  %v2043_v0 = vld [vmem:[%s3462_s0 + $0x60] sm:$0xf] }
  0x33   :  { %548 = vrot.lane.b32.xlu1 %v2028_v30, %s2357_s12  ;;  %497 = vrot.lane.b32.xlu0 %v2019_v24, %s2357_s12  ;;  %v411_v24 = vshll.u32 %v2012_v13, 16  ;;  %v1062_v30 = vrot.slane %v1060_v17, 5  ;;  %v2342_v60 = vld [vmem:[%s3463_s1 + $0x10] ss:$8 sps:$4 sm:$0xff]   ;;  %30 = vst.msk [vmem:[#allocation2 + $0xc] sm:$0xf] %vm26_vm3, %v21_v61 }
  0x34   :  { %1585 = vmatprep.subr.bf16.mxu0 %v2340_v51  ;;  %2327 = vmatprep.subr.bf16.mxu1 %v2340_v51  ;;  %v37_v1 = vld [vmem:[%s3462_s0 + $0x20] sm:$0xf]  ;;  %v1050_v5 = vrot.slane %v1049_v58, 4  ;;  %v2359_v8 = vmov 0   ;;  %v662_v9 = vshrl.u32 %v2043_v0, 16  ;;  %v665_v10 = vshll.u32 %v2043_v0, 16 }
  0x35   :  { %v413_v36 = vrot.slane %v411_v24, 5  ;;  %v1063_v41 = vor.u32 %v1062_v30, %v1059_v29  ;;  %v2345_v7 = vld [vmem:[%s3463_s1] ss:$8 sps:$4 sm:$0xff]   ;;  %1605 = vmatprep.mubr.bf16.mxu0 %v2359_v8  ;;  %v2131_v13 = vld [vmem:[%s3462_s0 + $0xb0] sm:$0xf]  ;;  %1645 = vmatprep.mubr.bf16.mxu1 %v2359_v8  ;;  %vm207_vm6 = vcmask 93248  }
  0x36   :  { %1586 = vmatpush1.bf16.msra.mxu0 %v2342_v60  ;;  %2330 = vmatpush1.bf16.msra.mxu1 %v2342_v60  ;;  %v2044_v15 = vld [vmem:[%s3462_s0 + $0x64] sm:$0x1]  ;;  %v2042_v16 = vld [vmem:[%s3462_s0 + $0x54] sm:$0x1]  ;;  %v664_v17 = vrot.slane %v662_v9, 4  ;;  %v667_v18 = vrot.slane %v665_v10, 5 }
  0x37   :  { %709 = vrot.lane.b32.xlu1 %v646_v44, %s2358_s27  ;;  %546 = vrot.lane.b32.xlu0 %v2027_v48, %s2357_s12  ;;  %v394_v44 = vor.u32 %v393_v32, %v390_v31  ;;  %v2098_v48 = vld [vmem:[%s3462_s0 + $0x9c] sm:$0x1]  ;;  %v414_v53 = vsel %vm2431_vm2, %v409_v40, %v413_v36  ;;  %v2132_v21 = vld [vmem:[%s3462_s0 + $0xb4] sm:$0x1]  ;;  %v1314_v22 = vshrl.u32 %v2131_v13, 16  ;;  %v657_v26 = vshll.u32 %v2042_v16, 16 }
  0x38   :  { %v1052_v59 = vshll.u32 %v2098_v48, 16  ;;  %v2114_v24 = vld [vmem:[%s3462_s0 + $0xb0] sm:$0xf]  ;;  %v2129_v28 = vld [vmem:[%s3462_s0 + $0xa0] sm:$0xf]  ;;  %v668_v31 = vor.u32 %v667_v18, %v664_v17  ;;  %v1323_v34 = vshll.u32 %v2132_v21, 16 }
  0x39   :  { %v395_v57 = vrot.slane %v394_v44, 4  ;;  %v2021_v29 = vld [vmem:[%s3462_s0 + $0x50] sm:$0xf]  ;;  %v2113_v35 = vld [vmem:[%s3462_s0 + $0xa0] sm:$0xf]  ;;  %v1316_v37 = vrot.slane %v1314_v22, 4 }
  0x3a   :  { %v66_v30 = vld [vmem:[%s3462_s0 + $0x70] sm:$0xf]  ;;  %v2030_v36 = vld [vmem:[%s3462_s0 + $0x60] sm:$0xf]  ;;  %v1303_v40 = vshll.u32 %v2129_v28, 16  ;;  %vm257_vm7 = vcmask 126048  }
  0x3b   :  { %193 = vrot.lane.b32.xlu1 %v154_v55, %s2355_s20  ;;  %707 = vrot.lane.b32.xlu0 %v632_v54, %s2358_s27  ;;  %v1064_v54 = vrot.slane %v1063_v41, 4  ;;  %v1068_v55 = vrot.slane %v1066_v42, 5  ;;  %v400_v4 = vsel %vm2431_vm2, %v395_v57, %v399_v50  ;;  %v2766_v42 = vrot.slane %v657_v26, 5  ;;  %v2071_v46 = vld [vmem:[%s3462_s0 + $0xc0] sm:$0xf] }
  0x3c   :  { %v170_v44 = vshrl.u32 %v66_v30, 16  ;;  %v173_v45 = vshll.u32 %v66_v30, 16  ;;  %v23_v47 = vld [vmem:[%s3462_s0 + $0x50] sm:$0xf]  ;;  %v669_v50 = vrot.slane %v668_v31, 4  ;;  %v1305_v58 = vrot.slane %v1303_v40, 5 }
  0x3d   :  { %v1069_v2 = vsel %vm2431_vm2, %v1064_v54, %v1068_v55  ;;  %v40_v48 = vld [vmem:[%s3462_s0 + $0x50] sm:$0xf]  ;;  %32 = vst.msk [vmem:[#allocation2 + $0x14] sm:$0xf] %vm26_vm3, %v23_v47  ;;  %v22_v54 = vld [vmem:[%s3462_s0 + $0x40] sm:$0xf] }
  0x3e   :  { %v2122_v49 = vld [vmem:[%s3462_s0 + $0xb0] sm:$0xf]  ;;  %49 = vst.msk [vmem:[#allocation2 + $0x14] sm:$0xf] %vm43_vm4, %v40_v48  ;;  %v39_v60 = vld [vmem:[%s3462_s0 + $0x40] sm:$0xf] }
  0x3f   :  { %899 = vrot.lane.b32.xlu1 %v812_v62, %s2355_s20  ;;  %191 = vrot.lane.b32.xlu0 %v140_v63, %s2355_s20  ;;  %v38_v62 = vld [vmem:[%s3462_s0 + $0x30] sm:$0xf]  ;;  %v20_v63 = vld [vmem:[%s3462_s0 + $0x20] sm:$0xf]  ;;  %31 = vst.msk [vmem:[#allocation2 + $0x10] sm:$0xf] %vm26_vm3, %v22_v54 }
  0x40   :  { %47 = vst.msk [vmem:[#allocation2 + $0xc] sm:$0xf] %vm43_vm4, %v38_v62  ;;  %v2029_v55 = vld [vmem:[%s3462_s0 + $0x50] sm:$0xf]  ;;  %v67_v61 = vld [vmem:[%s3462_s0 + $0x74] sm:$0x1] }
  0x41   :  { %29 = vst.msk [vmem:[#allocation2 + $0x8] sm:$0xf] %vm26_vm3, %v20_v63  ;;  %v172_v62 = vrot.slane %v170_v44, 4  ;;  %v175_v63 = vrot.slane %v173_v45, 5  ;;  %v828_v0 = vshrl.u32 %v2071_v46, 16  ;;  %vm306_vm8 = vcmask 158848  }
  0x42   :  { %46 = vst.msk [vmem:[#allocation2 + $0x8] sm:$0xf] %vm43_vm4, %v37_v1  ;;  %v831_v1 = vshll.u32 %v2071_v46, 16  ;;  %48 = vst.msk [vmem:[#allocation2 + $0x10] sm:$0xf] %vm43_vm4, %v39_v60  ;;  %vm467_vm9 = vcmask 191648  }
  0x43   :  { %243 = vrot.lane.b32.xlu1 %v1990_v3, %s2354_s22  ;;  %897 = vrot.lane.b32.xlu0 %v798_v6, %s2355_s20  ;;  %v2343_v3 = vld [vmem:[%s3463_s1 + $0x4] ss:$8 sps:$4 sm:$0xff]   ;;  %v1054_v6 = vrot.slane %v1052_v59, 5  ;;  %v2057_v9 = vld [vmem:[%s3462_s0 + $0x90] sm:$0xf]  ;;  %v176_v16 = vor.u32 %v175_v63, %v172_v62  ;;  %v830_v17 = vrot.slane %v828_v0, 4 }
  0x44   :  { %1587 = vmatprep.subr.bf16.mxu0 %v2343_v3  ;;  %2328 = vmatprep.subr.bf16.mxu1 %v2343_v3  ;;  %v833_v18 = vrot.slane %v831_v1, 5  ;;  %v2072_v21 = vld [vmem:[%s3462_s0 + $0xc4] sm:$0x1]  ;;  %v2103_v60 = vld [vmem:[%s3462_s0 + $0xc8] sm:$0xf]  ;;  %vm517_vm10 = vcmask 224448  }
  0x45   :  { %v1055_v14 = vsel %vm2431_vm2, %v1050_v5, %v1054_v6  ;;  %1588 = vmatpush1.bf16.msra.mxu0 %v2345_v7  ;;  %2331 = vmatpush1.bf16.msra.mxu1 %v2345_v7  ;;  %v2058_v5 = vld [vmem:[%s3462_s0 + $0xa0] sm:$0xf]  ;;  %v2069_v6 = vld [vmem:[%s3462_s0 + $0xb0] sm:$0xf]  ;;  %v177_v31 = vrot.slane %v176_v16, 4  ;;  %vm566_vm11 = vcmask 257248  }
  0x46   :  { %v2049_v7 = vld [vmem:[%s3462_s0 + $0x90] sm:$0xf]  ;;  %v814_v22 = vshrl.u32 %v2069_v6, 16  ;;  %v2016_v1 = vld [vmem:[%s3462_s0 + $0x7c] sm:$0x1]  ;;  %vm727_vm12 = vcmask 290048  }
  0x47   :  { %948 = vrot.lane.b32.xlu1 %v2082_v12, %s2354_s22  ;;  %241 = vrot.lane.b32.xlu0 %v1989_v11, %s2354_s22  ;;  %v2041_v11 = vld [vmem:[%s3462_s0 + $0x50] sm:$0xf]  ;;  %v2022_v12 = vld [vmem:[%s3462_s0 + $0x60] sm:$0xf]  ;;  %745 = vst.msk [vmem:[#allocation2 + $0x20] sm:$0xf] %vm26_vm3, %v2049_v7 }
  0x48   :  { %v648_v19 = vshrl.u32 %v2041_v11, 16  ;;  %v651_v20 = vshll.u32 %v2041_v11, 16  ;;  %761 = vst.msk [vmem:[#allocation2 + $0x20] sm:$0xf] %vm43_vm4, %v2057_v9  ;;  %v25_v7 = vld [vmem:[%s3462_s0 + $0x70] sm:$0xf] }
  0x49   :  { %34 = vst.msk [vmem:[#allocation2 + $0x1c] sm:$0xf] %vm26_vm3, %v25_v7  ;;  %v2023_v7 = vld [vmem:[%s3462_s0 + $0x70] sm:$0xf]  ;;  %vm1541_vm13 = vcmask 293888  }
  0x4a   :  { %v650_v32 = vrot.slane %v648_v19, 4  ;;  %v653_v33 = vrot.slane %v651_v20, 5 }
  0x4b   :  { %292 = vrot.lane.b32.xlu1 %v1998_v25, %s2354_s22  ;;  %946 = vrot.lane.b32.xlu0 %v2081_v23, %s2354_s22  ;;  %v1317_v23 = vshll.u32 %v2131_v13, 16  ;;  %v671_v25 = vshll.u32 %v2044_v15, 16  ;;  %v179_v13 = vshll.u32 %v67_v61, 16  ;;  %v2084_v61 = vld [vmem:[%s3462_s0 + $0xc8] sm:$0xf] }
  0x4c   :  { %v654_v51 = vor.u32 %v653_v33, %v650_v32  ;;  %v834_v32 = vor.u32 %v833_v18, %v830_v17  ;;  %v837_v33 = vshll.u32 %v2072_v21, 16  ;;  %v24_v17 = vld [vmem:[%s3462_s0 + $0x60] sm:$0xf] }
  0x4d   :  { %v1319_v38 = vrot.slane %v1317_v23, 5  ;;  %v673_v41 = vrot.slane %v671_v25, 5  ;;  %v817_v23 = vshll.u32 %v2069_v6, 16  ;;  %v1991_v6 = vld [vmem:[%s3462_s0 + $0x68] sm:$0xf] }
  0x4e   :  { %v655_v11 = vrot.slane %v654_v51, 4  ;;  %33 = vst.msk [vmem:[#allocation2 + $0x18] sm:$0xf] %vm26_vm3, %v24_v17 }
  0x4f   :  { %996 = vrot.lane.b32.xlu1 %v2090_v39, %s2354_s22  ;;  %290 = vrot.lane.b32.xlu0 %v1997_v43, %s2354_s22  ;;  %v1300_v39 = vshrl.u32 %v2129_v28, 16  ;;  %v2130_v43 = vld [vmem:[%s3462_s0 + $0xa4] sm:$0x1]  ;;  %v1320_v56 = vor.u32 %v1319_v38, %v1316_v37  ;;  %v674_v10 = vsel %vm2431_vm2, %v669_v50, %v673_v41  ;;  %v819_v37 = vrot.slane %v817_v23, 5  ;;  %v2070_v38 = vld [vmem:[%s3462_s0 + $0xb4] sm:$0x1] }
  0x50   :  { %v1309_v59 = vshll.u32 %v2130_v43, 16  ;;  %v660_v25 = vsel %vm2431_vm2, %v655_v11, %v2766_v42  ;;  %v835_v41 = vrot.slane %v834_v32, 4  ;;  %v839_v42 = vrot.slane %v837_v33, 5  ;;  %v2101_v11 = vld [vmem:[%s3462_s0 + $0xb8] sm:$0xf] }
  0x51   :  { %v1302_v57 = vrot.slane %v1300_v39, 4  ;;  %v823_v46 = vshll.u32 %v2070_v38, 16  ;;  %v2059_v32 = vld [vmem:[%s3462_s0 + $0xb0] sm:$0xf]  ;;  %v2092_v33 = vld [vmem:[%s3462_s0 + $0xc8] sm:$0xf] }
  0x52   :  { %v1311_v28 = vrot.slane %v1309_v59, 5  ;;  %v840_v48 = vsel %vm2431_vm2, %v835_v41, %v839_v42  ;;  %v1999_v38 = vld [vmem:[%s3462_s0 + $0x68] sm:$0xf] }
  0x53   :  { %453 = vrot.lane.b32.xlu1 %v414_v53, %s2356_s7  ;;  %994 = vrot.lane.b32.xlu0 %v2089_v52, %s2354_s22  ;;  %v2783_v52 = vrot.slane %v1323_v34, 5  ;;  %v64_v53 = vld [vmem:[%s3462_s0 + $0x60] sm:$0xf]  ;;  %v1306_v15 = vor.u32 %v1305_v58, %v1302_v57  ;;  %v825_v51 = vrot.slane %v823_v46, 5  ;;  %v2013_v58 = vld [vmem:[%s3462_s0 + $0x68] sm:$0xf] }
  0x54   :  { %v159_v3 = vshll.u32 %v64_v53, 16  ;;  %v416_v62 = vshrl.u32 %v2013_v58, 16  ;;  %v419_v63 = vshll.u32 %v2013_v58, 16 }
  0x55   :  { %v1307_v30 = vrot.slane %v1306_v15, 4 }
  0x56   :  { %v161_v20 = vrot.slane %v159_v3, 5  ;;  %v418_v15 = vrot.slane %v416_v62, 4  ;;  %v421_v16 = vrot.slane %v419_v63, 5 }
  0x57   :  { %1156 = vrot.lane.b32.xlu1 %v1069_v2, %s2356_s7  ;;  %451 = vrot.lane.b32.xlu0 %v400_v4, %s2356_s7  ;;  %v156_v2 = vshrl.u32 %v64_v53, 16  ;;  %v2050_v4 = vld [vmem:[%s3462_s0 + $0xa0] sm:$0xf]  ;;  %v1312_v39 = vsel %vm2431_vm2, %v1307_v30, %v1311_v28  ;;  %v2014_v30 = vld [vmem:[%s3462_s0 + $0x6c] sm:$0x1] }
  0x58   :  { %746 = vst.msk [vmem:[#allocation2 + $0x24] sm:$0xf] %vm26_vm3, %v2050_v4  ;;  %v1085_v4 = vshrl.u32 %v2103_v60, 16  ;;  %v2060_v28 = vld [vmem:[%s3462_s0 + $0xc0] sm:$0xf]  ;;  %v425_v41 = vshll.u32 %v2014_v30, 16 }
  0x59   :  { %762 = vst.msk [vmem:[#allocation2 + $0x24] sm:$0xf] %vm43_vm4, %v2058_v5  ;;  %v158_v19 = vrot.slane %v156_v2, 4  ;;  %v1088_v5 = vshll.u32 %v2103_v60, 16 }
  0x5b   :  { %503 = vrot.lane.b32.xlu1 %v2022_v12, %s2357_s12  ;;  %1154 = vrot.lane.b32.xlu0 %v1055_v14, %s2356_s7  ;;  %v1321_v12 = vrot.slane %v1320_v56, 4  ;;  %v2121_v14 = vld [vmem:[%s3462_s0 + $0xa0] sm:$0xf]  ;;  %v162_v34 = vor.u32 %v161_v20, %v158_v19  ;;  %v2104_v19 = vld [vmem:[%s3462_s0 + $0xcc] sm:$0x1]  ;;  %v1087_v20 = vrot.slane %v1085_v4, 4 }
  0x5c   :  { %v1090_v21 = vrot.slane %v1088_v5, 5 }
  0x5d   :  { %v1326_v26 = vsel %vm2431_vm2, %v1321_v12, %v2783_v52  ;;  %v163_v43 = vrot.slane %v162_v34, 4  ;;  %v2015_v52 = vld [vmem:[%s3462_s0 + $0x78] sm:$0xf]  ;;  %v42_v12 = vld [vmem:[%s3462_s0 + $0x70] sm:$0xf] }
  0x5e   :  { %v430_v56 = vshrl.u32 %v2015_v52, 16  ;;  %v433_v57 = vshll.u32 %v2015_v52, 16  ;;  %51 = vst.msk [vmem:[#allocation2 + $0x1c] sm:$0xf] %vm43_vm4, %v42_v12  ;;  %v427_v52 = vrot.slane %v425_v41, 5 }
  0x5f   :  { %1205 = vrot.lane.b32.xlu1 %v2114_v24, %s2357_s12  ;;  %501 = vrot.lane.b32.xlu0 %v2021_v29, %s2357_s12  ;;  %v65_v24 = vld [vmem:[%s3462_s0 + $0x64] sm:$0x1]  ;;  %v181_v29 = vrot.slane %v179_v13, 5  ;;  %v2083_v13 = vld [vmem:[%s3462_s0 + $0xb8] sm:$0xf] }
  0x60   :  { %v432_v2 = vrot.slane %v430_v56, 4  ;;  %v435_v3 = vrot.slane %v433_v57, 5  ;;  %v2047_v57 = vld [vmem:[%s3462_s0 + $0x80] sm:$0xf]  ;;  %v2031_v41 = vld [vmem:[%s3462_s0 + $0x70] sm:$0xf] }
  0x61   :  { %v182_v40 = vsel %vm2431_vm2, %v177_v31, %v181_v29  ;;  %v2051_v31 = vld [vmem:[%s3462_s0 + $0xb0] sm:$0xf]  ;;  %v690_v63 = vshrl.u32 %v2047_v57, 16 }
  0x62   :  { %v436_v18 = vor.u32 %v435_v3, %v432_v2  ;;  %747 = vst.msk [vmem:[#allocation2 + $0x28] sm:$0xf] %vm26_vm3, %v2051_v31  ;;  %v2135_v2 = vld [vmem:[%s3462_s0 + $0xd0] sm:$0xf] }
  0x63   :  { %552 = vrot.lane.b32.xlu1 %v2030_v36, %s2357_s12  ;;  %1203 = vrot.lane.b32.xlu0 %v2113_v35, %s2357_s12  ;;  %v165_v35 = vshll.u32 %v65_v24, 16  ;;  %v816_v36 = vrot.slane %v814_v22, 4  ;;  %v41_v22 = vld [vmem:[%s3462_s0 + $0x60] sm:$0xf]  ;;  %v1071_v24 = vshrl.u32 %v2101_v11, 16  ;;  %v1342_v12 = vshrl.u32 %v2135_v2, 16 }
  0x64   :  { %50 = vst.msk [vmem:[#allocation2 + $0x18] sm:$0xf] %vm43_vm4, %v41_v22  ;;  %v437_v34 = vrot.slane %v436_v18, 4  ;;  %763 = vst.msk [vmem:[#allocation2 + $0x28] sm:$0xf] %vm43_vm4, %v2059_v32 }
  0x65   :  { %v167_v44 = vrot.slane %v165_v35, 5  ;;  %v820_v45 = vor.u32 %v819_v37, %v816_v36  ;;  %v1091_v36 = vor.u32 %v1090_v21, %v1087_v20  ;;  %v1094_v37 = vshll.u32 %v2104_v19, 16  ;;  %v2075_v19 = vld [vmem:[%s3462_s0 + $0xe0] sm:$0xf] }
  0x66   :  { %v1073_v42 = vrot.slane %v1071_v24, 4  ;;  %v2115_v21 = vld [vmem:[%s3462_s0 + $0xc0] sm:$0xf]  ;;  %v2136_v24 = vld [vmem:[%s3462_s0 + $0xd4] sm:$0x1]  ;;  %v856_v31 = vshrl.u32 %v2075_v19, 16 }
  0x67   :  { %1253 = vrot.lane.b32.xlu1 %v2122_v49, %s2357_s12  ;;  %550 = vrot.lane.b32.xlu0 %v2029_v55, %s2357_s12  ;;  %v168_v49 = vsel %vm2431_vm2, %v163_v43, %v167_v44  ;;  %v821_v50 = vrot.slane %v820_v45, 4  ;;  %v1992_v55 = vld [vmem:[%s3462_s0 + $0x78] sm:$0xf]  ;;  %v2102_v45 = vld [vmem:[%s3462_s0 + $0xbc] sm:$0x1]  ;;  %v859_v32 = vshll.u32 %v2075_v19, 16 }
  0x69   :  { %v826_v59 = vsel %vm2431_vm2, %v821_v50, %v825_v51 }
  0x6b   :  { %713 = vrot.lane.b32.xlu1 %v674_v10, %s2358_s27  ;;  %1251 = vrot.lane.b32.xlu0 %v2121_v14, %s2357_s12  ;;  %v2000_v10 = vld [vmem:[%s3462_s0 + $0x78] sm:$0xf]  ;;  %v439_v14 = vshll.u32 %v2016_v1, 16  ;;  %v2024_v1 = vld [vmem:[%s3462_s0 + $0x80] sm:$0xf] }
  0x6d   :  { %v441_v35 = vrot.slane %v439_v14, 5  ;;  %v1345_v14 = vshll.u32 %v2135_v2, 16 }
  0x6f   :  { %1413 = vrot.lane.b32.xlu1 %v1326_v26, %s2358_s27  ;;  %711 = vrot.lane.b32.xlu0 %v660_v25, %s2358_s27  ;;  %v1074_v25 = vshll.u32 %v2101_v11, 16  ;;  %v2052_v26 = vld [vmem:[%s3462_s0 + $0xc0] sm:$0xf]  ;;  %v442_v46 = vsel %vm2431_vm2, %v437_v34, %v441_v35  ;;  %v2046_v34 = vld [vmem:[%s3462_s0 + $0x74] sm:$0x1] }
  0x70   :  { %748 = vst.msk [vmem:[#allocation2 + $0x2c] sm:$0xf] %vm26_vm3, %v2052_v26 }
  0x71   :  { %764 = vst.msk [vmem:[#allocation2 + $0x2c] sm:$0xf] %vm43_vm4, %v2060_v28  ;;  %v1076_v43 = vrot.slane %v1074_v25, 5  ;;  %v1344_v25 = vrot.slane %v1342_v12, 4  ;;  %v2032_v28 = vld [vmem:[%s3462_s0 + $0x80] sm:$0xf] }
  0x73   :  { %197 = vrot.lane.b32.xlu1 %v182_v40, %s2355_s20  ;;  %1411 = vrot.lane.b32.xlu0 %v1312_v39, %s2358_s27  ;;  %v422_v40 = vor.u32 %v421_v16, %v418_v15  ;;  %v2133_v15 = vld [vmem:[%s3462_s0 + $0xc0] sm:$0xf] }
  0x74   :  { %v283_v53 = vpop.permute.xlu0 %282  ;;  %v1328_v26 = vshrl.u32 %v2133_v15, 16  ;;  %v1331_v30 = vshll.u32 %v2133_v15, 16 }
  0x75   :  { %v234_v47 = vpop.permute.xlu1 %233  ;;  %v423_v51 = vrot.slane %v422_v40, 4  ;;  %v2073_v40 = vld [vmem:[%s3462_s0 + $0xd0] sm:$0xf] }
  0x77   :  { %903 = vrot.lane.b32.xlu1 %v840_v48, %s2355_s20  ;;  %195 = vrot.lane.b32.xlu0 %v168_v49, %s2355_s20  ;;  %v1096_v48 = vrot.slane %v1094_v37, 5  ;;  %v2091_v49 = vld [vmem:[%s3462_s0 + $0xb8] sm:$0xf]  ;;  %v428_v58 = vsel %vm2431_vm2, %v423_v51, %v427_v52 }
  0x79   :  { %v236_v54 = vpop.permute.xlu1 %235 }
  0x7b   :  { %247 = vrot.lane.b32.xlu1 %v1992_v55, %s2354_s22  ;;  %901 = vrot.lane.b32.xlu0 %v826_v59, %s2355_s20 }
  0x7d   :  { %v285_v0 = vpop.permute.xlu1 %284  ;;  %v184_v9 = vpop.permute.xlu0 %183 }
  0x7e   :  { %208 = vst.msk [vmem:[#allocation2] sm:$0xf] %vm207_vm6, %v184_v9  ;;  %v2116_v9 = vld [vmem:[%s3462_s0 + $0xd0] sm:$0xf] }
  0x7f   :  { %952 = vrot.lane.b32.xlu1 %v2084_v61, %s2354_s22  ;;  %258 = vst.msk [vmem:[#allocation2] sm:$0xf] %vm257_vm7, %v234_v47  ;;  %245 = vrot.lane.b32.xlu0 %v1991_v6, %s2354_s22  ;;  %v1092_v47 = vrot.slane %v1091_v36, 4  ;;  %v2045_v6 = vld [vmem:[%s3462_s0 + $0x70] sm:$0xf] }
  0x80   :  { %307 = vst.msk [vmem:[#allocation2] sm:$0xf] %vm306_vm8, %v283_v53  ;;  %v1077_v53 = vor.u32 %v1076_v43, %v1073_v42  ;;  %v676_v17 = vshrl.u32 %v2045_v6, 16  ;;  %v679_v18 = vshll.u32 %v2045_v6, 16  ;;  %v2123_v6 = vld [vmem:[%s3462_s0 + $0xc0] sm:$0xf] }
  0x81   :  { %v446_v23 = vpop.permute.xlu1 %445  ;;  %v186_v29 = vpop.permute.xlu0 %185  ;;  %v1097_v56 = vsel %vm2431_vm2, %v1092_v47, %v1096_v48  ;;  %v1333_v48 = vrot.slane %v1331_v30, 5 }
  0x82   :  { %209 = vst.msk [vmem:[#allocation2 + $0x4] sm:$0xf] %vm207_vm6, %v186_v29  ;;  %v1078_v60 = vrot.slane %v1077_v53, 4  ;;  %v1347_v29 = vrot.slane %v1345_v14, 5  ;;  %v678_v35 = vrot.slane %v676_v17, 4  ;;  %v681_v36 = vrot.slane %v679_v18, 5 }
  0x83   :  { %296 = vrot.lane.b32.xlu1 %v2000_v10, %s2354_s22  ;;  %259 = vst.msk [vmem:[#allocation2 + $0x4] sm:$0xf] %vm257_vm7, %v236_v54  ;;  %950 = vrot.lane.b32.xlu0 %v2083_v13, %s2354_s22  ;;  %v1080_v54 = vshll.u32 %v2102_v45, 16  ;;  %v692_v10 = vrot.slane %v690_v63, 4  ;;  %v2048_v13 = vld [vmem:[%s3462_s0 + $0x84] sm:$0x1] }
  0x84   :  { %308 = vst.msk [vmem:[#allocation2 + $0x4] sm:$0xf] %vm306_vm8, %v285_v0  ;;  %v693_v0 = vshll.u32 %v2047_v57, 16  ;;  %v1330_v45 = vrot.slane %v1328_v26, 4  ;;  %v1348_v47 = vor.u32 %v1347_v29, %v1344_v25  ;;  %v682_v52 = vor.u32 %v681_v36, %v678_v35  ;;  %v2053_v63 = vld [vmem:[%s3462_s0 + $0xd0] sm:$0xf] }
  0x85   :  { %v496_v39 = vpop.permute.xlu1 %495  ;;  %469 = vst.msk [vmem:[#allocation2 + $0x4] sm:$0xf] %vm467_vm9, %v446_v23  ;;  %v444_v44 = vpop.permute.xlu0 %443  ;;  %v1082_v61 = vrot.slane %v1080_v54, 5  ;;  %v699_v23 = vshll.u32 %v2048_v13, 16  ;;  %v685_v53 = vshll.u32 %v2046_v34, 16 }
  0x86   :  { %468 = vst.msk [vmem:[#allocation2] sm:$0xf] %vm467_vm9, %v444_v44  ;;  %v695_v11 = vrot.slane %v693_v0, 5  ;;  %v2134_v44 = vld [vmem:[%s3462_s0 + $0xc4] sm:$0x1]  ;;  %v1349_v0 = vrot.slane %v1348_v47, 4 }
  0x87   :  { %519 = vst.msk [vmem:[#allocation2 + $0x4] sm:$0xf] %vm517_vm10, %v496_v39  ;;  %1000 = vrot.lane.b32.xlu1 %v2092_v33, %s2354_s22  ;;  %294 = vrot.lane.b32.xlu0 %v1999_v38, %s2354_s22  ;;  %v1083_v3 = vsel %vm2431_vm2, %v1078_v60, %v1082_v61  ;;  %v1351_v39 = vshll.u32 %v2136_v24, 16  ;;  %v701_v43 = vrot.slane %v699_v23, 5  ;;  %v2076_v54 = vld [vmem:[%s3462_s0 + $0xe4] sm:$0x1] }
  0x88   :  { %v696_v22 = vor.u32 %v695_v11, %v692_v10  ;;  %v2054_v61 = vld [vmem:[%s3462_s0 + $0xe0] sm:$0xf]  ;;  %749 = vst.msk [vmem:[#allocation2 + $0x30] sm:$0xf] %vm26_vm3, %v2053_v63  ;;  %v687_v10 = vrot.slane %v685_v53, 5 }
  0x89   :  { %v545_v50 = vpop.permute.xlu1 %544  ;;  %v494_v55 = vpop.permute.xlu0 %493  ;;  %750 = vst.msk [vmem:[#allocation2 + $0x34] sm:$0xf] %vm26_vm3, %v2054_v61  ;;  %v2074_v14 = vld [vmem:[%s3462_s0 + $0xd4] sm:$0x1]  ;;  %v2139_v47 = vld [vmem:[%s3462_s0 + $0xf0] sm:$0xf] }
  0x8a   :  { %568 = vst.msk [vmem:[#allocation2 + $0x4] sm:$0xf] %vm566_vm11, %v545_v50  ;;  %v697_v42 = vrot.slane %v696_v22, 4  ;;  %v861_v50 = vrot.slane %v859_v32, 5  ;;  %v851_v25 = vshll.u32 %v2074_v14, 16 }
  0x8b   :  { %518 = vst.msk [vmem:[#allocation2] sm:$0xf] %vm517_vm10, %v494_v55  ;;  %457 = vrot.lane.b32.xlu1 %v442_v46, %s2356_s7  ;;  %998 = vrot.lane.b32.xlu0 %v2091_v49, %s2354_s22  ;;  %v2124_v46 = vld [vmem:[%s3462_s0 + $0xd0] sm:$0xf]  ;;  %v858_v49 = vrot.slane %v856_v31, 4  ;;  %v842_v55 = vshrl.u32 %v2073_v40, 16 }
  0x8c   :  { %v702_v60 = vsel %vm2431_vm2, %v697_v42, %v701_v43  ;;  %v853_v36 = vrot.slane %v851_v25, 5  ;;  %v2086_v42 = vld [vmem:[%s3462_s0 + $0xe8] sm:$0xf]  ;;  %v2138_v14 = vld [vmem:[%s3462_s0 + $0xe4] sm:$0x1] }
  0x8d   :  { %v706_v59 = vpop.permute.xlu1 %705  ;;  %v543_v62 = vpop.permute.xlu0 %542  ;;  %v862_v2 = vor.u32 %v861_v50, %v858_v49  ;;  %v844_v11 = vrot.slane %v842_v55, 4  ;;  %v2106_v49 = vld [vmem:[%s3462_s0 + $0xdc] sm:$0x1]  ;;  %v2085_v50 = vld [vmem:[%s3462_s0 + $0xd8] sm:$0xf]  ;;  %v1373_v55 = vshll.u32 %v2139_v47, 16 }
  0x8e   :  { %729 = vst.msk [vmem:[#allocation2 + $0x4] sm:$0xf] %vm727_vm12, %v706_v59  ;;  %v1337_v59 = vshll.u32 %v2134_v44, 16  ;;  %v2094_v53 = vld [vmem:[%s3462_s0 + $0xe8] sm:$0xf] }
  0x8f   :  { %567 = vst.msk [vmem:[#allocation2] sm:$0xf] %vm566_vm11, %v543_v62  ;;  %1160 = vrot.lane.b32.xlu1 %v1097_v56, %s2356_s7  ;;  %455 = vrot.lane.b32.xlu0 %v428_v58, %s2356_s7  ;;  %v845_v56 = vshll.u32 %v2073_v40, 16  ;;  %v1353_v58 = vrot.slane %v1351_v39, 5  ;;  %v2062_v62 = vld [vmem:[%s3462_s0 + $0xe0] sm:$0xf] }
  0x90   :  { %766 = vst.msk [vmem:[#allocation2 + $0x34] sm:$0xf] %vm43_vm4, %v2062_v62  ;;  %v1339_v15 = vrot.slane %v1337_v59, 5  ;;  %v1108_v59 = vshll.u32 %v2106_v49, 16 }
  0x91   :  { %v190_v4 = vpop.permute.xlu1 %189  ;;  %v704_v5 = vpop.permute.xlu0 %703  ;;  %v847_v12 = vrot.slane %v845_v56, 5  ;;  %v1354_v18 = vsel %vm2431_vm2, %v1349_v0, %v1353_v58  ;;  %v2137_v56 = vld [vmem:[%s3462_s0 + $0xe0] sm:$0xf] }
  0x92   :  { %211 = vst.msk [vmem:[#allocation2 + $0xc] sm:$0xf] %vm207_vm6, %v190_v4  ;;  %v2107_v4 = vld [vmem:[%s3462_s0 + $0xe8] sm:$0xf]  ;;  %v1356_v63 = vshrl.u32 %v2137_v56, 16  ;;  %v1359_v0 = vshll.u32 %v2137_v56, 16 }
  0x93   :  { %728 = vst.msk [vmem:[#allocation2] sm:$0xf] %vm727_vm12, %v704_v5  ;;  %507 = vrot.lane.b32.xlu1 %v2024_v1, %s2357_s12  ;;  %1158 = vrot.lane.b32.xlu0 %v1083_v3, %s2356_s7  ;;  %v1334_v1 = vor.u32 %v1333_v48, %v1330_v45  ;;  %v865_v3 = vshll.u32 %v2076_v54, 16  ;;  %v2061_v5 = vld [vmem:[%s3462_s0 + $0xd0] sm:$0xf]  ;;  %v1116_v17 = vshll.u32 %v2107_v4, 16  ;;  %v848_v24 = vor.u32 %v847_v12, %v844_v11 }
  0x94   :  { %765 = vst.msk [vmem:[#allocation2 + $0x30] sm:$0xf] %vm43_vm4, %v2061_v5  ;;  %v1370_v54 = vshrl.u32 %v2139_v47, 16  ;;  %v2093_v5 = vld [vmem:[%s3462_s0 + $0xd8] sm:$0xf] }
  0x95   :  { %v240_v16 = vpop.permute.xlu1 %239  ;;  %v188_v20 = vpop.permute.xlu0 %187  ;;  %v1335_v19 = vrot.slane %v1334_v1, 4  ;;  %v1118_v30 = vrot.slane %v1116_v17, 5  ;;  %v849_v35 = vrot.slane %v848_v24, 4  ;;  %v2080_v17 = vld [vmem:[%s3462_s0 + $0x104] sm:$0x1] }
  0x96   :  { %261 = vst.msk [vmem:[#allocation2 + $0xc] sm:$0xf] %vm257_vm7, %v240_v16  ;;  %v1113_v16 = vshrl.u32 %v2107_v4, 16  ;;  %v1372_v1 = vrot.slane %v1370_v54, 4  ;;  %v2125_v54 = vld [vmem:[%s3462_s0 + $0xe0] sm:$0xf] }
  0x97   :  { %210 = vst.msk [vmem:[#allocation2 + $0x8] sm:$0xf] %vm207_vm6, %v188_v20  ;;  %1209 = vrot.lane.b32.xlu1 %v2116_v9, %s2357_s12  ;;  %505 = vrot.lane.b32.xlu0 %v2023_v7, %s2357_s12  ;;  %v683_v9 = vrot.slane %v682_v52, 4  ;;  %v863_v20 = vrot.slane %v862_v2, 4  ;;  %v1340_v31 = vsel %vm2431_vm2, %v1335_v19, %v1339_v15  ;;  %v854_v43 = vsel %vm2431_vm2, %v849_v35, %v853_v36  ;;  %v2126_v35 = vld [vmem:[%s3462_s0 + $0xf0] sm:$0xf] }
  0x98   :  { %v1115_v29 = vrot.slane %v1113_v16, 4  ;;  %v1375_v2 = vrot.slane %v1373_v55, 5  ;;  %v1358_v15 = vrot.slane %v1356_v63, 4  ;;  %v1361_v16 = vrot.slane %v1359_v0, 5 }
  0x99   :  { %v289_v33 = vpop.permute.xlu1 %288  ;;  %v238_v37 = vpop.permute.xlu0 %237  ;;  %v688_v22 = vsel %vm2431_vm2, %v683_v9, %v687_v10  ;;  %v1110_v9 = vrot.slane %v1108_v59, 5  ;;  %v2140_v10 = vld [vmem:[%s3462_s0 + $0xf4] sm:$0x1]  ;;  %v2109_v59 = vld [vmem:[%s3462_s0 + $0xf8] sm:$0xf] }
  0x9a   :  { %v2346_v38 = vld [vmem:[#allocation2] sm:$0xff]   ;;  %310 = vst.msk [vmem:[#allocation2 + $0xc] sm:$0xf] %vm306_vm8, %v289_v33  ;;  %v2108_v33 = vld [vmem:[%s3462_s0 + $0xec] sm:$0x1]  ;;  %v1119_v40 = vor.u32 %v1118_v30, %v1115_v29  ;;  %v1376_v19 = vor.u32 %v1375_v2, %v1372_v1  ;;  %v1365_v29 = vshll.u32 %v2138_v14, 16 }
  0x9b   :  { %260 = vst.msk [vmem:[#allocation2 + $0x8] sm:$0xf] %vm257_vm7, %v238_v37  ;;  %556 = vrot.lane.b32.xlu1 %v2032_v28, %s2357_s12  ;;  %1207 = vrot.lane.b32.xlu0 %v2115_v21, %s2357_s12  ;;  %v867_v21 = vrot.slane %v865_v3, 5  ;;  %v2105_v28 = vld [vmem:[%s3462_s0 + $0xd8] sm:$0xf]  ;;  %v893_v30 = vshll.u32 %v2080_v17, 16 }
  0x9c   :  { %2160 = vmatmul.mubr.msk.bf16.vlgmr.msra.gmra.mxu0 %vm1541_vm13, %v2346_v38  ;;  %v1099_v37 = vshrl.u32 %v2105_v28, 16  ;;  %v1102_v38 = vshll.u32 %v2105_v28, 16  ;;  %v1377_v36 = vrot.slane %v1376_v19, 4  ;;  %v2110_v17 = vld [vmem:[%s3462_s0 + $0xfc] sm:$0x1] }
  0x9d   :  { %v450_v51 = vpop.permute.xlu1 %449  ;;  %1615 = vmatprep.mubr.bf16.mxu0 %v2359_v8  ;;  %v287_v57 = vpop.permute.xlu0 %286  ;;  %v868_v32 = vsel %vm2431_vm2, %v863_v20, %v867_v21  ;;  %v1379_v20 = vshll.u32 %v2140_v10, 16  ;;  %v895_v49 = vrot.slane %v893_v30, 5  ;;  %v2095_v30 = vld [vmem:[%s3462_s0 + $0xf8] sm:$0xf] }
  0x9e   :  { %471 = vst.msk [vmem:[#allocation2 + $0xc] sm:$0xf] %vm467_vm9, %v450_v51  ;;  %v1101_v45 = vrot.slane %v1099_v37, 4  ;;  %v1120_v51 = vrot.slane %v1119_v40, 4  ;;  %v2117_v40 = vld [vmem:[%s3462_s0 + $0xe0] sm:$0xf] }
  0x9f   :  { %309 = vst.msk [vmem:[#allocation2 + $0x8] sm:$0xf] %vm306_vm8, %v287_v57  ;;  %1257 = vrot.lane.b32.xlu1 %v2124_v46, %s2357_s12  ;;  %554 = vrot.lane.b32.xlu0 %v2031_v41, %s2357_s12  ;;  %v1122_v41 = vshll.u32 %v2108_v33, 16  ;;  %v1104_v46 = vrot.slane %v1102_v38, 5  ;;  %v2064_v33 = vld [vmem:[%s3462_s0 + $0x100] sm:$0xf] }
  0xa0   :  { %v1381_v37 = vrot.slane %v1379_v20, 5 }
  0xa1   :  { %v500_v7 = vpop.permute.xlu1 %499  ;;  %v448_v13 = vpop.permute.xlu0 %447  ;;  %v1124_v52 = vrot.slane %v1122_v41, 5  ;;  %v1105_v58 = vor.u32 %v1104_v46, %v1101_v45  ;;  %v2078_v46 = vld [vmem:[%s3462_s0 + $0xf4] sm:$0x1] }
  0xa2   :  { %521 = vst.msk [vmem:[#allocation2 + $0xc] sm:$0xf] %vm517_vm10, %v500_v7 }
  0xa3   :  { %470 = vst.msk [vmem:[#allocation2 + $0x8] sm:$0xf] %vm467_vm9, %v448_v13  ;;  %717 = vrot.lane.b32.xlu1 %v702_v60, %s2358_s27  ;;  %1255 = vrot.lane.b32.xlu0 %v2123_v6, %s2357_s12  ;;  %v2079_v60 = vld [vmem:[%s3462_s0 + $0x100] sm:$0xf]  ;;  %v1125_v62 = vsel %vm2431_vm2, %v1120_v51, %v1124_v52  ;;  %v1106_v7 = vrot.slane %v1105_v58, 4 }
  0xa4   :  { %v884_v3 = vshrl.u32 %v2079_v60, 16  ;;  %v887_v4 = vshll.u32 %v2079_v60, 16  ;;  %v2077_v13 = vld [vmem:[%s3462_s0 + $0xf0] sm:$0xf] }
  0xa5   :  { %v549_v23 = vpop.permute.xlu1 %548  ;;  %v498_v26 = vpop.permute.xlu0 %497  ;;  %v870_v25 = vshrl.u32 %v2077_v13, 16 }
  0xa6   :  { %570 = vst.msk [vmem:[#allocation2 + $0xc] sm:$0xf] %vm566_vm11, %v549_v23  ;;  %v886_v21 = vrot.slane %v884_v3, 4  ;;  %v1111_v23 = vsel %vm2431_vm2, %v1106_v7, %v1110_v9  ;;  %v2112_v3 = vld [vmem:[%s3462_s0 + $0x10c] sm:$0x1] }
  0xa7   :  { %520 = vst.msk [vmem:[#allocation2 + $0x8] sm:$0xf] %vm517_vm10, %v498_v26  ;;  %1417 = vrot.lane.b32.xlu1 %v1354_v18, %s2358_s27  ;;  %715 = vrot.lane.b32.xlu0 %v688_v22, %s2358_s27  ;;  %v2118_v18 = vld [vmem:[%s3462_s0 + $0xf0] sm:$0xf]  ;;  %v889_v22 = vrot.slane %v887_v4, 5  ;;  %v873_v26 = vshll.u32 %v2077_v13, 16 }
  0xa8   :  { %v1127_v4 = vshrl.u32 %v2109_v59, 16  ;;  %v2088_v7 = vld [vmem:[%s3462_s0 + $0x108] sm:$0xf]  ;;  %v1150_v10 = vshll.u32 %v2112_v3, 16 }
  0xa9   :  { %v710_v34 = vpop.permute.xlu1 %709  ;;  %v547_v39 = vpop.permute.xlu0 %546  ;;  %v890_v38 = vor.u32 %v889_v22, %v886_v21 }
  0xaa   :  { %731 = vst.msk [vmem:[#allocation2 + $0xc] sm:$0xf] %vm727_vm12, %v710_v34  ;;  %v2055_v34 = vld [vmem:[%s3462_s0 + $0xf0] sm:$0xf]  ;;  %v1129_v13 = vrot.slane %v1127_v4, 4  ;;  %v1152_v20 = vrot.slane %v1150_v10, 5 }
  0xab   :  { %569 = vst.msk [vmem:[#allocation2 + $0x8] sm:$0xf] %vm566_vm11, %v547_v39  ;;  %907 = vrot.lane.b32.xlu1 %v868_v32, %s2355_s20  ;;  %1415 = vrot.lane.b32.xlu0 %v1340_v31, %s2358_s27  ;;  %v1362_v31 = vor.u32 %v1361_v16, %v1358_v15  ;;  %v2056_v32 = vld [vmem:[%s3462_s0 + $0x100] sm:$0xf]  ;;  %v2063_v39 = vld [vmem:[%s3462_s0 + $0xf0] sm:$0xf] }
  0xac   :  { %752 = vst.msk [vmem:[#allocation2 + $0x3c] sm:$0xf] %vm26_vm3, %v2056_v32  ;;  %751 = vst.msk [vmem:[#allocation2 + $0x38] sm:$0xf] %vm26_vm3, %v2055_v34  ;;  %v891_v51 = vrot.slane %v890_v38, 4 }
  0xad   :  { %v194_v44 = vpop.permute.xlu1 %193  ;;  %v708_v48 = vpop.permute.xlu0 %707  ;;  %768 = vst.msk [vmem:[#allocation2 + $0x3c] sm:$0xf] %vm43_vm4, %v2064_v33  ;;  %767 = vst.msk [vmem:[#allocation2 + $0x38] sm:$0xf] %vm43_vm4, %v2063_v39  ;;  %v1363_v47 = vrot.slane %v1362_v31, 4 }
  0xae   :  { %213 = vst.msk [vmem:[#allocation2 + $0x14] sm:$0xf] %vm207_vm6, %v194_v44  ;;  %v2111_v44 = vld [vmem:[%s3462_s0 + $0x108] sm:$0xf]  ;;  %v2143_v15 = vld [vmem:[%s3462_s0 + $0x110] sm:$0xf] }
  0xaf   :  { %730 = vst.msk [vmem:[#allocation2 + $0x8] sm:$0xf] %vm727_vm12, %v708_v48  ;;  %956 = vrot.lane.b32.xlu1 %v2086_v42, %s2354_s22  ;;  %905 = vrot.lane.b32.xlu0 %v854_v43, %s2355_s20  ;;  %v872_v42 = vrot.slane %v870_v25, 4  ;;  %v875_v43 = vrot.slane %v873_v26, 5  ;;  %v1367_v48 = vrot.slane %v1365_v29, 5  ;;  %v1141_v52 = vshrl.u32 %v2111_v44, 16 }
  0xb0   :  { %v1398_v21 = vshrl.u32 %v2143_v15, 16  ;;  %v1401_v22 = vshll.u32 %v2143_v15, 16  ;;  %v1136_v26 = vshll.u32 %v2110_v17, 16  ;;  %v2141_v29 = vld [vmem:[%s3462_s0 + $0x100] sm:$0xf] }
  0xb1   :  { %v900_v57 = vpop.permute.xlu1 %899  ;;  %v192_v61 = vpop.permute.xlu0 %191  ;;  %v876_v56 = vor.u32 %v875_v43, %v872_v42  ;;  %v1368_v60 = vsel %vm2431_vm2, %v1363_v47, %v1367_v48  ;;  %v1384_v38 = vshrl.u32 %v2141_v29, 16  ;;  %v1387_v39 = vshll.u32 %v2141_v29, 16 }
  0xb2   :  { %922 = vst.msk [vmem:[#allocation2 + $0x24] sm:$0xf] %vm207_vm6, %v900_v57  ;;  %212 = vst.msk [vmem:[#allocation2 + $0x10] sm:$0xf] %vm207_vm6, %v192_v61  ;;  %v879_v57 = vshll.u32 %v2078_v46, 16  ;;  %v896_v61 = vsel %vm2431_vm2, %v891_v51, %v895_v49  ;;  %v1400_v32 = vrot.slane %v1398_v21, 4 }
  0xb3   :  { %1004 = vrot.lane.b32.xlu1 %v2094_v53, %s2354_s22  ;;  %954 = vrot.lane.b32.xlu0 %v2085_v50, %s2354_s22  ;;  %v1382_v50 = vsel %vm2431_vm2, %v1377_v36, %v1381_v37  ;;  %v1144_v53 = vshll.u32 %v2111_v44, 16  ;;  %v877_v1 = vrot.slane %v876_v56, 4  ;;  %v1403_v33 = vrot.slane %v1401_v22, 5  ;;  %v2144_v37 = vld [vmem:[%s3462_s0 + $0x114] sm:$0x1] }
  0xb4   :  { %v881_v2 = vrot.slane %v879_v57, 5  ;;  %v1138_v36 = vrot.slane %v1136_v26, 5  ;;  %v1407_v43 = vshll.u32 %v2144_v37, 16  ;;  %v1386_v46 = vrot.slane %v1384_v38, 4  ;;  %v2142_v49 = vld [vmem:[%s3462_s0 + $0x104] sm:$0x1] }
  0xb5   :  { %v244_v6 = vpop.permute.xlu1 %243  ;;  %v898_v11 = vpop.permute.xlu0 %897  ;;  %v1146_v63 = vrot.slane %v1144_v53, 5  ;;  %v1404_v42 = vor.u32 %v1403_v33, %v1400_v32  ;;  %v1389_v47 = vrot.slane %v1387_v39, 5  ;;  %v2119_v53 = vld [vmem:[%s3462_s0 + $0x100] sm:$0xf]  ;;  %v1393_v56 = vshll.u32 %v2142_v49, 16 }
  0xb6   :  { %v2347_v12 = vld [vmem:[#allocation2 + $0x8] sm:$0xff]   ;;  %263 = vst.msk [vmem:[#allocation2 + $0x14] sm:$0xf] %vm257_vm7, %v244_v6 }
  0xb7   :  { %921 = vst.msk [vmem:[#allocation2 + $0x20] sm:$0xf] %vm207_vm6, %v898_v11  ;;  %1164 = vrot.lane.b32.xlu1 %v1125_v62, %s2356_s7  ;;  %1002 = vrot.lane.b32.xlu0 %v2093_v5, %s2354_s22  ;;  %v1143_v62 = vrot.slane %v1141_v52, 4  ;;  %v1130_v5 = vshll.u32 %v2109_v59, 16  ;;  %v882_v11 = vsel %vm2431_vm2, %v877_v1, %v881_v2  ;;  %v1405_v51 = vrot.slane %v1404_v42, 4 }
  0xb8   :  { %2161 = vmatmul.mubr.msk.bf16.gmra.mxu0 %vm1541_vm13, %v2347_v12  ;;  %v1409_v52 = vrot.slane %v1407_v43, 5  ;;  %v2127_v59 = vld [vmem:[%s3462_s0 + $0x100] sm:$0xf] }
  0xb9   :  { %v949_v24 = vpop.permute.xlu1 %948  ;;  %1625 = vmatprep.mubr.bf16.mxu0 %v2359_v8  ;;  %v242_v28 = vpop.permute.xlu0 %241  ;;  %v1147_v9 = vor.u32 %v1146_v63, %v1143_v62  ;;  %v1132_v14 = vrot.slane %v1130_v5, 5  ;;  %v1395_v62 = vrot.slane %v1393_v56, 5 }
  0xba   :  { %971 = vst.msk [vmem:[#allocation2 + $0x24] sm:$0xf] %vm257_vm7, %v949_v24  ;;  %262 = vst.msk [vmem:[#allocation2 + $0x10] sm:$0xf] %vm257_vm7, %v242_v28 }
  0xbb   :  { %1213 = vrot.lane.b32.xlu1 %v2118_v18, %s2357_s12  ;;  %1162 = vrot.lane.b32.xlu0 %v1111_v23, %s2356_s7  ;;  %v2096_v18 = vld [vmem:[%s3462_s0 + $0x108] sm:$0xf]  ;;  %v1148_v19 = vrot.slane %v1147_v9, 4  ;;  %v2087_v23 = vld [vmem:[%s3462_s0 + $0xf8] sm:$0xf]  ;;  %v1133_v25 = vor.u32 %v1132_v14, %v1129_v13 }
  0xbd   :  { %v293_v41 = vpop.permute.xlu1 %292  ;;  %v947_v45 = vpop.permute.xlu0 %946  ;;  %v1153_v31 = vsel %vm2431_vm2, %v1148_v19, %v1152_v20 }
  0xbe   :  { %312 = vst.msk [vmem:[#allocation2 + $0x14] sm:$0xf] %vm306_vm8, %v293_v41  ;;  %v2120_v41 = vld [vmem:[%s3462_s0 + $0x110] sm:$0xf] }
  0xbf   :  { %970 = vst.msk [vmem:[#allocation2 + $0x20] sm:$0xf] %vm257_vm7, %v947_v45  ;;  %1261 = vrot.lane.b32.xlu1 %v2126_v35, %s2357_s12  ;;  %1211 = vrot.lane.b32.xlu0 %v2117_v40, %s2357_s12  ;;  %v1134_v35 = vrot.slane %v1133_v25, 4 }
  0xc1   :  { %v997_v55 = vpop.permute.xlu1 %996  ;;  %v291_v58 = vpop.permute.xlu0 %290  ;;  %v1139_v44 = vsel %vm2431_vm2, %v1134_v35, %v1138_v36 }
  0xc2   :  { %1019 = vst.msk [vmem:[#allocation2 + $0x24] sm:$0xf] %vm306_vm8, %v997_v55  ;;  %311 = vst.msk [vmem:[#allocation2 + $0x10] sm:$0xf] %vm306_vm8, %v291_v58  ;;  %v1390_v55 = vor.u32 %v1389_v47, %v1386_v46  ;;  %v1410_v58 = vsel %vm2431_vm2, %v1405_v51, %v1409_v52 }
  0xc3   :  { %1421 = vrot.lane.b32.xlu1 %v1382_v50, %s2358_s27  ;;  %1259 = vrot.lane.b32.xlu0 %v2125_v54, %s2357_s12  ;;  %v2128_v50 = vld [vmem:[%s3462_s0 + $0x110] sm:$0xf] }
  0xc5   :  { %v454_v0 = vpop.permute.xlu1 %453  ;;  %v995_v6 = vpop.permute.xlu0 %994 }
  0xc6   :  { %473 = vst.msk [vmem:[#allocation2 + $0x14] sm:$0xf] %vm467_vm9, %v454_v0 }
  0xc7   :  { %1018 = vst.msk [vmem:[#allocation2 + $0x20] sm:$0xf] %vm306_vm8, %v995_v6  ;;  %911 = vrot.lane.b32.xlu1 %v896_v61, %s2355_s20  ;;  %1419 = vrot.lane.b32.xlu0 %v1368_v60, %s2358_s27  ;;  %v1391_v61 = vrot.slane %v1390_v55, 4 }
  0xc9   :  { %v1157_v12 = vpop.permute.xlu1 %1156  ;;  %v452_v16 = vpop.permute.xlu0 %451  ;;  %v1396_v0 = vsel %vm2431_vm2, %v1391_v61, %v1395_v62 }
  0xca   :  { %1179 = vst.msk [vmem:[#allocation2 + $0x24] sm:$0xf] %vm467_vm9, %v1157_v12  ;;  %472 = vst.msk [vmem:[#allocation2 + $0x10] sm:$0xf] %vm467_vm9, %v452_v16 }
  0xcb   :  { %960 = vrot.lane.b32.xlu1 %v2088_v7, %s2354_s22  ;;  %909 = vrot.lane.b32.xlu0 %v882_v11, %s2355_s20 }
  0xcd   :  { %v504_v24 = vpop.permute.xlu1 %503  ;;  %v1155_v28 = vpop.permute.xlu0 %1154 }
  0xce   :  { %523 = vst.msk [vmem:[#allocation2 + $0x14] sm:$0xf] %vm517_vm10, %v504_v24 }
  0xcf   :  { %1178 = vst.msk [vmem:[#allocation2 + $0x20] sm:$0xf] %vm467_vm9, %v1155_v28  ;;  %1008 = vrot.lane.b32.xlu1 %v2096_v18, %s2354_s22  ;;  %958 = vrot.lane.b32.xlu0 %v2087_v23, %s2354_s22 }
  0xd1   :  { %v1206_v34 = vpop.permute.xlu1 %1205  ;;  %v502_v40 = vpop.permute.xlu0 %501 }
  0xd2   :  { %1228 = vst.msk [vmem:[#allocation2 + $0x24] sm:$0xf] %vm517_vm10, %v1206_v34  ;;  %522 = vst.msk [vmem:[#allocation2 + $0x10] sm:$0xf] %vm517_vm10, %v502_v40 }
  0xd3   :  { %1168 = vrot.lane.b32.xlu1 %v1153_v31, %s2356_s7  ;;  %1006 = vrot.lane.b32.xlu0 %v2095_v30, %s2354_s22 }
  0xd5   :  { %v553_v45 = vpop.permute.xlu1 %552  ;;  %v1204_v48 = vpop.permute.xlu0 %1203 }
  0xd6   :  { %572 = vst.msk [vmem:[#allocation2 + $0x14] sm:$0xf] %vm566_vm11, %v553_v45 }
  0xd7   :  { %1227 = vst.msk [vmem:[#allocation2 + $0x20] sm:$0xf] %vm517_vm10, %v1204_v48  ;;  %1217 = vrot.lane.b32.xlu1 %v2120_v41, %s2357_s12  ;;  %1166 = vrot.lane.b32.xlu0 %v1139_v44, %s2356_s7 }
  0xd9   :  { %v1254_v54 = vpop.permute.xlu1 %1253  ;;  %v551_v57 = vpop.permute.xlu0 %550 }
  0xda   :  { %1276 = vst.msk [vmem:[#allocation2 + $0x24] sm:$0xf] %vm566_vm11, %v1254_v54  ;;  %571 = vst.msk [vmem:[#allocation2 + $0x10] sm:$0xf] %vm566_vm11, %v551_v57 }
  0xdb   :  { %1265 = vrot.lane.b32.xlu1 %v2128_v50, %s2357_s12  ;;  %1215 = vrot.lane.b32.xlu0 %v2119_v53, %s2357_s12 }
  0xdd   :  { %v714_v60 = vpop.permute.xlu1 %713  ;;  %v1252_v63 = vpop.permute.xlu0 %1251 }
  0xde   :  { %733 = vst.msk [vmem:[#allocation2 + $0x14] sm:$0xf] %vm727_vm12, %v714_v60 }
  0xdf   :  { %1275 = vst.msk [vmem:[#allocation2 + $0x20] sm:$0xf] %vm566_vm11, %v1252_v63  ;;  %1425 = vrot.lane.b32.xlu1 %v1410_v58, %s2358_s27  ;;  %1263 = vrot.lane.b32.xlu0 %v2127_v59, %s2357_s12  ;;  %v1466_v63 = vlaneseq }
  0xe1   :  { %v1414_v1 = vpop.permute.xlu1 %1413  ;;  %v712_v2 = vpop.permute.xlu0 %711 }
  0xe2   :  { %1436 = vst.msk [vmem:[#allocation2 + $0x24] sm:$0xf] %vm727_vm12, %v1414_v1  ;;  %732 = vst.msk [vmem:[#allocation2 + $0x10] sm:$0xf] %vm727_vm12, %v712_v2  ;;  %v3361_v1 = vshrl.u32 %v1466_v63, 7 }
  0xe3   :  { %1423 = vrot.lane.b32.xlu0 %v1396_v0, %s2358_s27 }
  0xe4   :  { %vm1964_vm14 = vcmp.eq.s32.totalorder %v3361_v1, 0  ;;  %vm1966_vm15 = vcmp.eq.s32.totalorder %v3361_v1, 1  ;;  %vm1968_vm0 = vcmp.eq.s32.totalorder %v3361_v1, 2  ;;  %vm1970_vm1 = vcmp.eq.s32.totalorder %v3361_v1, 3 }
  0xe5   :  { %v198_v3 = vpop.permute.xlu1 %197  ;;  %v1412_v4 = vpop.permute.xlu0 %1411 }
  0xe6   :  { %215 = vst.msk [vmem:[#allocation2 + $0x1c] sm:$0xf] %vm207_vm6, %v198_v3  ;;  %v1468_v3 = vsub.s32 0, %v3361_v1 }
  0xe7   :  { %1435 = vst.msk [vmem:[#allocation2 + $0x20] sm:$0xf] %vm727_vm12, %v1412_v4  ;;  %v1464_v4 = vld [vmem:[%s3464_s2] sm:$0x3] }
  0xe9   :  { %v904_v5 = vpop.permute.xlu1 %903  ;;  %v196_v6 = vpop.permute.xlu0 %195  ;;  %v2348_v7 = vld [vmem:[#allocation2 + $0x10] sm:$0xff]  }
  0xea   :  { %924 = vst.msk [vmem:[#allocation2 + $0x2c] sm:$0xf] %vm207_vm6, %v904_v5  ;;  %214 = vst.msk [vmem:[#allocation2 + $0x18] sm:$0xf] %vm207_vm6, %v196_v6  ;;  %2162 = vmatmul.mubr.msk.bf16.gmra.mxu0 %vm1541_vm13, %v2348_v7  ;;  %v1472_v5 = vsub.s32 1, %v3361_v1  ;;  %v3370_v6 = vrot.slane %v1464_v4, %v1468_v3 }
  0xeb   :  { %1635 = vmatprep.mubr.bf16.mxu0 %v2359_v8 }
  0xed   :  { %v248_v27 = vpop.permute.xlu1 %247  ;;  %v902_v9 = vpop.permute.xlu0 %901 }
  0xee   :  { %v2349_v10 = vld [vmem:[#allocation2 + $0x20] sm:$0xff]   ;;  %265 = vst.msk [vmem:[#allocation2 + $0x1c] sm:$0xf] %vm257_vm7, %v248_v27  ;;  %v3372_v27 = vrot.slane %v1464_v4, %v1472_v5 }
  0xef   :  { %923 = vst.msk [vmem:[#allocation2 + $0x28] sm:$0xf] %vm207_vm6, %v902_v9  ;;  %2164 = vmatmul.mubr.msk.bf16.vlgmr.msra.gmra.mxu1 %vm1541_vm13, %v2349_v10 }
  0xf0   :  { %1655 = vmatprep.mubr.bf16.mxu1 %v2359_v8 }
  0xf1   :  { %v953_v11 = vpop.permute.xlu1 %952  ;;  %v246_v12 = vpop.permute.xlu0 %245 }
  0xf2   :  { %973 = vst.msk [vmem:[#allocation2 + $0x2c] sm:$0xf] %vm257_vm7, %v953_v11  ;;  %264 = vst.msk [vmem:[#allocation2 + $0x18] sm:$0xf] %vm257_vm7, %v246_v12 }
  0xf5   :  { %v297_v13 = vpop.permute.xlu1 %296  ;;  %v951_v14 = vpop.permute.xlu0 %950 }
  0xf6   :  { %314 = vst.msk [vmem:[#allocation2 + $0x1c] sm:$0xf] %vm306_vm8, %v297_v13 }
  0xf7   :  { %972 = vst.msk [vmem:[#allocation2 + $0x28] sm:$0xf] %vm257_vm7, %v951_v14 }
  0xf9   :  { %v1001_v15 = vpop.permute.xlu1 %1000  ;;  %v295_v16 = vpop.permute.xlu0 %294 }
  0xfa   :  { %1021 = vst.msk [vmem:[#allocation2 + $0x2c] sm:$0xf] %vm306_vm8, %v1001_v15  ;;  %313 = vst.msk [vmem:[#allocation2 + $0x18] sm:$0xf] %vm306_vm8, %v295_v16 }
  0xfd   :  { %v458_v17 = vpop.permute.xlu1 %457  ;;  %v999_v18 = vpop.permute.xlu0 %998 }
  0xfe   :  { %475 = vst.msk [vmem:[#allocation2 + $0x1c] sm:$0xf] %vm467_vm9, %v458_v17 }
  0xff   :  { %1020 = vst.msk [vmem:[#allocation2 + $0x28] sm:$0xf] %vm306_vm8, %v999_v18 }
 0x101   :  { %v1161_v19 = vpop.permute.xlu1 %1160  ;;  %v456_v20 = vpop.permute.xlu0 %455 }
 0x102   :  { %1181 = vst.msk [vmem:[#allocation2 + $0x2c] sm:$0xf] %vm467_vm9, %v1161_v19  ;;  %474 = vst.msk [vmem:[#allocation2 + $0x18] sm:$0xf] %vm467_vm9, %v456_v20 }
 0x105   :  { %v508_v21 = vpop.permute.xlu1 %507  ;;  %v1159_v22 = vpop.permute.xlu0 %1158 }
 0x106   :  { %525 = vst.msk [vmem:[#allocation2 + $0x1c] sm:$0xf] %vm517_vm10, %v508_v21 }
 0x107   :  { %1180 = vst.msk [vmem:[#allocation2 + $0x28] sm:$0xf] %vm467_vm9, %v1159_v22 }
 0x109   :  { %v1210_v23 = vpop.permute.xlu1 %1209  ;;  %v506_v24 = vpop.permute.xlu0 %505 }
 0x10a   :  { %1230 = vst.msk [vmem:[#allocation2 + $0x2c] sm:$0xf] %vm517_vm10, %v1210_v23  ;;  %524 = vst.msk [vmem:[#allocation2 + $0x18] sm:$0xf] %vm517_vm10, %v506_v24 }
 0x10d   :  { %v557_v25 = vpop.permute.xlu1 %556  ;;  %v1208_v26 = vpop.permute.xlu0 %1207 }
 0x10e   :  { %574 = vst.msk [vmem:[#allocation2 + $0x1c] sm:$0xf] %vm566_vm11, %v557_v25 }
 0x10f   :  { %1229 = vst.msk [vmem:[#allocation2 + $0x28] sm:$0xf] %vm517_vm10, %v1208_v26 }
 0x111   :  { %v1258_v28 = vpop.permute.xlu1 %1257  ;;  %v555_v29 = vpop.permute.xlu0 %554 }
 0x112   :  { %1278 = vst.msk [vmem:[#allocation2 + $0x2c] sm:$0xf] %vm566_vm11, %v1258_v28  ;;  %573 = vst.msk [vmem:[#allocation2 + $0x18] sm:$0xf] %vm566_vm11, %v555_v29 }
 0x115   :  { %v718_v30 = vpop.permute.xlu1 %717  ;;  %v1256_v31 = vpop.permute.xlu0 %1255 }
 0x116   :  { %735 = vst.msk [vmem:[#allocation2 + $0x1c] sm:$0xf] %vm727_vm12, %v718_v30 }
 0x117   :  { %1277 = vst.msk [vmem:[#allocation2 + $0x28] sm:$0xf] %vm566_vm11, %v1256_v31 }
 0x119   :  { %v1418_v32 = vpop.permute.xlu1 %1417  ;;  %v716_v33 = vpop.permute.xlu0 %715 }
 0x11a   :  { %1438 = vst.msk [vmem:[#allocation2 + $0x2c] sm:$0xf] %vm727_vm12, %v1418_v32  ;;  %734 = vst.msk [vmem:[#allocation2 + $0x18] sm:$0xf] %vm727_vm12, %v716_v33 }
 0x11d   :  { %v908_v34 = vpop.permute.xlu1 %907  ;;  %v1416_v35 = vpop.permute.xlu0 %1415 }
 0x11e   :  { %926 = vst.msk [vmem:[#allocation2 + $0x34] sm:$0xf] %vm207_vm6, %v908_v34 }
 0x11f   :  { %1437 = vst.msk [vmem:[#allocation2 + $0x28] sm:$0xf] %vm727_vm12, %v1416_v35 }
 0x121   :  { %v957_v36 = vpop.permute.xlu1 %956  ;;  %v906_v37 = vpop.permute.xlu0 %905  ;;  %v2350_v38 = vld [vmem:[#allocation2 + $0x18] sm:$0xff]  }
 0x122   :  { %975 = vst.msk [vmem:[#allocation2 + $0x34] sm:$0xf] %vm257_vm7, %v957_v36  ;;  %2163 = vmatmul.mubr.msk.bf16.gmra.mxu0 %vm1541_vm13, %v2350_v38 }
 0x123   :  { %925 = vst.msk [vmem:[#allocation2 + $0x30] sm:$0xf] %vm207_vm6, %v906_v37 }
 0x125   :  { %v1005_v39 = vpop.permute.xlu1 %1004  ;;  %v955_v40 = vpop.permute.xlu0 %954 }
 0x126   :  { %v2351_v41 = vld [vmem:[#allocation2 + $0x28] sm:$0xff]   ;;  %1023 = vst.msk [vmem:[#allocation2 + $0x34] sm:$0xf] %vm306_vm8, %v1005_v39 }
 0x127   :  { %974 = vst.msk [vmem:[#allocation2 + $0x30] sm:$0xf] %vm257_vm7, %v955_v40  ;;  %2165 = vmatmul.mubr.msk.bf16.gmra.mxu1 %vm1541_vm13, %v2351_v41 }
 0x128   :  { %1665 = vmatprep.mubr.bf16.mxu1 %v2359_v8 }
 0x129   :  { %v1165_v42 = vpop.permute.xlu1 %1164  ;;  %v1003_v43 = vpop.permute.xlu0 %1002 }
 0x12a   :  { %1183 = vst.msk [vmem:[#allocation2 + $0x34] sm:$0xf] %vm467_vm9, %v1165_v42 }
 0x12b   :  { %1022 = vst.msk [vmem:[#allocation2 + $0x30] sm:$0xf] %vm306_vm8, %v1003_v43 }
 0x12d   :  { %v1214_v44 = vpop.permute.xlu1 %1213  ;;  %v1163_v45 = vpop.permute.xlu0 %1162 }
 0x12e   :  { %1232 = vst.msk [vmem:[#allocation2 + $0x34] sm:$0xf] %vm517_vm10, %v1214_v44 }
 0x12f   :  { %1182 = vst.msk [vmem:[#allocation2 + $0x30] sm:$0xf] %vm467_vm9, %v1163_v45 }
 0x131   :  { %v1262_v46 = vpop.permute.xlu1 %1261  ;;  %v1212_v47 = vpop.permute.xlu0 %1211 }
 0x132   :  { %1280 = vst.msk [vmem:[#allocation2 + $0x34] sm:$0xf] %vm566_vm11, %v1262_v46 }
 0x133   :  { %1231 = vst.msk [vmem:[#allocation2 + $0x30] sm:$0xf] %vm517_vm10, %v1212_v47 }
 0x135   :  { %v1422_v48 = vpop.permute.xlu1 %1421  ;;  %v1260_v49 = vpop.permute.xlu0 %1259 }
 0x136   :  { %1440 = vst.msk [vmem:[#allocation2 + $0x34] sm:$0xf] %vm727_vm12, %v1422_v48 }
 0x137   :  { %1279 = vst.msk [vmem:[#allocation2 + $0x30] sm:$0xf] %vm566_vm11, %v1260_v49 }
 0x139   :  { %v912_v50 = vpop.permute.xlu1 %911  ;;  %v1420_v51 = vpop.permute.xlu0 %1419 }
 0x13a   :  { %928 = vst.msk [vmem:[#allocation2 + $0x3c] sm:$0xf] %vm207_vm6, %v912_v50 }
 0x13b   :  { %1439 = vst.msk [vmem:[#allocation2 + $0x30] sm:$0xf] %vm727_vm12, %v1420_v51 }
 0x13d   :  { %v961_v52 = vpop.permute.xlu1 %960  ;;  %v910_v53 = vpop.permute.xlu0 %909 }
 0x13e   :  { %977 = vst.msk [vmem:[#allocation2 + $0x3c] sm:$0xf] %vm257_vm7, %v961_v52 }
 0x13f   :  { %927 = vst.msk [vmem:[#allocation2 + $0x38] sm:$0xf] %vm207_vm6, %v910_v53 }
 0x141   :  { %v1009_v54 = vpop.permute.xlu1 %1008  ;;  %v959_v55 = vpop.permute.xlu0 %958 }
 0x142   :  { %v2352_v56 = vld [vmem:[#allocation2 + $0x30] sm:$0xff]   ;;  %1025 = vst.msk [vmem:[#allocation2 + $0x3c] sm:$0xf] %vm306_vm8, %v1009_v54 }
 0x143   :  { %976 = vst.msk [vmem:[#allocation2 + $0x38] sm:$0xf] %vm257_vm7, %v959_v55  ;;  %2166 = vmatmul.mubr.msk.bf16.gmra.mxu1 %vm1541_vm13, %v2352_v56 }
 0x144   :  { %1675 = vmatprep.mubr.bf16.mxu1 %v2359_v8 }
 0x145   :  { %v1169_v57 = vpop.permute.xlu1 %1168  ;;  %v1007_v58 = vpop.permute.xlu0 %1006 }
 0x146   :  { %1185 = vst.msk [vmem:[#allocation2 + $0x3c] sm:$0xf] %vm467_vm9, %v1169_v57 }
 0x147   :  { %1024 = vst.msk [vmem:[#allocation2 + $0x38] sm:$0xf] %vm306_vm8, %v1007_v58 }
 0x149   :  { %v1218_v59 = vpop.permute.xlu1 %1217  ;;  %v1167_v60 = vpop.permute.xlu0 %1166 }
 0x14a   :  { %1234 = vst.msk [vmem:[#allocation2 + $0x3c] sm:$0xf] %vm517_vm10, %v1218_v59 }
 0x14b   :  { %1184 = vst.msk [vmem:[#allocation2 + $0x38] sm:$0xf] %vm467_vm9, %v1167_v60 }
 0x14d   :  { %v1266_v61 = vpop.permute.xlu1 %1265  ;;  %v1216_v62 = vpop.permute.xlu0 %1215 }
 0x14e   :  { %1282 = vst.msk [vmem:[#allocation2 + $0x3c] sm:$0xf] %vm566_vm11, %v1266_v61 }
 0x14f   :  { %1233 = vst.msk [vmem:[#allocation2 + $0x38] sm:$0xf] %vm517_vm10, %v1216_v62 }
 0x151   :  { %v1426_v0 = vpop.permute.xlu1 %1425  ;;  %v1264_v8 = vpop.permute.xlu0 %1263 }
 0x152   :  { %1442 = vst.msk [vmem:[#allocation2 + $0x3c] sm:$0xf] %vm727_vm12, %v1426_v0 }
 0x153   :  { %1281 = vst.msk [vmem:[#allocation2 + $0x38] sm:$0xf] %vm566_vm11, %v1264_v8 }
 0x155   :  { %v1424_v2 = vpop.permute.xlu0 %1423 }
 0x156   :  { %1441 = vst.msk [vmem:[#allocation2 + $0x38] sm:$0xf] %vm727_vm12, %v1424_v2 }
 0x15c   :  { %v1607_v7 = vpop.f32.mrf.mxu0 }
 0x15d   :  { %v1608_v9 = vadd.f32 %v1607_v7, %v3370_v6  ;;  %v2353_v11 = vld [vmem:[#allocation2 + $0x38] sm:$0xff]  }
 0x15e   :  { %v1609_v10 = vpop.f32.mrf.mxu0  ;;  %2167 = vmatmul.mubr.msk.bf16.gmra.mxu1 %vm1541_vm13, %v2353_v11 }
 0x15f   :  { %v1610_v12 = vadd.f32 %v1609_v10, %v3372_v27  ;;  %v1867_v15 = vmul.f32 %v1608_v9, %v1608_v9 }
 0x160   :  { %v1611_v13 = vpop.f32.mrf.mxu0 }
 0x161   :  { %v1612_v14 = vadd.f32 %v1611_v13, %v3370_v6  ;;  %v1925_v21 = vmul.f32 %v1610_v12, %v1610_v12 }
 0x162   :  { %v1613_v16 = vpop.f32.mrf.mxu0 }
 0x163   :  { %v2235_v17 = vpack.c.bf16 %v1612_v14, %v1608_v9  ;;  %v1846_v18 = vadd.f32 %v1612_v14, %v1608_v9  ;;  %v1868_v19 = vmul.f32 %v1612_v14, %v1612_v14  ;;  %v1614_v20 = vadd.f32 %v1613_v16, %v3372_v27 }
 0x165   :  { %2236 = vst [vmem:[%s3465_s3] sm:$0xff] %v2235_v17   ;;  %v1883_v22 = vadd.f32 %v1868_v19, %v1867_v15  ;;  %v2275_v23 = vpack.c.bf16 %v1614_v20, %v1610_v12  ;;  %v1904_v24 = vadd.f32 %v1614_v20, %v1610_v12  ;;  %v1926_v25 = vmul.f32 %v1614_v20, %v1614_v20 }
 0x167   :  { %2276 = vst [vmem:[%s3466_s4] sm:$0xff] %v2275_v23   ;;  %v1941_v26 = vadd.f32 %v1926_v25, %v1925_v21 }
 0x178   :  { %v1617_v28 = vpop.f32.mrf.mxu0 }
 0x179   :  { %v1618_v29 = vadd.f32 %v1617_v28, %v3370_v6 }
 0x17a   :  { %v1619_v30 = vpop.f32.mrf.mxu0 }
 0x17b   :  { %v1847_v31 = vadd.f32 %v1846_v18, %v1618_v29  ;;  %v1869_v32 = vmul.f32 %v1618_v29, %v1618_v29  ;;  %v1620_v33 = vadd.f32 %v1619_v30, %v3372_v27 }
 0x17c   :  { %v1621_v34 = vpop.f32.mrf.mxu0 }
 0x17d   :  { %v1884_v35 = vadd.f32 %v1883_v22, %v1869_v32  ;;  %v1905_v36 = vadd.f32 %v1904_v24, %v1620_v33  ;;  %v1927_v37 = vmul.f32 %v1620_v33, %v1620_v33  ;;  %v1622_v38 = vadd.f32 %v1621_v34, %v3370_v6 }
 0x17e   :  { %v1623_v39 = vpop.f32.mrf.mxu0 }
 0x17f   :  { %v1942_v40 = vadd.f32 %v1941_v26, %v1927_v37  ;;  %v2240_v41 = vpack.c.bf16 %v1622_v38, %v1618_v29  ;;  %v1848_v42 = vadd.f32 %v1847_v31, %v1622_v38  ;;  %v1870_v43 = vmul.f32 %v1622_v38, %v1622_v38 }
 0x180   :  { %v1624_v44 = vadd.f32 %v1623_v39, %v3372_v27 }
 0x181   :  { %2312 = vst [vmem:[%s3465_s3 + $0x8] sm:$0xff] %v2240_v41   ;;  %v1885_v45 = vadd.f32 %v1884_v35, %v1870_v43 }
 0x182   :  { %v2280_v46 = vpack.c.bf16 %v1624_v44, %v1620_v33  ;;  %v1906_v47 = vadd.f32 %v1905_v36, %v1624_v44  ;;  %v1928_v48 = vmul.f32 %v1624_v44, %v1624_v44 }
 0x184   :  { %2319 = vst [vmem:[%s3466_s4 + $0x8] sm:$0xff] %v2280_v46   ;;  %v1943_v49 = vadd.f32 %v1942_v40, %v1928_v48 }
 0x1aa   :  { %v1627_v50 = vpop.f32.mrf.mxu0 }
 0x1ab   :  { %v1628_v51 = vadd.f32 %v1627_v50, %v3370_v6 }
 0x1ac   :  { %v1629_v52 = vpop.f32.mrf.mxu0 }
 0x1ad   :  { %v1849_v53 = vadd.f32 %v1848_v42, %v1628_v51  ;;  %v1871_v54 = vmul.f32 %v1628_v51, %v1628_v51  ;;  %v1630_v55 = vadd.f32 %v1629_v52, %v3372_v27 }
 0x1ae   :  { %v1631_v56 = vpop.f32.mrf.mxu0 }
 0x1af   :  { %v1647_v57 = vpop.f32.mrf.mxu1  ;;  %v1886_v58 = vadd.f32 %v1885_v45, %v1871_v54  ;;  %v1907_v59 = vadd.f32 %v1906_v47, %v1630_v55  ;;  %v1929_v60 = vmul.f32 %v1630_v55, %v1630_v55  ;;  %v1632_v61 = vadd.f32 %v1631_v56, %v3370_v6 }
 0x1b0   :  { %v1633_v62 = vpop.f32.mrf.mxu0  ;;  %v1648_v9 = vadd.f32 %v1647_v57, %v3370_v6 }
 0x1b1   :  { %v1649_v63 = vpop.f32.mrf.mxu1  ;;  %v1944_v0 = vadd.f32 %v1943_v49, %v1929_v60  ;;  %v2245_v8 = vpack.c.bf16 %v1632_v61, %v1628_v51  ;;  %v1850_v2 = vadd.f32 %v1849_v53, %v1632_v61  ;;  %v1872_v3 = vmul.f32 %v1632_v61, %v1632_v61 }
 0x1b2   :  { %v1634_v4 = vadd.f32 %v1633_v62, %v3372_v27  ;;  %v1650_v15 = vadd.f32 %v1649_v63, %v3372_v27  ;;  %v1875_v37 = vmul.f32 %v1648_v9, %v1648_v9 }
 0x1b3   :  { %v1651_v5 = vpop.f32.mrf.mxu1  ;;  %2313 = vst [vmem:[%s3465_s3 + $0x10] sm:$0xff] %v2245_v8   ;;  %v1887_v7 = vadd.f32 %v1886_v58, %v1872_v3 }
 0x1b4   :  { %v1652_v10 = vadd.f32 %v1651_v5, %v3370_v6  ;;  %v2285_v11 = vpack.c.bf16 %v1634_v4, %v1630_v55  ;;  %v1908_v12 = vadd.f32 %v1907_v59, %v1634_v4  ;;  %v1930_v13 = vmul.f32 %v1634_v4, %v1634_v4 }
 0x1b5   :  { %v1653_v14 = vpop.f32.mrf.mxu1  ;;  %v1933_v38 = vmul.f32 %v1650_v15, %v1650_v15 }
 0x1b6   :  { %v2255_v16 = vpack.c.bf16 %v1652_v10, %v1648_v9  ;;  %v1654_v17 = vadd.f32 %v1653_v14, %v3372_v27  ;;  %2320 = vst [vmem:[%s3466_s4 + $0x10] sm:$0xff] %v2285_v11   ;;  %v1945_v18 = vadd.f32 %v1944_v0, %v1930_v13  ;;  %v1876_v51 = vmul.f32 %v1652_v10, %v1652_v10 }
 0x1b8   :  { %2315 = vst [vmem:[%s3465_s3 + $0x20] sm:$0xff] %v2255_v16   ;;  %v2295_v19 = vpack.c.bf16 %v1654_v17, %v1650_v15  ;;  %v1934_v60 = vmul.f32 %v1654_v17, %v1654_v17 }
 0x1ba   :  { %2322 = vst [vmem:[%s3466_s4 + $0x20] sm:$0xff] %v2295_v19  }
 0x1e2   :  { %v1637_v20 = vpop.f32.mrf.mxu0 }
 0x1e3   :  { %v1638_v21 = vadd.f32 %v1637_v20, %v3370_v6 }
 0x1e4   :  { %v1639_v22 = vpop.f32.mrf.mxu0 }
 0x1e5   :  { %v1873_v23 = vmul.f32 %v1638_v21, %v1638_v21  ;;  %v1640_v24 = vadd.f32 %v1639_v22, %v3372_v27  ;;  %v1851_v28 = vadd.f32 %v1850_v2, %v1638_v21 }
 0x1e6   :  { %v1641_v25 = vpop.f32.mrf.mxu0 }
 0x1e7   :  { %v1657_v26 = vpop.f32.mrf.mxu1  ;;  %v1642_v29 = vadd.f32 %v1641_v25, %v3370_v6  ;;  %v1931_v30 = vmul.f32 %v1640_v24, %v1640_v24  ;;  %v1888_v33 = vadd.f32 %v1887_v7, %v1873_v23  ;;  %v1909_v39 = vadd.f32 %v1908_v12, %v1640_v24 }
 0x1e8   :  { %v1643_v31 = vpop.f32.mrf.mxu0  ;;  %v1658_v44 = vadd.f32 %v1657_v26, %v3370_v6 }
 0x1e9   :  { %v1659_v32 = vpop.f32.mrf.mxu1  ;;  %v2250_v34 = vpack.c.bf16 %v1642_v29, %v1638_v21  ;;  %v1852_v35 = vadd.f32 %v1851_v28, %v1642_v29  ;;  %v1874_v36 = vmul.f32 %v1642_v29, %v1642_v29  ;;  %v1644_v40 = vadd.f32 %v1643_v31, %v3372_v27 }
 0x1ea   :  { %v1946_v46 = vadd.f32 %v1945_v18, %v1931_v30  ;;  %v1660_v57 = vadd.f32 %v1659_v32, %v3372_v27  ;;  %v1877_v14 = vmul.f32 %v1658_v44, %v1658_v44 }
 0x1eb   :  { %v1661_v41 = vpop.f32.mrf.mxu1  ;;  %2314 = vst [vmem:[%s3465_s3 + $0x18] sm:$0xff] %v2250_v34   ;;  %v1853_v42 = vadd.f32 %v1852_v35, %v1648_v9  ;;  %v1889_v43 = vadd.f32 %v1888_v33, %v1874_v36  ;;  %v2290_v47 = vpack.c.bf16 %v1644_v40, %v1640_v24  ;;  %v1910_v48 = vadd.f32 %v1909_v39, %v1644_v40 }
 0x1ec   :  { %v1662_v45 = vadd.f32 %v1661_v41, %v3370_v6  ;;  %v1932_v49 = vmul.f32 %v1644_v40, %v1644_v40 }
 0x1ed   :  { %v1663_v50 = vpop.f32.mrf.mxu1  ;;  %v1890_v52 = vadd.f32 %v1889_v43, %v1875_v37  ;;  %v1854_v53 = vadd.f32 %v1853_v42, %v1652_v10  ;;  %2321 = vst [vmem:[%s3466_s4 + $0x18] sm:$0xff] %v2290_v47   ;;  %v1911_v55 = vadd.f32 %v1910_v48, %v1650_v15 }
 0x1ee   :  { %v2260_v54 = vpack.c.bf16 %v1662_v45, %v1658_v44  ;;  %v1947_v56 = vadd.f32 %v1946_v46, %v1932_v49  ;;  %v1664_v58 = vadd.f32 %v1663_v50, %v3372_v27  ;;  %v1878_v19 = vmul.f32 %v1662_v45, %v1662_v45 }
 0x1ef   :  { %v1891_v59 = vadd.f32 %v1890_v52, %v1876_v51  ;;  %v1912_v62 = vadd.f32 %v1911_v55, %v1654_v17  ;;  %v1855_v13 = vadd.f32 %v1854_v53, %v1658_v44  ;;  %v1935_v17 = vmul.f32 %v1660_v57, %v1660_v57 }
 0x1f0   :  { %2316 = vst [vmem:[%s3465_s3 + $0x28] sm:$0xff] %v2260_v54   ;;  %v1948_v61 = vadd.f32 %v1947_v56, %v1933_v38  ;;  %v2300_v63 = vpack.c.bf16 %v1664_v58, %v1660_v57  ;;  %v1936_v29 = vmul.f32 %v1664_v58, %v1664_v58 }
 0x1f1   :  { %v1892_v15 = vadd.f32 %v1891_v59, %v1877_v14  ;;  %v1913_v16 = vadd.f32 %v1912_v62, %v1660_v57  ;;  %v1856_v18 = vadd.f32 %v1855_v13, %v1662_v45 }
 0x1f2   :  { %v1949_v0 = vadd.f32 %v1948_v61, %v1934_v60  ;;  %2323 = vst [vmem:[%s3466_s4 + $0x28] sm:$0xff] %v2300_v63  }
 0x1f3   :  { %v1893_v23 = vadd.f32 %v1892_v15, %v1878_v19  ;;  %v1914_v28 = vadd.f32 %v1913_v16, %v1664_v58 }
 0x1f4   :  { %v1950_v21 = vadd.f32 %v1949_v0, %v1935_v17 }
 0x1f6   :  { %v1951_v36 = vadd.f32 %v1950_v21, %v1936_v29 }
 0x203   :  { %v1667_v8 = vpop.f32.mrf.mxu1 }
 0x204   :  { %v1668_v4 = vadd.f32 %v1667_v8, %v3370_v6 }
 0x205   :  { %v1669_v2 = vpop.f32.mrf.mxu1 }
 0x206   :  { %v1670_v10 = vadd.f32 %v1669_v2, %v3372_v27  ;;  %v1879_v20 = vmul.f32 %v1668_v4, %v1668_v4  ;;  %v1857_v24 = vadd.f32 %v1856_v18, %v1668_v4 }
 0x207   :  { %v1671_v3 = vpop.f32.mrf.mxu1 }
 0x208   :  { %v1672_v5 = vadd.f32 %v1671_v3, %v3370_v6  ;;  %v1937_v30 = vmul.f32 %v1670_v10, %v1670_v10  ;;  %v1894_v32 = vadd.f32 %v1893_v23, %v1879_v20  ;;  %v1915_v37 = vadd.f32 %v1914_v28, %v1670_v10 }
 0x209   :  { %v1673_v7 = vpop.f32.mrf.mxu1 }
 0x20a   :  { %v2265_v9 = vpack.c.bf16 %v1672_v5, %v1668_v4  ;;  %v1674_v11 = vadd.f32 %v1673_v7, %v3372_v27  ;;  %v1880_v25 = vmul.f32 %v1672_v5, %v1672_v5  ;;  %v1858_v33 = vadd.f32 %v1857_v24, %v1672_v5 }
 0x20b   :  { %v1952_v43 = vadd.f32 %v1951_v36, %v1937_v30 }
 0x20c   :  { %2317 = vst [vmem:[%s3465_s3 + $0x30] sm:$0xff] %v2265_v9   ;;  %v2305_v12 = vpack.c.bf16 %v1674_v11, %v1670_v10  ;;  %v1938_v38 = vmul.f32 %v1674_v11, %v1674_v11  ;;  %v1895_v40 = vadd.f32 %v1894_v32, %v1880_v25  ;;  %v1916_v44 = vadd.f32 %v1915_v37, %v1674_v11 }
 0x20e   :  { %2324 = vst [vmem:[%s3466_s4 + $0x30] sm:$0xff] %v2305_v12   ;;  %v1953_v51 = vadd.f32 %v1952_v43, %v1938_v38 }
 0x21e   :  { %v1677_v22 = vpop.f32.mrf.mxu1 }
 0x21f   :  { %v1678_v26 = vadd.f32 %v1677_v22, %v3370_v6 }
 0x220   :  { %v1679_v31 = vpop.f32.mrf.mxu1 }
 0x221   :  { %v1881_v34 = vmul.f32 %v1678_v26, %v1678_v26  ;;  %v1680_v35 = vadd.f32 %v1679_v31, %v3372_v27  ;;  %v1859_v41 = vadd.f32 %v1858_v33, %v1678_v26 }
 0x222   :  { %v1681_v39 = vpop.f32.mrf.mxu1 }
 0x223   :  { %v1682_v42 = vadd.f32 %v1681_v39, %v3370_v6  ;;  %v1939_v45 = vmul.f32 %v1680_v35, %v1680_v35  ;;  %v1896_v47 = vadd.f32 %v1895_v40, %v1881_v34  ;;  %v1917_v52 = vadd.f32 %v1916_v44, %v1680_v35 }
 0x224   :  { %v1683_v46 = vpop.f32.mrf.mxu1 }
 0x225   :  { %v2270_v48 = vpack.c.bf16 %v1682_v42, %v1678_v26  ;;  %v1860_v49 = vadd.f32 %v1859_v41, %v1682_v42  ;;  %v1882_v50 = vmul.f32 %v1682_v42, %v1682_v42  ;;  %v1684_v53 = vadd.f32 %v1683_v46, %v3372_v27 }
 0x226   :  { %v1954_v56 = vadd.f32 %v1953_v51, %v1939_v45 }
 0x227   :  { %2318 = vst [vmem:[%s3465_s3 + $0x38] sm:$0xff] %v2270_v48   ;;  %v1861_v54 = vrot.slane %v1860_v49, 4  ;;  %v1897_v55 = vadd.f32 %v1896_v47, %v1882_v50  ;;  %v2310_v6 = vpack.c.bf16 %v1684_v53, %v1680_v35  ;;  %v1918_v57 = vadd.f32 %v1917_v52, %v1684_v53 }
 0x228   :  { %v1940_v58 = vmul.f32 %v1684_v53, %v1684_v53 }
 0x229   :  { %v1862_v59 = vadd.f32 %v1861_v54, %v1860_v49  ;;  %v1898_v60 = vrot.slane %v1897_v55, 4  ;;  %2325 = vst [vmem:[%s3466_s4 + $0x38] sm:$0xff] %v2310_v6   ;;  %v1919_v61 = vrot.slane %v1918_v57, 4 }
 0x22a   :  { %v1955_v62 = vadd.f32 %v1954_v56, %v1940_v58 }
 0x22b   :  { %v1863_v63 = vrot.slane %v1862_v59, 2  ;;  %v1899_v27 = vadd.f32 %v1898_v60, %v1897_v55  ;;  %v1920_v0 = vadd.f32 %v1919_v61, %v1918_v57 }
 0x22c   :  { %v1956_v8 = vrot.slane %v1955_v62, 4 }
 0x22d   :  { %v1864_v2 = vadd.f32 %v1863_v63, %v1862_v59  ;;  %v1900_v3 = vrot.slane %v1899_v27, 2  ;;  %v1921_v4 = vrot.slane %v1920_v0, 2 }
 0x22e   :  { %v1957_v5 = vadd.f32 %v1956_v8, %v1955_v62 }
 0x22f   :  { %v1865_v7 = vrot.slane %v1864_v2, 1  ;;  %v1901_v9 = vadd.f32 %v1900_v3, %v1899_v27  ;;  %v1922_v10 = vadd.f32 %v1921_v4, %v1920_v0 }
 0x230   :  { %v1958_v11 = vrot.slane %v1957_v5, 2 }
 0x231   :  { %v1866_v12 = vadd.f32 %v1865_v7, %v1864_v2  ;;  %v1902_v13 = vrot.slane %v1901_v9, 1  ;;  %v1923_v14 = vrot.slane %v1922_v10, 1 }
 0x232   :  { %v1959_v15 = vadd.f32 %v1958_v11, %v1957_v5 }
 0x233   :  { %v1903_v16 = vadd.f32 %v1902_v13, %v1901_v9  ;;  %v1965_v17 = vsel %vm1964_vm14, %v1866_v12, 0.0  ;;  %v1924_v18 = vadd.f32 %v1923_v14, %v1922_v10 }
 0x234   :  { %v1960_v19 = vrot.slane %v1959_v15, 1 }
 0x235   :  { %v1967_v20 = vsel %vm1966_vm15, %v1903_v16, %v1965_v17 }
 0x236   :  { %v1961_v21 = vadd.f32 %v1960_v19, %v1959_v15  ;;  %v1969_v22 = vsel %vm1968_vm0, %v1924_v18, %v1967_v20 }
 0x238   :  { %v1971_v23 = vsel %vm1970_vm1, %v1961_v21, %v1969_v22 }
 0x239   :  { %1972 = vst [vmem:[%s3467_s5] sm:$0xff] %v1971_v23 }

// kernel: restnet_down_block.3
= control target key start
LH: loop header
LB: loop body
LE: loop exit
PB: predicated region body
PF: predicated region fallthrough
CT: control target
= control target key end

     0   :  { %v4732_v1 = vmov 0   ;;  %vm386_vm0 = vcmask 1043456   ;;  %vm387_vm1 = vsmask.f32 7938  ;;  %vm393_vm2 = vsmask.f32 256  ;;  %s6086_s3 = inlined_call_operand.vmem [shape: bf16[9,128,128], index: 3, kind: input, shape index: {}]   ;;  %s6087_s0 = inlined_call_operand.vmem [shape: bf16[2,8,8,128], index: 0, kind: input, shape index: {}]   ;;  %s6088_s1 = inlined_call_operand.vmem [shape: f32[1,128], index: 1, kind: input, shape index: {}]   ;;  %s6089_s2 = inlined_call_operand.vmem [shape: f32[1,128], index: 2, kind: input, shape index: {}]   ;;  %s6090_s4 = inlined_call_operand.vmem [shape: f32[1,128], index: 4, kind: input, shape index: {}]   ;;  %s6091_s5 = inlined_call_operand.vmem [shape: bf16[2,8,8,128], index: 5, kind: output, shape index: {0}]   ;;  %s6092_s6 = inlined_call_operand.vmem [shape: f32[1,8,128], index: 6, kind: output, shape index: {1}]  }
   0x1   :  { %v4634_v0 = vld [vmem:[%s6086_s3 + $0x38] sm:$0xff]   ;;  %27 = vst [vmem:[#allocation2] sm:$0xf] %v4732_v1  ;;  %29 = vst [vmem:[#allocation2 + $0x8] sm:$0xf] %v4732_v1  ;;  %v4636_v3 = vld [vmem:[%s6086_s3 + $0x30] sm:$0xff]  }
   0x2   :  { %28 = vst [vmem:[#allocation2 + $0x4] sm:$0xf] %v4732_v1  ;;  %30 = vst [vmem:[#allocation2 + $0xc] sm:$0xf] %v4732_v1  ;;  %v4635_v2 = vld [vmem:[%s6086_s3 + $0x78] sm:$0xff]   ;;  %4361 = vmatprep.subr.bf16.mxu1 %v4634_v0  ;;  %v4637_v4 = vld [vmem:[%s6086_s3 + $0x70] sm:$0xff]  }
   0x3   :  { %31 = vst [vmem:[#allocation2 + $0x10] sm:$0xf] %v4732_v1  ;;  %32 = vst [vmem:[#allocation2 + $0x14] sm:$0xf] %v4732_v1  ;;  %4362 = vmatpush3.bf16.msra.mxu1 %v4634_v0  ;;  %4329 = vmatprep.subr.bf16.mxu0 %v4635_v2  ;;  %v4638_v5 = vld [vmem:[%s6086_s3 + $0x28] sm:$0xff]   ;;  %v4640_v7 = vld [vmem:[%s6086_s3 + $0x20] sm:$0xff]  }
   0x4   :  { %33 = vst [vmem:[#allocation2 + $0x18] sm:$0xf] %v4732_v1  ;;  %34 = vst [vmem:[#allocation2 + $0x1c] sm:$0xf] %v4732_v1  ;;  %4330 = vmatpush3.bf16.msra.mxu0 %v4635_v2  ;;  %4363 = vmatprep.subr.bf16.mxu1 %v4636_v3  ;;  %v4639_v6 = vld [vmem:[%s6086_s3 + $0x68] sm:$0xff]   ;;  %v4641_v8 = vld [vmem:[%s6086_s3 + $0x60] sm:$0xff]  }
   0x5   :  { %35 = vst [vmem:[#allocation2 + $0x20] sm:$0xf] %v4732_v1  ;;  %36 = vst [vmem:[#allocation2 + $0x24] sm:$0xf] %v4732_v1  ;;  %4331 = vmatprep.subr.bf16.mxu0 %v4637_v4  ;;  %v4642_v9 = vld [vmem:[%s6086_s3 + $0x18] sm:$0xff]   ;;  %v4644_v11 = vld [vmem:[%s6086_s3 + $0x10] sm:$0xff]  }
   0x6   :  { %37 = vst [vmem:[#allocation2 + $0x28] sm:$0xf] %v4732_v1  ;;  %38 = vst [vmem:[#allocation2 + $0x2c] sm:$0xf] %v4732_v1  ;;  %v4643_v10 = vld [vmem:[%s6086_s3 + $0x58] sm:$0xff]   ;;  %v4100_v12 = vld [vmem:[%s6087_s0] sm:$0xff]  }
   0x7   :  { %39 = vst [vmem:[#allocation2 + $0x30] sm:$0xf] %v4732_v1  ;;  %40 = vst [vmem:[#allocation2 + $0x34] sm:$0xf] %v4732_v1  ;;  %4364 = vmatpush3.bf16.msra.mxu1 %v4636_v3  ;;  %v4807_v13 = vld [vmem:[%s6088_s1] ss:$0 sm:$0xff]  ;;  %v4101_v15 = vunpack.c.l.bf16 %v4100_v12  ;;  %v4102_v16 = vunpack.c.h.bf16 %v4100_v12 }
   0x8   :  { %41 = vst [vmem:[#allocation2 + $0x38] sm:$0xf] %v4732_v1  ;;  %42 = vst [vmem:[#allocation2 + $0x3c] sm:$0xf] %v4732_v1  ;;  %4332 = vmatpush3.bf16.msra.mxu0 %v4637_v4  ;;  %4365 = vmatprep.subr.bf16.mxu1 %v4638_v5  ;;  %v4645_v14 = vld [vmem:[%s6086_s3 + $0x50] sm:$0xff]   ;;  %v4171_v21 = vld [vmem:[%s6087_s0 + $0x8] sm:$0xff]  }
   0x9   :  { %43 = vst [vmem:[#allocation2 + $0x40] sm:$0xf] %v4732_v1  ;;  %44 = vst [vmem:[#allocation2 + $0x44] sm:$0xf] %v4732_v1  ;;  %4333 = vmatprep.subr.bf16.mxu0 %v4639_v6  ;;  %v4812_v17 = vld [vmem:[#allocation2] sm:$0xf]  ;;  %v106_v22 = vmul.f32 %v4101_v15, %v4807_v13  ;;  %v4105_v23 = vunpack.c.l.bf16 %v4171_v21  ;;  %v107_v24 = vmul.f32 %v4102_v16, %v4807_v13  ;;  %v4106_v25 = vunpack.c.h.bf16 %v4171_v21 }
   0xa   :  { %45 = vst [vmem:[#allocation2 + $0x48] sm:$0xf] %v4732_v1  ;;  %46 = vst [vmem:[#allocation2 + $0x4c] sm:$0xf] %v4732_v1  ;;  %v4817_v18 = vld [vmem:[%s6089_s2] ss:$0 sm:$0xff] }
   0xb   :  { %47 = vst [vmem:[#allocation2 + $0x50] sm:$0xf] %v4732_v1  ;;  %48 = vst [vmem:[#allocation2 + $0x54] sm:$0xf] %v4732_v1  ;;  %4366 = vmatpush3.bf16.msra.mxu1 %v4638_v5  ;;  %v540_v19 = vshrl.u32 %v4812_v17, 16  ;;  %v543_v20 = vshll.u32 %v4812_v17, 16  ;;  %v129_v31 = vadd.f32 %v4817_v18, %v106_v22  ;;  %v108_v32 = vmul.f32 %v4105_v23, %v4807_v13 }
   0xc   :  { %49 = vst [vmem:[#allocation2 + $0x58] sm:$0xf] %v4732_v1  ;;  %50 = vst [vmem:[#allocation2 + $0x5c] sm:$0xf] %v4732_v1  ;;  %4334 = vmatpush3.bf16.msra.mxu0 %v4639_v6  ;;  %4367 = vmatprep.subr.bf16.mxu1 %v4640_v7  ;;  %v4646_v26 = vld [vmem:[%s6086_s3 + $0x8] sm:$0xff]   ;;  %v130_v33 = vadd.f32 %v4817_v18, %v107_v24  ;;  %v4648_v36 = vld [vmem:[%s6086_s3] sm:$0xff]   ;;  %v109_v40 = vmul.f32 %v4106_v25, %v4807_v13 }
   0xd   :  { %51 = vst [vmem:[#allocation2 + $0x60] sm:$0xf] %v4732_v1  ;;  %52 = vst [vmem:[#allocation2 + $0x64] sm:$0xf] %v4732_v1  ;;  %4335 = vmatprep.subr.bf16.mxu0 %v4641_v8  ;;  %v542_v27 = vrot.slane %v540_v19, 4  ;;  %v545_v28 = vrot.slane %v543_v20, 5  ;;  %v131_v38 = vadd.f32 %v4817_v18, %v108_v32 }
   0xe   :  { %53 = vst [vmem:[#allocation2 + $0x68] sm:$0xf] %v4732_v1  ;;  %54 = vst [vmem:[#allocation2 + $0x6c] sm:$0xf] %v4732_v1  ;;  %v4829_v29 = vld [vmem:[#allocation2 + $0x4] sm:$0x1]  ;;  %v132_v45 = vadd.f32 %v4817_v18, %v109_v40 }
   0xf   :  { %55 = vst [vmem:[#allocation2 + $0x70] sm:$0xf] %v4732_v1  ;;  %56 = vst [vmem:[#allocation2 + $0x74] sm:$0xf] %v4732_v1  ;;  %4368 = vmatpush3.bf16.msra.mxu1 %v4640_v7  ;;  %v4647_v30 = vld [vmem:[%s6086_s3 + $0x48] sm:$0xff]   ;;  %v546_v34 = vor.u32 %v545_v28, %v542_v27  ;;  %v549_v35 = vshll.u32 %v4829_v29, 16 }
  0x10   :  { %57 = vst [vmem:[#allocation2 + $0x78] sm:$0xf] %v4732_v1  ;;  %58 = vst [vmem:[#allocation2 + $0x7c] sm:$0xf] %v4732_v1  ;;  %4336 = vmatpush3.bf16.msra.mxu0 %v4641_v8  ;;  %4369 = vmatprep.subr.bf16.mxu1 %v4642_v9  ;;  %v145_v37 = vmax.f32 %v129_v31, 0.0  ;;  %v146_v39 = vmax.f32 %v130_v33, 0.0 }
  0x11   :  { %59 = vst [vmem:[#allocation2 + $0x80] sm:$0xf] %v4732_v1  ;;  %60 = vst [vmem:[#allocation2 + $0x84] sm:$0xf] %v4732_v1  ;;  %4337 = vmatprep.subr.bf16.mxu0 %v4643_v10  ;;  %vm536_vm3 = vsmask.f32 3328 }
  0x12   :  { %61 = vst [vmem:[#allocation2 + $0x88] sm:$0xf] %v4732_v1  ;;  %62 = vst [vmem:[#allocation2 + $0x8c] sm:$0xf] %v4732_v1  ;;  %v4649_v41 = vld [vmem:[%s6086_s3 + $0x40] sm:$0xff]   ;;  %v4067_v42 = vpack.c.bf16 %v145_v37, %v145_v37  ;;  %v147_v43 = vmax.f32 %v131_v38, 0.0  ;;  %v4068_v44 = vpack.c.bf16 %v146_v39, %v146_v39 }
  0x13   :  { %63 = vst [vmem:[#allocation2 + $0x90] sm:$0xf] %v4732_v1  ;;  %64 = vst [vmem:[#allocation2 + $0x94] sm:$0xf] %v4732_v1  ;;  %4370 = vmatpush3.bf16.msra.mxu1 %v4642_v9  ;;  %vm392_vm4 = vcmask 1040384   ;;  %v4847_v46 = vrot.slane %v546_v34, 4 }
  0x14   :  { %65 = vst [vmem:[#allocation2 + $0x98] sm:$0xf] %v4732_v1  ;;  %66 = vst [vmem:[#allocation2 + $0x9c] sm:$0xf] %v4732_v1  ;;  %4338 = vmatpush3.bf16.msra.mxu0 %v4643_v10  ;;  %4371 = vmatprep.subr.bf16.mxu1 %v4644_v11  ;;  %vm537_vm5 = vsmask.f32 7440  ;;  %v4069_v51 = vpack.c.bf16 %v147_v43, %v147_v43 }
  0x15   :  { %4339 = vmatprep.subr.bf16.mxu0 %v4645_v14  ;;  %v4849_v47 = vrot.slane %v549_v35, 5  ;;  %v4172_v48 = vld [vmem:[%s6087_s0 + $0x10] sm:$0xff]   ;;  %v226_v49 = vshrl.u32 %v4067_v42, 16  ;;  %v229_v50 = vshll.u32 %v4067_v42, 16  ;;  %v234_v52 = vshrl.u32 %v4068_v44, 16  ;;  %v4857_v53 = vld [vmem:[%s6087_s0 + $0x18] sm:$0xff]   ;;  %vm4871_vm6 = vmand %vm386_vm0, %vm387_vm1 }
  0x16   :  { %v389_v54 = vld [vmem:[#allocation2 + $0x8] sm:$0xf]  ;;  %v237_v55 = vshll.u32 %v4068_v44, 16  ;;  %v398_v56 = vld [vmem:[#allocation2 + $0x10] sm:$0xf]  ;;  %v4862_v57 = vld [vmem:[%s6086_s3 + $0xf8] sm:$0xff]   ;;  %v4109_v59 = vunpack.c.l.bf16 %v4172_v48  ;;  %v4110_v61 = vunpack.c.h.bf16 %v4172_v48  ;;  %v4113_v8 = vunpack.c.l.bf16 %v4857_v53 }
  0x17   :  { %4372 = vmatpush3.bf16.msra.mxu1 %v4644_v11  ;;  %v4867_v58 = vld [vmem:[%s6086_s3 + $0xb8] sm:$0xff]   ;;  %v148_v60 = vmax.f32 %v132_v45, 0.0  ;;  %v228_v62 = vrot.slane %v226_v49, 7  ;;  %v236_v0 = vrot.slane %v234_v52, 7  ;;  %v242_v1 = vshrl.u32 %v4069_v51, 16  ;;  %vm4877_vm7 = vmand %vm392_vm4, %vm393_vm2  ;;  %v4911_v38 = vld [vmem:[%s6087_s0 + $0x20] sm:$0xff]  }
  0x18   :  { %4340 = vmatpush3.bf16.msra.mxu0 %v4645_v14  ;;  %4373 = vmatprep.subr.bf16.mxu1 %v4646_v26  ;;  %v245_v2 = vshll.u32 %v4069_v51, 16  ;;  %v395_v4 = vld [vmem:[#allocation2 + $0xc] sm:$0x1]  ;;  %v401_v5 = vld [vmem:[#allocation2 + $0x14] sm:$0x1]  ;;  %v110_v6 = vmul.f32 %v4109_v59, %v4807_v13  ;;  %v111_v9 = vmul.f32 %v4110_v61, %v4807_v13  ;;  %vm4887_vm8 = vmor %vm536_vm3, %vm537_vm5  ;;  %v1203_v34 = vrot.slane %v4829_v29, 5 }
  0x19   :  { %4341 = vmatprep.subr.bf16.mxu0 %v4647_v30  ;;  %v4070_v7 = vpack.c.bf16 %v148_v60, %v148_v60  ;;  %v231_v10 = vor.u32 %v229_v50, %v228_v62  ;;  %v232_v11 = vrot.slane %v228_v62, 4  ;;  %v239_v12 = vor.u32 %v237_v55, %v236_v0  ;;  %v404_v16 = vld [vmem:[#allocation2 + $0x18] sm:$0xf]  ;;  %v407_v27 = vld [vmem:[#allocation2 + $0x1c] sm:$0x1]  ;;  %v4930_v55 = vld [vmem:[%s6087_s0 + $0x28] sm:$0xff]  }
  0x1a   :  { %v240_v14 = vrot.slane %v236_v0, 4  ;;  %v244_v15 = vrot.slane %v242_v1, 7  ;;  %v133_v20 = vadd.f32 %v4817_v18, %v110_v6  ;;  %v552_v33 = vsel %vm4887_vm8, %v4847_v46, %v4849_v47  ;;  %v410_v35 = vld [vmem:[#allocation2 + $0x20] sm:$0xf]  ;;  %v413_v43 = vld [vmem:[#allocation2 + $0x24] sm:$0x1] }
  0x1b   :  { %4374 = vmatpush3.bf16.msra.mxu1 %v4646_v26  ;;  %v250_v21 = vshrl.u32 %v4070_v7, 16  ;;  %v253_v22 = vshll.u32 %v4070_v7, 16  ;;  %v390_v23 = vsel %vm4871_vm6, %v231_v10, %v389_v54  ;;  %v399_v24 = vsel %vm4871_vm6, %v239_v12, %v398_v56  ;;  %v4919_v44 = vld [vmem:[#allocation2 + $0x50] sm:$0xf]  ;;  %v5170_v29 = vld [vmem:[%s6086_s3 + $0x138] sm:$0xff]  }
  0x1c   :  { %4342 = vmatpush3.bf16.msra.mxu0 %v4647_v30  ;;  %4375 = vmatprep.subr.bf16.mxu1 %v4648_v36  ;;  %v396_v25 = vsel %vm4877_vm7, %v232_v11, %v395_v4  ;;  %v402_v26 = vsel %vm4877_vm7, %v240_v14, %v401_v5  ;;  %391 = vst [vmem:[#allocation2 + $0x8] sm:$0xf] %v390_v23  ;;  %v248_v30 = vrot.slane %v244_v15, 4  ;;  %400 = vst [vmem:[#allocation2 + $0x10] sm:$0xf] %v399_v24  ;;  %v4655_v46 = vld [vmem:[%s6086_s3 + $0xb0] sm:$0xff]  }
  0x1d   :  { %4343 = vmatprep.subr.bf16.mxu0 %v4649_v41  ;;  %v247_v28 = vor.u32 %v245_v2, %v244_v15  ;;  %397 = vst [vmem:[#allocation2 + $0xc] sm:$0x1] %v396_v25  ;;  %403 = vst [vmem:[#allocation2 + $0x14] sm:$0x1] %v402_v26  ;;  %v149_v31 = vmax.f32 %v133_v20, 0.0  ;;  %v252_v32 = vrot.slane %v250_v21, 7  ;;  %v134_v37 = vadd.f32 %v4817_v18, %v111_v9 }
  0x1e   :  { %v408_v40 = vsel %vm4877_vm7, %v248_v30, %v407_v27  ;;  %v4117_v50 = vunpack.c.l.bf16 %v4911_v38  ;;  %v652_v54 = vshrl.u32 %v4919_v44, 16  ;;  %v4114_v56 = vunpack.c.h.bf16 %v4857_v53  ;;  %v4688_v63 = vld [vmem:[%s6086_s3 + $0x158] sm:$0xff]  }
  0x1f   :  { %4376 = vmatpush3.bf16.msra.mxu1 %v4648_v36  ;;  %v112_v36 = vmul.f32 %v4113_v8, %v4807_v13  ;;  %v405_v39 = vsel %vm4871_vm6, %v247_v28, %v404_v16  ;;  %v255_v42 = vor.u32 %v253_v22, %v252_v32  ;;  %409 = vst [vmem:[#allocation2 + $0x1c] sm:$0x1] %v408_v40  ;;  %v256_v45 = vrot.slane %v252_v32, 4 }
  0x20   :  { %4344 = vmatpush3.bf16.msra.mxu0 %v4649_v41  ;;  %4425 = vmatprep.subr.bf16.mxu1 %v4862_v57  ;;  %v4917_v41 = vpack.c.bf16 %v149_v31, %v149_v31  ;;  %406 = vst [vmem:[#allocation2 + $0x18] sm:$0xf] %v405_v39  ;;  %v150_v49 = vmax.f32 %v134_v37, 0.0  ;;  %v114_v62 = vmul.f32 %v4117_v50, %v4807_v13  ;;  %v4941_v2 = vrot.slane %v652_v54, 4  ;;  %v4654_v37 = vld [vmem:[%s6086_s3 + $0xf0] sm:$0xff]  }
  0x21   :  { %4393 = vmatprep.subr.bf16.mxu0 %v4867_v58  ;;  %v135_v48 = vadd.f32 %v4817_v18, %v112_v36  ;;  %v411_v52 = vsel %vm4871_vm6, %v255_v42, %v410_v35  ;;  %v414_v61 = vsel %vm4877_vm7, %v256_v45, %v413_v43  ;;  %v655_v4 = vshll.u32 %v4919_v44, 16 }
  0x22   :  { %v258_v51 = vshrl.u32 %v4917_v41, 16  ;;  %v261_v59 = vshll.u32 %v4917_v41, 16  ;;  %412 = vst [vmem:[#allocation2 + $0x20] sm:$0xf] %v411_v52  ;;  %v4939_v1 = vpack.c.bf16 %v150_v49, %v150_v49  ;;  %415 = vst [vmem:[#allocation2 + $0x24] sm:$0x1] %v414_v61  ;;  %v4949_v9 = vadd.f32 %v4817_v18, %v114_v62 }
  0x23   :  { %v151_v60 = vmax.f32 %v135_v48, 0.0  ;;  %v489_v5 = vld [vmem:[#allocation2 + $0x8] sm:$0xf]  ;;  %v490_v6 = vld [vmem:[#allocation2 + $0x10] sm:$0xf]  ;;  %v4118_v10 = vunpack.c.h.bf16 %v4911_v38  ;;  %v4121_v11 = vunpack.c.l.bf16 %v4930_v55  ;;  %v4122_v24 = vunpack.c.h.bf16 %v4930_v55  ;;  %v4665_v55 = vld [vmem:[%s6086_s3 + $0x98] sm:$0xff]  }
  0x24   :  { %v4937_v0 = vrot.slane %v258_v51, 7  ;;  %v4944_v7 = vld [vmem:[#allocation2 + $0xc] sm:$0x1]  ;;  %v554_v12 = vshrl.u32 %v489_v5, 16  ;;  %v557_v14 = vshll.u32 %v489_v5, 16  ;;  %v3762_v15 = vcombine.low %v4812_v17, %v489_v5  ;;  %v5039_v38 = vld [vmem:[%s6087_s0 + $0x30] sm:$0xff]  }
  0x25   :  { %v4946_v8 = vpack.c.bf16 %v151_v60, %v151_v60  ;;  %v568_v16 = vshrl.u32 %v490_v6, 16  ;;  %v4954_v20 = vld [vmem:[#allocation2 + $0x14] sm:$0x1]  ;;  %v571_v21 = vshll.u32 %v490_v6, 16  ;;  %v563_v22 = vshll.u32 %v4944_v7, 16 }
  0x26   :  { %v577_v23 = vshll.u32 %v4954_v20, 16  ;;  %v556_v25 = vrot.slane %v554_v12, 4  ;;  %v559_v26 = vrot.slane %v557_v14, 5  ;;  %4377 = vmatprep.mubr.bf16.mxu1 %v3762_v15  ;;  %v1207_v30 = vrot.slane %v4944_v7, 5  ;;  %v4960_v36 = vld [vmem:[#allocation2 + $0x1c] sm:$0x1] }
  0x27   :  { %v491_v27 = vld [vmem:[#allocation2 + $0x18] sm:$0xf]  ;;  %v570_v28 = vrot.slane %v568_v16, 4  ;;  %v573_v31 = vrot.slane %v571_v21, 5  ;;  %v565_v40 = vrot.slane %v563_v22, 5  ;;  %v591_v41 = vshll.u32 %v4960_v36, 16 }
  0x28   :  { %v582_v32 = vshrl.u32 %v491_v27, 16  ;;  %v585_v17 = vshll.u32 %v491_v27, 16  ;;  %v3763_v35 = vcombine.low %v490_v6, %v491_v27  ;;  %v560_v39 = vor.u32 %v559_v26, %v556_v25  ;;  %v416_v51 = vld [vmem:[#allocation2 + $0x28] sm:$0xf]  ;;  %v419_v15 = vld [vmem:[#allocation2 + $0x2c] sm:$0x1] }
  0x29   :  { %v1211_v42 = vrot.slane %v4954_v20, 5  ;;  %v4967_v43 = vld [vmem:[#allocation2 + $0x20] sm:$0xf]  ;;  %v574_v49 = vor.u32 %v573_v31, %v570_v28  ;;  %v579_v50 = vrot.slane %v577_v23, 5  ;;  %v593_v54 = vrot.slane %v591_v41, 5  ;;  %v4658_v14 = vld [vmem:[%s6086_s3 + $0xe8] sm:$0xff]  }
  0x2a   :  { %v584_v45 = vrot.slane %v582_v32, 4  ;;  %v587_v48 = vrot.slane %v585_v17, 5  ;;  %4378 = vmatmul.mubr.bf16.vlgmr.msra.gmra.mxu1 %v3763_v35  ;;  %v561_v52 = vrot.slane %v560_v39, 4  ;;  %v263_v60 = vor.u32 %v261_v59, %v4937_v0  ;;  %v4983_v21 = vld [vmem:[#allocation2 + $0x24] sm:$0x1] }
  0x2b   :  { %4426 = vmatpush3.bf16.msra.mxu1 %v4862_v57  ;;  %v264_v61 = vrot.slane %v4937_v0, 4  ;;  %v575_v62 = vrot.slane %v574_v49, 4  ;;  %v596_v6 = vshrl.u32 %v4967_v43, 16  ;;  %v599_v12 = vshll.u32 %v4967_v43, 16  ;;  %v422_v27 = vld [vmem:[#allocation2 + $0x30] sm:$0xf] }
  0x2c   :  { %v588_v5 = vor.u32 %v587_v48, %v584_v45  ;;  %4427 = vmatprep.subr.bf16.mxu1 %v4654_v37  ;;  %v566_v57 = vsel %vm4887_vm8, %v561_v52, %v565_v40  ;;  %v417_v59 = vsel %vm4871_vm6, %v263_v60, %v416_v51  ;;  %v266_v0 = vshrl.u32 %v4939_v1, 16  ;;  %v425_v35 = vld [vmem:[#allocation2 + $0x34] sm:$0x1]  ;;  %v428_v48 = vld [vmem:[#allocation2 + $0x38] sm:$0xf] }
  0x2d   :  { %v269_v16 = vshll.u32 %v4939_v1, 16  ;;  %v3746_v22 = vcombine.low %v552_v33, %v566_v57  ;;  %v580_v23 = vsel %vm4887_vm8, %v575_v62, %v579_v50  ;;  %418 = vst [vmem:[#allocation2 + $0x28] sm:$0xf] %v417_v59  ;;  %v598_v26 = vrot.slane %v596_v6, 4  ;;  %v431_v49 = vld [vmem:[#allocation2 + $0x3c] sm:$0x1] }
  0x2e   :  { %v589_v25 = vrot.slane %v588_v5, 4  ;;  %v601_v28 = vrot.slane %v599_v12, 5  ;;  %v268_v31 = vrot.slane %v266_v0, 7  ;;  %v274_v1 = vshrl.u32 %v4946_v8, 16  ;;  %v4659_v62 = vld [vmem:[%s6086_s3 + $0xa8] sm:$0xff]   ;;  %v4664_v57 = vld [vmem:[%s6086_s3 + $0xd8] sm:$0xff]  }
  0x2f   :  { %4428 = vmatpush3.bf16.msra.mxu1 %v4654_v37  ;;  %v277_v32 = vshll.u32 %v4946_v8, 16  ;;  %4345 = vmatprep.mubr.bf16.mxu0 %v3746_v22  ;;  %v420_v47 = vsel %vm4877_vm7, %v264_v61, %v419_v15  ;;  %v605_v33 = vshll.u32 %v4983_v21, 16  ;;  %v4660_v37 = vld [vmem:[%s6086_s3 + $0xe0] sm:$0xff]   ;;  %v153_v8 = vmax.f32 %v4949_v9, 0.0  ;;  %v5017_v6 = vld [vmem:[#allocation2 + $0x54] sm:$0x1] }
  0x30   :  { %v594_v17 = vsel %vm4887_vm8, %v589_v25, %v593_v54  ;;  %4429 = vmatprep.subr.bf16.mxu1 %v4658_v14  ;;  %v271_v40 = vor.u32 %v269_v16, %v268_v31  ;;  %v272_v41 = vrot.slane %v268_v31, 4  ;;  %v276_v45 = vrot.slane %v274_v1, 7  ;;  %421 = vst [vmem:[#allocation2 + $0x2c] sm:$0x1] %v420_v47 }
  0x31   :  { %v3747_v39 = vcombine.low %v580_v23, %v594_v17  ;;  %v602_v50 = vor.u32 %v601_v28, %v598_v26  ;;  %v5006_v51 = vrot.slane %v605_v33, 5  ;;  %v4075_v52 = vpack.c.bf16 %v153_v8, %v153_v8  ;;  %v4666_v33 = vld [vmem:[%s6086_s3 + $0xd0] sm:$0xff]   ;;  %v4661_v8 = vld [vmem:[%s6086_s3 + $0xa0] sm:$0xff]  }
  0x32   :  { %v657_v54 = vrot.slane %v655_v4, 5  ;;  %v279_v60 = vor.u32 %v277_v32, %v276_v45  ;;  %v280_v61 = vrot.slane %v276_v45, 4  ;;  %v423_v9 = vsel %vm4871_vm6, %v271_v40, %v422_v27  ;;  %v440_v27 = vld [vmem:[#allocation2 + $0x58] sm:$0xf] }
  0x33   :  { %4346 = vmatmul.mubr.bf16.vlgmr.msra.gmra.mxu0 %v3747_v39  ;;  %4430 = vmatpush3.bf16.msra.mxu1 %v4658_v14  ;;  %v426_v5 = vsel %vm4877_vm7, %v272_v41, %v425_v35  ;;  %424 = vst [vmem:[#allocation2 + $0x30] sm:$0xf] %v423_v9  ;;  %v5020_v4 = vrot.slane %v602_v50, 4  ;;  %v290_v12 = vshrl.u32 %v4075_v52, 16  ;;  %v293_v15 = vshll.u32 %v4075_v52, 16 }
  0x34   :  { %4394 = vmatpush3.bf16.msra.mxu0 %v4867_v58  ;;  %427 = vst [vmem:[#allocation2 + $0x34] sm:$0x1] %v426_v5  ;;  %4431 = vmatprep.subr.bf16.mxu1 %v4660_v37  ;;  %v115_v14 = vmul.f32 %v4118_v10, %v4807_v13  ;;  %v493_v59 = vld [vmem:[#allocation2 + $0x28] sm:$0xf]  ;;  %v429_v58 = vsel %vm4871_vm6, %v279_v60, %v428_v48  ;;  %v661_v47 = vshll.u32 %v5017_v6, 16  ;;  %v4125_v35 = vunpack.c.l.bf16 %v5039_v38 }
  0x35   :  { %4395 = vmatprep.subr.bf16.mxu0 %v4655_v46  ;;  %v432_v0 = vsel %vm4877_vm7, %v280_v61, %v431_v49  ;;  %v116_v16 = vmul.f32 %v4121_v11, %v4807_v13  ;;  %v658_v22 = vor.u32 %v657_v54, %v4941_v2  ;;  %v610_v10 = vshrl.u32 %v493_v59, 16  ;;  %430 = vst [vmem:[#allocation2 + $0x38] sm:$0xf] %v429_v58  ;;  %v443_v11 = vld [vmem:[#allocation2 + $0x5c] sm:$0x1] }
  0x36   :  { %v613_v23 = vshll.u32 %v493_v59, 16  ;;  %v3764_v25 = vcombine.low %v4967_v43, %v493_v59  ;;  %v608_v26 = vsel %vm4887_vm8, %v5020_v4, %v5006_v51  ;;  %433 = vst [vmem:[#allocation2 + $0x3c] sm:$0x1] %v432_v0  ;;  %v292_v2 = vrot.slane %v290_v12, 7  ;;  %v449_v51 = vld [vmem:[#allocation2 + $0x64] sm:$0x1] }
  0x37   :  { %4432 = vmatpush3.bf16.msra.mxu1 %v4660_v37  ;;  %v138_v28 = vadd.f32 %v4817_v18, %v115_v14  ;;  %v139_v31 = vadd.f32 %v4817_v18, %v116_v16  ;;  %v5048_v1 = vrot.slane %v658_v22, 4  ;;  %v612_v32 = vrot.slane %v610_v10, 4  ;;  %v5050_v43 = vld [vmem:[#allocation2 + $0x2c] sm:$0x1] }
  0x38   :  { %v615_v17 = vrot.slane %v613_v23, 5  ;;  %4381 = vmatprep.mubr.bf16.mxu1 %v3764_v25  ;;  %4396 = vmatpush3.bf16.msra.mxu0 %v4655_v46  ;;  %v619_v37 = vshll.u32 %v5050_v43, 16  ;;  %v295_v39 = vor.u32 %v293_v15, %v292_v2  ;;  %v296_v40 = vrot.slane %v292_v2, 4  ;;  %v455_v4 = vld [vmem:[#allocation2 + $0x6c] sm:$0x1] }
  0x39   :  { %4397 = vmatprep.subr.bf16.mxu0 %v4659_v62  ;;  %v154_v46 = vmax.f32 %v138_v28, 0.0  ;;  %4433 = vmatprep.subr.bf16.mxu1 %v4664_v57  ;;  %v155_v45 = vmax.f32 %v139_v31, 0.0  ;;  %v5061_v48 = vrot.slane %v661_v47, 5  ;;  %v117_v49 = vmul.f32 %v4122_v24, %v4807_v13  ;;  %v4670_v24 = vld [vmem:[%s6086_s3 + $0xc8] sm:$0xff]   ;;  %v5091_v31 = vld [vmem:[%s6086_s3 + $0xc0] sm:$0xff]  }
  0x3a   :  { %v616_v41 = vor.u32 %v615_v17, %v612_v32  ;;  %v494_v50 = vld [vmem:[#allocation2 + $0x30] sm:$0xf]  ;;  %v621_v52 = vrot.slane %v619_v37, 5  ;;  %v441_v60 = vsel %vm4871_vm6, %v295_v39, %v440_v27  ;;  %v444_v9 = vsel %vm4877_vm7, %v296_v40, %v443_v11  ;;  %v446_v39 = vld [vmem:[#allocation2 + $0x60] sm:$0xf] }
  0x3b   :  { %v5066_v54 = vld [vmem:[#allocation2 + $0x34] sm:$0x1]  ;;  %v4076_v61 = vpack.c.bf16 %v154_v46, %v154_v46  ;;  %4434 = vmatpush3.bf16.msra.mxu1 %v4664_v57  ;;  %v624_v5 = vshrl.u32 %v494_v50, 16  ;;  %v627_v12 = vshll.u32 %v494_v50, 16  ;;  %442 = vst [vmem:[#allocation2 + $0x58] sm:$0xf] %v441_v60  ;;  %v4077_v58 = vpack.c.bf16 %v155_v45, %v155_v45 }
  0x3c   :  { %v617_v15 = vrot.slane %v616_v41, 4  ;;  %v633_v14 = vshll.u32 %v5066_v54, 16  ;;  %4398 = vmatpush3.bf16.msra.mxu0 %v4659_v62  ;;  %445 = vst [vmem:[#allocation2 + $0x5c] sm:$0x1] %v444_v9  ;;  %4435 = vmatprep.subr.bf16.mxu1 %v4666_v33  ;;  %v495_v57 = vld [vmem:[#allocation2 + $0x38] sm:$0xf]  ;;  %v664_v62 = vsel %vm4887_vm8, %v5048_v1, %v5061_v48 }
  0x3d   :  { %v5079_v59 = vld [vmem:[#allocation2 + $0x3c] sm:$0x1]  ;;  %4399 = vmatprep.subr.bf16.mxu0 %v4661_v8  ;;  %v298_v0 = vshrl.u32 %v4076_v61, 16  ;;  %v301_v16 = vshll.u32 %v4076_v61, 16  ;;  %vm1198_vm9 = vcmask 1042432   ;;  %vm1199_vm10 = vcmask 1046532  }
  0x3e   :  { %v626_v22 = vrot.slane %v624_v5, 4  ;;  %v629_v10 = vrot.slane %v627_v12, 5  ;;  %v638_v23 = vshrl.u32 %v495_v57, 16  ;;  %v641_v25 = vshll.u32 %v495_v57, 16  ;;  %v4667_v45 = vld [vmem:[%s6086_s3 + $0x90] sm:$0xff]   ;;  %vm5140_vm11 = vmor %vm1198_vm9, %vm1199_vm10 }
  0x3f   :  { %v3765_v27 = vcombine.low %v494_v50, %v495_v57  ;;  %v622_v11 = vsel %vm4887_vm8, %v617_v15, %v621_v52  ;;  %v635_v2 = vrot.slane %v633_v14, 5  ;;  %v647_v28 = vshll.u32 %v5079_v59, 16  ;;  %4436 = vmatpush3.bf16.msra.mxu1 %v4666_v33  ;;  %v452_v60 = vld [vmem:[#allocation2 + $0x68] sm:$0xf] }
  0x40   :  { %v640_v32 = vrot.slane %v638_v23, 4  ;;  %v643_v17 = vrot.slane %v641_v25, 5  ;;  %v3748_v47 = vcombine.low %v608_v26, %v622_v11  ;;  %v630_v37 = vor.u32 %v629_v10, %v626_v22  ;;  %4400 = vmatpush3.bf16.msra.mxu0 %v4661_v8  ;;  %4437 = vmatprep.subr.bf16.mxu1 %v4670_v24  ;;  %v1151_v23 = vld [vmem:[#allocation2 + $0x8] sm:$0xe]  ;;  %v1152_v25 = vld [vmem:[#allocation2 + $0x10] sm:$0xe] }
  0x41   :  { %4382 = vmatmul.mubr.bf16.gmra.mxu1 %v3765_v27  ;;  %v649_v40 = vrot.slane %v647_v28, 5  ;;  %v300_v33 = vrot.slane %v298_v0, 7  ;;  %v306_v46 = vshrl.u32 %v4077_v58, 16  ;;  %v309_v41 = vshll.u32 %v4077_v58, 16  ;;  %4401 = vmatprep.subr.bf16.mxu0 %v4665_v55  ;;  %v5128_v28 = vld [vmem:[%s6086_s3 + $0x178] sm:$0xff]  }
  0x42   :  { %4349 = vmatprep.mubr.bf16.mxu0 %v3748_v47  ;;  %v631_v50 = vrot.slane %v630_v37, 4  ;;  %v644_v52 = vor.u32 %v643_v17, %v640_v32  ;;  %v118_v26 = vmul.f32 %v4125_v35, %v4807_v13  ;;  %v140_v8 = vadd.f32 %v4817_v18, %v117_v49  ;;  %v497_v61 = vld [vmem:[#allocation2 + $0x58] sm:$0xf]  ;;  %v1150_v49 = vld [vmem:[#allocation2] sm:$0xe] }
  0x43   :  { %v303_v9 = vor.u32 %v301_v16, %v300_v33  ;;  %v304_v5 = vrot.slane %v300_v33, 4  ;;  %v308_v12 = vrot.slane %v306_v46, 7  ;;  %v5105_v15 = vld [vmem:[#allocation2 + $0x5c] sm:$0x1]  ;;  %v4126_v14 = vunpack.c.h.bf16 %v5039_v38  ;;  %4438 = vmatpush3.bf16.msra.mxu1 %v4670_v24 }
  0x44   :  { %v636_v57 = vsel %vm4887_vm8, %v631_v50, %v635_v2  ;;  %v645_v58 = vrot.slane %v644_v52, 4  ;;  %v666_v0 = vshrl.u32 %v497_v61, 16  ;;  %v669_v22 = vshll.u32 %v497_v61, 16  ;;  %4402 = vmatpush3.bf16.msra.mxu0 %v4665_v55  ;;  %v5113_v35 = vld [vmem:[%s6087_s0 + $0x38] sm:$0xff]   ;;  %4439 = vmatprep.subr.bf16.mxu1 %v5091_v31  ;;  %v4671_v55 = vld [vmem:[%s6086_s3 + $0x88] sm:$0xff]  }
  0x45   :  { %v3766_v16 = vcombine.low %v4919_v44, %v497_v61  ;;  %v311_v10 = vor.u32 %v309_v41, %v308_v12  ;;  %v312_v38 = vrot.slane %v308_v12, 4  ;;  %v447_v24 = vsel %vm4871_vm6, %v303_v9, %v446_v39  ;;  %4403 = vmatprep.subr.bf16.mxu0 %v4667_v45 }
  0x46   :  { %v650_v27 = vsel %vm4887_vm8, %v645_v58, %v649_v40  ;;  %v668_v11 = vrot.slane %v666_v0, 4  ;;  %v671_v2 = vrot.slane %v669_v22, 5  ;;  %448 = vst [vmem:[#allocation2 + $0x60] sm:$0xf] %v447_v24  ;;  %v675_v44 = vshll.u32 %v5105_v15, 16 }
  0x47   :  { %v3749_v32 = vcombine.low %v636_v57, %v650_v27  ;;  %4385 = vmatprep.mubr.bf16.mxu1 %v3766_v16  ;;  %v453_v17 = vsel %vm4871_vm6, %v311_v10, %v452_v60  ;;  %v450_v47 = vsel %vm4877_vm7, %v304_v5, %v449_v51  ;;  %v456_v37 = vsel %vm4877_vm7, %v312_v38, %v455_v4  ;;  %v4673_v60 = vld [vmem:[%s6086_s3 + $0x80] sm:$0xff]  }
  0x48   :  { %454 = vst [vmem:[#allocation2 + $0x68] sm:$0xf] %v453_v17  ;;  %v672_v39 = vor.u32 %v671_v2, %v668_v11  ;;  %v677_v40 = vrot.slane %v675_v44, 5  ;;  %451 = vst [vmem:[#allocation2 + $0x64] sm:$0x1] %v450_v47  ;;  %v141_v33 = vadd.f32 %v4817_v18, %v118_v26  ;;  %v156_v46 = vmax.f32 %v140_v8, 0.0  ;;  %4404 = vmatpush3.bf16.msra.mxu0 %v4667_v45 }
  0x49   :  { %457 = vst [vmem:[#allocation2 + $0x6c] sm:$0x1] %v456_v37  ;;  %4440 = vmatpush3.bf16.msra.mxu1 %v5091_v31  ;;  %4350 = vmatmul.mubr.bf16.gmra.mxu0 %v3749_v32  ;;  %v4129_v50 = vunpack.c.l.bf16 %v5113_v35  ;;  %v119_v52 = vmul.f32 %v4126_v14, %v4807_v13  ;;  %v3778_v51 = vrot.slane %v1150_v49, 9  ;;  %v3779_v45 = vrot.slane %v1151_v23, 9  ;;  %v458_v17 = vld [vmem:[#allocation2 + $0x70] sm:$0xf] }
  0x4a   :  { %4405 = vmatprep.subr.bf16.mxu0 %v4671_v55  ;;  %v673_v4 = vrot.slane %v672_v39, 4  ;;  %v157_v31 = vmax.f32 %v141_v33, 0.0  ;;  %v4078_v26 = vpack.c.bf16 %v156_v46, %v156_v46  ;;  %4489 = vmatprep.subr.bf16.mxu1 %v5128_v28  ;;  %v3780_v8 = vrot.slane %v1152_v25, 9  ;;  %v461_v39 = vld [vmem:[#allocation2 + $0x74] sm:$0x1] }
  0x4b   :  { %v120_v61 = vmul.f32 %v4129_v50, %v4807_v13  ;;  %v142_v9 = vadd.f32 %v4817_v18, %v119_v52  ;;  %v5156_v5 = vsel %vm5140_vm11, %v3778_v51, %v1203_v34  ;;  %v5162_v12 = vsel %vm5140_vm11, %v3779_v45, %v1207_v30  ;;  %v1153_v46 = vld [vmem:[#allocation2 + $0x18] sm:$0xe] }
  0x4c   :  { %v1215_v14 = vrot.slane %v4960_v36, 5  ;;  %v678_v57 = vsel %vm4887_vm8, %v673_v4, %v677_v40  ;;  %v4079_v58 = vpack.c.bf16 %v157_v31, %v157_v31  ;;  %v314_v0 = vshrl.u32 %v4078_v26, 16  ;;  %4406 = vmatpush3.bf16.msra.mxu0 %v4671_v55 }
  0x4d   :  { %v498_v34 = vld [vmem:[#allocation2 + $0x60] sm:$0xf]  ;;  %v3750_v7 = vcombine.low %v664_v62, %v678_v57  ;;  %v317_v30 = vshll.u32 %v4078_v26, 16  ;;  %v158_v22 = vmax.f32 %v142_v9, 0.0  ;;  %4407 = vmatprep.subr.bf16.mxu0 %v4673_v60  ;;  %v3810_v49 = vcombine.low %v5156_v5, %v5162_v12 }
  0x4e   :  { %v680_v16 = vshrl.u32 %v498_v34, 16  ;;  %v683_v10 = vshll.u32 %v498_v34, 16  ;;  %v316_v38 = vrot.slane %v314_v0, 7  ;;  %v322_v24 = vshrl.u32 %v4079_v58, 16 }
  0x4f   :  { %v499_v55 = vld [vmem:[#allocation2 + $0x68] sm:$0xf]  ;;  %4353 = vmatprep.mubr.bf16.mxu0 %v3750_v7  ;;  %v5179_v23 = vld [vmem:[#allocation2 + $0x64] sm:$0x1]  ;;  %v143_v27 = vadd.f32 %v4817_v18, %v120_v61  ;;  %v4080_v1 = vpack.c.bf16 %v158_v22, %v158_v22  ;;  %v5188_v48 = vsel %vm5140_vm11, %v3780_v8, %v1211_v42  ;;  %v113_v62 = vmul.f32 %v4114_v56, %v4807_v13  ;;  %v464_v13 = vld [vmem:[#allocation2 + $0x78] sm:$0xf] }
  0x50   :  { %v5181_v25 = vld [vmem:[#allocation2 + $0x6c] sm:$0x1]  ;;  %v682_v11 = vrot.slane %v680_v16, 4  ;;  %v685_v2 = vrot.slane %v683_v10, 5  ;;  %v694_v44 = vshrl.u32 %v499_v55, 16  ;;  %v697_v32 = vshll.u32 %v499_v55, 16  ;;  %4408 = vmatpush3.bf16.msra.mxu0 %v4673_v60 }
  0x51   :  { %v3767_v47 = vcombine.low %v498_v34, %v499_v55  ;;  %v689_v18 = vshll.u32 %v5179_v23, 16  ;;  %v703_v37 = vshll.u32 %v5181_v25, 16  ;;  %v319_v20 = vor.u32 %v317_v30, %v316_v38  ;;  %4457 = vmatprep.subr.bf16.mxu0 %v5170_v29  ;;  %v467_v56 = vld [vmem:[#allocation2 + $0x7c] sm:$0x1]  ;;  %v470_v16 = vld [vmem:[#allocation2 + $0x80] sm:$0xf] }
  0x52   :  { %v696_v42 = vrot.slane %v694_v44, 4  ;;  %v699_v40 = vrot.slane %v697_v32, 5  ;;  %v686_v33 = vor.u32 %v685_v2, %v682_v11  ;;  %v320_v53 = vrot.slane %v316_v38, 4  ;;  %v5211_v11 = vld [vmem:[%s6089_s2] ss:$0 sm:$0xff] }
  0x53   :  { %4386 = vmatmul.mubr.bf16.gmra.mxu1 %v3767_v47  ;;  %v691_v50 = vrot.slane %v689_v18, 5  ;;  %v705_v52 = vrot.slane %v703_v37, 5  ;;  %v324_v60 = vrot.slane %v322_v24, 7  ;;  %v325_v51 = vshll.u32 %v4079_v58, 16  ;;  %v5220_v18 = vld [vmem:[#allocation2 + $0x20] sm:$0xe] }
  0x54   :  { %v687_v45 = vrot.slane %v686_v33, 4  ;;  %v700_v4 = vor.u32 %v699_v40, %v696_v42  ;;  %v459_v31 = vsel %vm4871_vm6, %v319_v20, %v458_v17  ;;  %v159_v26 = vmax.f32 %v143_v27, 0.0  ;;  %v476_v20 = vld [vmem:[#allocation2 + $0x88] sm:$0xf]  ;;  %v479_v33 = vld [vmem:[#allocation2 + $0x8c] sm:$0x1] }
  0x55   :  { %v327_v8 = vor.u32 %v325_v51, %v324_v60  ;;  %v328_v61 = vrot.slane %v324_v60, 4  ;;  %460 = vst [vmem:[#allocation2 + $0x70] sm:$0xf] %v459_v31  ;;  %v330_v9 = vshrl.u32 %v4080_v1, 16  ;;  %v333_v57 = vshll.u32 %v4080_v1, 16 }
  0x56   :  { %v692_v0 = vsel %vm4887_vm8, %v687_v45, %v691_v50  ;;  %v701_v34 = vrot.slane %v700_v4, 4  ;;  %v4081_v7 = vpack.c.bf16 %v159_v26, %v159_v26  ;;  %v462_v30 = vsel %vm4877_vm7, %v320_v53, %v461_v39  ;;  %v473_v1 = vld [vmem:[#allocation2 + $0x84] sm:$0x1]  ;;  %v5224_v40 = vld [vmem:[#allocation2 + $0x28] sm:$0xe] }
  0x57   :  { %v465_v58 = vsel %vm4871_vm6, %v327_v8, %v464_v13  ;;  %v332_v22 = vrot.slane %v330_v9, 7  ;;  %463 = vst [vmem:[#allocation2 + $0x74] sm:$0x1] %v462_v30  ;;  %v468_v10 = vsel %vm4877_vm7, %v328_v61, %v467_v56  ;;  %v3781_v38 = vrot.slane %v1153_v46, 9 }
  0x58   :  { %v706_v24 = vsel %vm4887_vm8, %v701_v34, %v705_v52  ;;  %466 = vst [vmem:[#allocation2 + $0x78] sm:$0xf] %v465_v58  ;;  %v338_v55 = vshrl.u32 %v4081_v7, 16  ;;  %v341_v27 = vshll.u32 %v4081_v7, 16  ;;  %469 = vst [vmem:[#allocation2 + $0x7c] sm:$0x1] %v468_v10  ;;  %v136_v2 = vadd.f32 %v5211_v11, %v113_v62 }
  0x59   :  { %v3751_v44 = vcombine.low %v692_v0, %v706_v24  ;;  %v335_v32 = vor.u32 %v333_v57, %v332_v22  ;;  %v336_v17 = vrot.slane %v332_v22, 4  ;;  %v5218_v47 = vsel %vm5140_vm11, %v3781_v38, %v1215_v14  ;;  %v434_v22 = vld [vmem:[#allocation2 + $0x40] sm:$0xf]  ;;  %v5246_v24 = vld [vmem:[#allocation2 + $0x30] sm:$0xe] }
  0x5a   :  { %v340_v37 = vrot.slane %v338_v55, 7  ;;  %v3811_v39 = vcombine.low %v5188_v48, %v5218_v47  ;;  %v152_v42 = vmax.f32 %v136_v2, 0.0  ;;  %v4130_v14 = vunpack.c.h.bf16 %v5113_v35  ;;  %v4731_v55 = vld [vmem:[%s6088_s1] ss:$0 sm:$0xff] }
  0x5b   :  { %4354 = vmatmul.mubr.bf16.gmra.mxu0 %v3751_v44  ;;  %v471_v62 = vsel %vm4871_vm6, %v335_v32, %v470_v16  ;;  %v474_v36 = vsel %vm4877_vm7, %v336_v17, %v473_v1  ;;  %v3782_v50 = vrot.slane %v5220_v18, 9  ;;  %v1219_v51 = vrot.slane %v4983_v21, 5 }
  0x5c   :  { %v500_v53 = vld [vmem:[#allocation2 + $0x70] sm:$0xf]  ;;  %v343_v13 = vor.u32 %v341_v27, %v340_v37  ;;  %v344_v56 = vrot.slane %v340_v37, 4  ;;  %472 = vst [vmem:[#allocation2 + $0x80] sm:$0xf] %v471_v62  ;;  %v4074_v46 = vpack.c.bf16 %v152_v42, %v152_v42  ;;  %v3783_v45 = vrot.slane %v5224_v40, 9 }
  0x5d   :  { %475 = vst [vmem:[#allocation2 + $0x84] sm:$0x1] %v474_v36  ;;  %v708_v52 = vshrl.u32 %v500_v53, 16  ;;  %v711_v60 = vshll.u32 %v500_v53, 16  ;;  %v121_v27 = vmul.f32 %v4731_v55, %v4130_v14  ;;  %v1223_v32 = vrot.slane %v5050_v43, 5 }
  0x5e   :  { %v477_v4 = vsel %vm4871_vm6, %v343_v13, %v476_v20  ;;  %v5236_v31 = vld [vmem:[#allocation2 + $0x74] sm:$0x1]  ;;  %v480_v35 = vsel %vm4877_vm7, %v344_v56, %v479_v33  ;;  %v282_v26 = vshrl.u32 %v4074_v46, 16  ;;  %v285_v8 = vshll.u32 %v4074_v46, 16  ;;  %v4674_v56 = vld [vmem:[#allocation2 + $0x8] ss:$8 sps:$4 sm:$0xff]  }
  0x5f   :  { %v501_v61 = vld [vmem:[#allocation2 + $0x78] sm:$0xf]  ;;  %v710_v9 = vrot.slane %v708_v52, 4  ;;  %v713_v57 = vrot.slane %v711_v60, 5  ;;  %478 = vst [vmem:[#allocation2 + $0x88] sm:$0xf] %v477_v4  ;;  %v144_v4 = vadd.f32 %v5211_v11, %v121_v27  ;;  %v5291_v21 = vsel %vm5140_vm11, %v3783_v45, %v1223_v32 }
  0x60   :  { %v5240_v0 = vld [vmem:[#allocation2 + $0x7c] sm:$0x1]  ;;  %481 = vst [vmem:[#allocation2 + $0x8c] sm:$0x1] %v480_v35  ;;  %v722_v34 = vshrl.u32 %v501_v61, 16  ;;  %v725_v7 = vshll.u32 %v501_v61, 16  ;;  %v3768_v30 = vcombine.low %v500_v53, %v501_v61 }
  0x61   :  { %v717_v58 = vshll.u32 %v5236_v31, 16  ;;  %v714_v16 = vor.u32 %v713_v57, %v710_v9  ;;  %v731_v10 = vshll.u32 %v5240_v0, 16  ;;  %v5244_v38 = vrot.slane %v282_v26, 7  ;;  %v1157_v14 = vld [vmem:[#allocation2 + $0x38] sm:$0xe] }
  0x62   :  { %v724_v1 = vrot.slane %v722_v34, 4  ;;  %v727_v2 = vrot.slane %v725_v7, 5  ;;  %4389 = vmatprep.mubr.bf16.mxu1 %v3768_v30  ;;  %v3784_v52 = vrot.slane %v5246_v24, 9  ;;  %v1227_v43 = vrot.slane %v5066_v54, 5  ;;  %v1158_v60 = vld [vmem:[#allocation2 + $0x50] sm:$0xe] }
  0x63   :  { %v719_v44 = vrot.slane %v717_v58, 5  ;;  %v502_v17 = vld [vmem:[#allocation2 + $0x80] sm:$0xf]  ;;  %v715_v37 = vrot.slane %v714_v16, 4  ;;  %v733_v20 = vrot.slane %v731_v10, 5  ;;  %v287_v62 = vor.u32 %v285_v8, %v5244_v38 }
  0x64   :  { %v5252_v42 = vld [vmem:[#allocation2 + $0x84] sm:$0x1]  ;;  %v736_v36 = vshrl.u32 %v502_v17, 16  ;;  %v739_v33 = vshll.u32 %v502_v17, 16  ;;  %v728_v53 = vor.u32 %v727_v2, %v724_v1  ;;  %v1159_v57 = vld [vmem:[#allocation2 + $0x58] sm:$0xe]  ;;  %v5295_v18 = vsel %vm5140_vm11, %v3784_v52, %v1227_v43 }
  0x65   :  { %v745_v13 = vshll.u32 %v5252_v42, 16  ;;  %v435_v46 = vsel %vm4871_vm6, %v287_v62, %v434_v22  ;;  %v720_v61 = vsel %vm4887_vm8, %v715_v37, %v719_v44  ;;  %v288_v22 = vrot.slane %v5244_v38, 4  ;;  %v1160_v24 = vld [vmem:[#allocation2 + $0x60] sm:$0xe]  ;;  %v1161_v44 = vld [vmem:[#allocation2 + $0x68] sm:$0xe] }
  0x66   :  { %v503_v35 = vld [vmem:[#allocation2 + $0x88] sm:$0xf]  ;;  %v738_v26 = vrot.slane %v736_v36, 4  ;;  %v741_v8 = vrot.slane %v739_v33, 5  ;;  %v729_v9 = vrot.slane %v728_v53, 4  ;;  %v3785_v2 = vrot.slane %v1157_v14, 9 }
  0x67   :  { %436 = vst [vmem:[#allocation2 + $0x40] sm:$0xf] %v435_v46  ;;  %v750_v34 = vshrl.u32 %v503_v35, 16  ;;  %v753_v7 = vshll.u32 %v503_v35, 16  ;;  %v3769_v30 = vcombine.low %v502_v17, %v503_v35  ;;  %v5263_v58 = vld [vmem:[#allocation2 + $0x8c] sm:$0x1] }
  0x68   :  { %v734_v54 = vsel %vm4887_vm8, %v729_v9, %v733_v20  ;;  %v742_v11 = vor.u32 %v741_v8, %v738_v26  ;;  %v747_v16 = vrot.slane %v745_v13, 5  ;;  %v759_v10 = vshll.u32 %v5263_v58, 16  ;;  %v4675_v20 = vld [vmem:[#allocation2 + $0x18] ss:$8 sps:$4 sm:$0xff]  }
  0x69   :  { %v752_v55 = vrot.slane %v750_v34, 4  ;;  %v755_v27 = vrot.slane %v753_v7, 5  ;;  %4390 = vmatmul.mubr.bf16.gmra.mxu1 %v3769_v30  ;;  %v3752_v1 = vcombine.low %v720_v61, %v734_v54  ;;  %v1231_v62 = vrot.slane %v5079_v59, 5  ;;  %v5282_v59 = vld [vmem:[#allocation2 + $0x70] sm:$0xe]  ;;  %v4682_v34 = vld [vmem:[%s6086_s3 + $0x168] sm:$0xff]  }
  0x6a   :  { %v743_v37 = vrot.slane %v742_v11, 4  ;;  %v761_v17 = vrot.slane %v759_v10, 5  ;;  %4441 = vmatprep.mubr.bf16.mxu1 %v4674_v56  ;;  %v3786_v36 = vrot.slane %v1158_v60, 9  ;;  %v1235_v53 = vrot.slane %v5017_v6, 5  ;;  %v5284_v14 = vld [vmem:[#allocation2 + $0x78] sm:$0xe] }
  0x6b   :  { %4357 = vmatprep.mubr.bf16.mxu0 %v3752_v1  ;;  %v756_v33 = vor.u32 %v755_v27, %v752_v55  ;;  %v3787_v13 = vrot.slane %v1159_v57, 9  ;;  %v1239_v46 = vrot.slane %v5105_v15, 5  ;;  %v5280_v56 = vsel %vm5140_vm11, %v3782_v50, %v1219_v51  ;;  %v4680_v61 = vld [vmem:[#allocation2 + $0x28] ss:$8 sps:$4 sm:$0xff]   ;;  %v1164_v9 = vld [vmem:[#allocation2 + $0x80] sm:$0xe] }
  0x6c   :  { %v748_v35 = vsel %vm4887_vm8, %v743_v37, %v747_v16  ;;  %v3788_v6 = vrot.slane %v1160_v24, 9  ;;  %v1243_v26 = vrot.slane %v5179_v23, 5  ;;  %v3789_v15 = vrot.slane %v1161_v44, 9  ;;  %v4678_v23 = vld [vmem:[%s6086_s3 + $0x170] sm:$0xff]   ;;  %v1165_v57 = vld [vmem:[#allocation2 + $0x88] sm:$0xe] }
  0x6d   :  { %v757_v60 = vrot.slane %v756_v33, 4  ;;  %v1247_v50 = vrot.slane %v5181_v25, 5  ;;  %v160_v51 = vmax.f32 %v144_v4, 0.0  ;;  %v5305_v40 = vsel %vm5140_vm11, %v3785_v2, %v1231_v62  ;;  %v5332_v16 = vld [vmem:[#allocation2 + $0x14] sm:$0x1] }
  0x6e   :  { %v5309_v45 = vsel %vm5140_vm11, %v3786_v36, %v1235_v53  ;;  %v5313_v25 = vsel %vm5140_vm11, %v3787_v13, %v1239_v46  ;;  %v3790_v43 = vrot.slane %v5282_v59, 9  ;;  %v1251_v4 = vrot.slane %v5236_v31, 5  ;;  %v5330_v31 = vld [vmem:[#allocation2 + $0xc] sm:$0x1]  ;;  %v2183_v27 = vld [vmem:[#allocation2 + $0x8] sm:$0xe] }
  0x6f   :  { %v762_v8 = vsel %vm4887_vm8, %v757_v60, %v761_v17  ;;  %v4082_v52 = vpack.c.bf16 %v160_v51, %v160_v51  ;;  %v5322_v7 = vsel %vm5140_vm11, %v3788_v6, %v1243_v26  ;;  %v5326_v30 = vsel %vm5140_vm11, %v3789_v15, %v1247_v50  ;;  %v5337_v1 = vld [vmem:[#allocation2 + $0x10] sm:$0xe]  ;;  %v5347_v62 = vld [vmem:[#allocation2 + $0x1c] sm:$0x1]  ;;  %v5349_v36 = vld [vmem:[#allocation2 + $0x18] sm:$0xe] }
  0x70   :  { %v3753_v32 = vcombine.low %v748_v35, %v762_v8  ;;  %v3791_v54 = vrot.slane %v5284_v14, 9  ;;  %v1255_v11 = vrot.slane %v5240_v0, 5  ;;  %v3812_v10 = vcombine.low %v5280_v56, %v5291_v21  ;;  %v4681_v0 = vld [vmem:[#allocation2 + $0x38] ss:$8 sps:$4 sm:$0xff]   ;;  %v482_v44 = vld [vmem:[#allocation2 + $0x90] sm:$0xf] }
  0x71   :  { %4442 = vmatmul.mubr.bf16.vlgmr.msra.gmra.mxu1 %v4675_v20  ;;  %v346_v24 = vshrl.u32 %v4082_v52, 16  ;;  %v349_v55 = vshll.u32 %v4082_v52, 16  ;;  %v3813_v2 = vcombine.low %v5295_v18, %v5305_v40  ;;  %v3792_v37 = vrot.slane %v1164_v9, 9  ;;  %v5356_v20 = vld [vmem:[#allocation2 + $0x20] sm:$0xe]  ;;  %v4679_v56 = vld [vmem:[%s6086_s3 + $0x130] sm:$0xff]  }
  0x72   :  { %4358 = vmatmul.mubr.bf16.gmra.mxu0 %v3753_v32  ;;  %4490 = vmatpush3.bf16.msra.mxu1 %v5128_v28  ;;  %v3814_v28 = vcombine.low %v5309_v45, %v5313_v25  ;;  %v1259_v17 = vrot.slane %v5252_v42, 5  ;;  %v3815_v5 = vcombine.low %v5322_v7, %v5326_v30  ;;  %v1263_v33 = vrot.slane %v5263_v58, 5  ;;  %v5361_v35 = vld [vmem:[#allocation2 + $0x24] sm:$0x1]  ;;  %v1717_v26 = vld [vmem:[#allocation2 + $0x8] sm:$0xf] }
  0x73   :  { %4409 = vmatprep.mubr.bf16.mxu0 %v3810_v49  ;;  %4491 = vmatprep.subr.bf16.mxu1 %v4678_v23  ;;  %v5353_v12 = vrot.slane %v346_v24, 7  ;;  %v3793_v49 = vrot.slane %v1165_v57, 9  ;;  %v3890_v53 = vrot.slane %v2183_v27, 9  ;;  %v2233_v13 = vrot.slane %v5330_v31, 5  ;;  %v4684_v58 = vld [vmem:[%s6086_s3 + $0x160] sm:$0xff]   ;;  %v4695_v7 = vld [vmem:[%s6086_s3 + $0x108] sm:$0xff]  }
  0x74   :  { %4445 = vmatprep.mubr.bf16.mxu1 %v4680_v61  ;;  %v3891_v42 = vrot.slane %v5337_v1, 9  ;;  %v2237_v46 = vrot.slane %v5332_v16, 5  ;;  %v5372_v14 = vsel %vm5140_vm11, %v3790_v43, %v1251_v4  ;;  %v3892_v60 = vrot.slane %v5349_v36, 9  ;;  %v4686_v15 = vld [vmem:[#allocation2 + $0x58] ss:$8 sps:$4 sm:$0xff]  }
  0x75   :  { %v351_v59 = vor.u32 %v349_v55, %v5353_v12  ;;  %v2241_v6 = vrot.slane %v5347_v62, 5  ;;  %v5378_v21 = vsel %vm5140_vm11, %v3791_v54, %v1255_v11  ;;  %v5382_v50 = vsel %vm5140_vm11, %v3792_v37, %v1259_v17  ;;  %v1719_v8 = vld [vmem:[#allocation2 + $0x10] sm:$0xf]  ;;  %v1721_v4 = vld [vmem:[#allocation2 + $0x18] sm:$0xf]  ;;  %v4683_v37 = vld [vmem:[%s6086_s3 + $0x128] sm:$0xff]  }
  0x76   :  { %4492 = vmatpush3.bf16.msra.mxu1 %v4678_v23  ;;  %v3893_v51 = vrot.slane %v5356_v20, 9  ;;  %v1750_v23 = vshrl.u32 %v1717_v26, 16  ;;  %v5389_v32 = vsel %vm5140_vm11, %v3793_v49, %v1263_v33  ;;  %v1753_v52 = vshll.u32 %v1717_v26, 16  ;;  %v1723_v24 = vld [vmem:[#allocation2 + $0x20] sm:$0xf]  ;;  %v4690_v26 = vld [vmem:[%s6086_s3 + $0x150] sm:$0xff]  }
  0x77   :  { %4493 = vmatprep.subr.bf16.mxu1 %v4682_v34  ;;  %v483_v61 = vsel %vm4871_vm6, %v351_v59, %v482_v44  ;;  %v1759_v43 = vshll.u32 %v5330_v31, 16  ;;  %v352_v9 = vrot.slane %v5353_v12, 4  ;;  %v1764_v54 = vshrl.u32 %v1719_v8, 16  ;;  %v4687_v44 = vld [vmem:[#allocation2 + $0x68] ss:$8 sps:$4 sm:$0xff]   ;;  %v5415_v59 = vld [vmem:[%s6086_s3 + $0x120] sm:$0xff]  }
  0x78   :  { %484 = vst [vmem:[#allocation2 + $0x90] sm:$0xf] %v483_v61  ;;  %v1752_v57 = vrot.slane %v1750_v23, 4  ;;  %v1767_v11 = vshll.u32 %v1719_v8, 16  ;;  %v5401_v31 = vsel %vm5140_vm11, %v3890_v53, %v2233_v13  ;;  %v2245_v55 = vrot.slane %v5361_v35, 5 }
  0x79   :  { %4446 = vmatmul.mubr.bf16.gmra.mxu1 %v4681_v0  ;;  %v1755_v27 = vrot.slane %v1753_v52, 5  ;;  %v1773_v0 = vshll.u32 %v5332_v16, 16  ;;  %v1766_v48 = vrot.slane %v1764_v54, 4  ;;  %v5409_v49 = vrot.slane %v1759_v43, 5  ;;  %v5431_v54 = vld [vmem:[#allocation2 + $0x34] sm:$0x1] }
  0x7a   :  { %4410 = vmatmul.mubr.bf16.vlgmr.msra.gmra.mxu0 %v3811_v39  ;;  %4494 = vmatpush3.bf16.msra.mxu1 %v4682_v34  ;;  %v1769_v47 = vrot.slane %v1767_v11, 5  ;;  %v1778_v39 = vshrl.u32 %v1721_v4, 16  ;;  %v1781_v34 = vshll.u32 %v1721_v4, 16  ;;  %v1787_v33 = vshll.u32 %v5347_v62, 16  ;;  %v2187_v11 = vld [vmem:[#allocation2 + $0x28] sm:$0xe] }
  0x7b   :  { %4458 = vmatpush3.bf16.msra.mxu0 %v5170_v29  ;;  %4413 = vmatprep.mubr.bf16.mxu0 %v3812_v10  ;;  %v1756_v17 = vor.u32 %v1755_v27, %v1752_v57  ;;  %v1792_v20 = vshrl.u32 %v1723_v24, 16  ;;  %v1795_v13 = vshll.u32 %v1723_v24, 16  ;;  %v1775_v23 = vrot.slane %v1773_v0, 5  ;;  %v437_v24 = vld [vmem:[#allocation2 + $0x44] sm:$0x1] }
  0x7c   :  { %4459 = vmatprep.subr.bf16.mxu0 %v4679_v56  ;;  %4495 = vmatprep.subr.bf16.mxu1 %v4684_v58  ;;  %v1770_v29 = vor.u32 %v1769_v47, %v1766_v48  ;;  %v1780_v10 = vrot.slane %v1778_v39, 4  ;;  %v1783_v53 = vrot.slane %v1781_v34, 5  ;;  %v1801_v52 = vshll.u32 %v5361_v35, 16  ;;  %v4692_v35 = vld [vmem:[#allocation2 + $0x78] ss:$8 sps:$4 sm:$0xff]  }
  0x7d   :  { %4449 = vmatprep.mubr.bf16.mxu1 %v4686_v15  ;;  %v1757_v8 = vrot.slane %v1756_v17, 4  ;;  %v1794_v61 = vrot.slane %v1792_v20, 4  ;;  %v5421_v15 = vld [vmem:[#allocation2 + $0x2c] sm:$0x1]  ;;  %v1797_v57 = vrot.slane %v1795_v13, 5  ;;  %v5439_v16 = vsel %vm5140_vm11, %v3892_v60, %v2241_v6  ;;  %v4696_v20 = vld [vmem:[%s6086_s3 + $0x140] sm:$0xff]  }
  0x7e   :  { %4496 = vmatpush3.bf16.msra.mxu1 %v4684_v58  ;;  %v5429_v58 = vsel %vm5140_vm11, %v3891_v42, %v2237_v46  ;;  %v1771_v43 = vrot.slane %v1770_v29, 4  ;;  %v1784_v4 = vor.u32 %v1783_v53, %v1780_v10  ;;  %v5443_v1 = vsel %vm5140_vm11, %v3893_v51, %v2245_v55  ;;  %v2188_v6 = vld [vmem:[#allocation2 + $0x30] sm:$0xe]  ;;  %v4689_v55 = vld [vmem:[%s6086_s3 + $0x118] sm:$0xff]  }
  0x7f   :  { %4460 = vmatpush3.bf16.msra.mxu0 %v4679_v56  ;;  %4497 = vmatprep.subr.bf16.mxu1 %v4688_v63  ;;  %v5445_v42 = vrot.slane %v1787_v33, 5  ;;  %v3894_v46 = vrot.slane %v2187_v11, 9  ;;  %v5450_v56 = vld [vmem:[%s6086_s3 + $0x148] sm:$0xff]   ;;  %v1762_v62 = vsel %vm4887_vm8, %v1757_v8, %v5409_v49  ;;  %v1798_v60 = vor.u32 %v1797_v57, %v1794_v61  ;;  %v5471_v47 = vld [vmem:[#allocation2 + $0x3c] sm:$0x1] }
  0x80   :  { %4461 = vmatprep.subr.bf16.mxu0 %v4683_v37  ;;  %v5455_v36 = vrot.slane %v1784_v4, 4  ;;  %v2249_v51 = vrot.slane %v5421_v15, 5  ;;  %v1776_v27 = vsel %vm4887_vm8, %v1771_v43, %v1775_v23  ;;  %v3895_v0 = vrot.slane %v2188_v6, 9  ;;  %v5473_v18 = vld [vmem:[#allocation2 + $0x38] sm:$0xe] }
  0x81   :  { %4450 = vmatmul.mubr.bf16.gmra.mxu1 %v4687_v44  ;;  %v2253_v44 = vrot.slane %v5431_v54, 5  ;;  %v438_v48 = vsel %vm4877_vm7, %v288_v22, %v437_v24  ;;  %v4693_v40 = vld [vmem:[#allocation2 + $0x88] ss:$8 sps:$4 sm:$0xff]   ;;  %v5482_v38 = vrot.slane %v1798_v60, 4  ;;  %v5484_v39 = vrot.slane %v1801_v52, 5  ;;  %v4698_v24 = vld [vmem:[%s6086_s3 + $0x1f8] sm:$0xff]  }
  0x82   :  { %4414 = vmatmul.mubr.bf16.gmra.mxu0 %v3813_v2  ;;  %4498 = vmatpush3.bf16.msra.mxu1 %v4688_v63  ;;  %v3816_v2 = vcombine.low %v5372_v14, %v5378_v21  ;;  %v3817_v63 = vcombine.low %v5382_v50, %v5389_v32  ;;  %439 = vst [vmem:[#allocation2 + $0x44] sm:$0x1] %v438_v48  ;;  %v5486_v22 = vld [vmem:[#allocation2 + $0x40] sm:$0xe]  ;;  %v2257_v14 = vrot.slane %v5471_v47, 5  ;;  %v1815_v53 = vshll.u32 %v5421_v15, 16 }
  0x83   :  { %4462 = vmatpush3.bf16.msra.mxu0 %v4683_v37  ;;  %4417 = vmatprep.mubr.bf16.mxu0 %v3814_v28  ;;  %v3922_v45 = vcombine.low %v5401_v31, %v5429_v58  ;;  %v3923_v25 = vcombine.low %v5439_v16, %v5443_v1  ;;  %v3896_v28 = vrot.slane %v5473_v18, 9  ;;  %v1725_v21 = vld [vmem:[#allocation2 + $0x28] sm:$0xf]  ;;  %v5495_v34 = vcombine.low %v1762_v62, %v1776_v27  ;;  %v1727_v17 = vld [vmem:[#allocation2 + $0x30] sm:$0xf] }
  0x84   :  { %4463 = vmatprep.subr.bf16.mxu0 %v5415_v59  ;;  %4499 = vmatprep.subr.bf16.mxu1 %v4690_v26  ;;  %v1790_v37 = vsel %vm4887_vm8, %v5455_v36, %v5445_v42  ;;  %v1806_v49 = vshrl.u32 %v1725_v21, 16  ;;  %v1809_v33 = vshll.u32 %v1725_v21, 16  ;;  %v4691_v31 = vld [vmem:[%s6086_s3 + $0x110] sm:$0xff]   ;;  %v5509_v29 = vsel %vm5140_vm11, %v3894_v46, %v2249_v51  ;;  %v1731_v58 = vld [vmem:[#allocation2 + $0x40] sm:$0xf]  ;;  %v4702_v32 = vld [vmem:[%s6086_s3 + $0x1e8] sm:$0xff]  }
  0x85   :  { %4453 = vmatprep.mubr.bf16.mxu1 %v4692_v35  ;;  %v5513_v10 = vsel %vm5140_vm11, %v3895_v0, %v2253_v44  ;;  %v1820_v13 = vshrl.u32 %v1727_v17, 16  ;;  %v1823_v61 = vshll.u32 %v1727_v17, 16  ;;  %v1829_v52 = vshll.u32 %v5431_v54, 16  ;;  %v1736_v21 = vld [vmem:[#allocation2 + $0x64] sm:$0x1]  ;;  %v4700_v17 = vld [vmem:[%s6086_s3 + $0x1f0] sm:$0xff]  }
  0x86   :  { %4500 = vmatpush3.bf16.msra.mxu1 %v4690_v26  ;;  %v1729_v26 = vld [vmem:[#allocation2 + $0x38] sm:$0xf]  ;;  %v1808_v8 = vrot.slane %v1806_v49, 4  ;;  %v1811_v23 = vrot.slane %v1809_v33, 5  ;;  %v3897_v43 = vrot.slane %v5486_v22, 9  ;;  %v5520_v35 = vrot.slane %v1815_v53, 5 }
  0x87   :  { %4464 = vmatpush3.bf16.msra.mxu0 %v5415_v59  ;;  %4501 = vmatprep.subr.bf16.mxu1 %v5450_v56  ;;  %v1822_v4 = vrot.slane %v1820_v13, 4  ;;  %v1834_v57 = vshrl.u32 %v1729_v26, 16  ;;  %v1837_v11 = vshll.u32 %v1729_v26, 16  ;;  %v1825_v46 = vrot.slane %v1823_v61, 5  ;;  %v1734_v22 = vld [vmem:[#allocation2 + $0x5c] sm:$0x1] }
  0x88   :  { %4465 = vmatprep.subr.bf16.mxu0 %v4689_v55  ;;  %v1812_v15 = vor.u32 %v1811_v23, %v1808_v8  ;;  %v1843_v59 = vshll.u32 %v5471_v47, 16  ;;  %v1848_v6 = vshrl.u32 %v1731_v58, 16  ;;  %v1851_v51 = vshll.u32 %v1731_v58, 16  ;;  %v2191_v49 = vld [vmem:[#allocation2 + $0x58] sm:$0xe] }
  0x89   :  { %4454 = vmatmul.mubr.bf16.gmra.mxu1 %v4693_v40  ;;  %v1732_v54 = vld [vmem:[#allocation2 + $0x44] sm:$0x1]  ;;  %v1836_v62 = vrot.slane %v1834_v57, 4  ;;  %v1839_v60 = vrot.slane %v1837_v11, 5  ;;  %v1826_v44 = vor.u32 %v1825_v46, %v1822_v4  ;;  %v1831_v48 = vrot.slane %v1829_v52, 5 }
  0x8a   :  { %4418 = vmatmul.mubr.bf16.gmra.mxu0 %v3815_v5  ;;  %4502 = vmatpush3.bf16.msra.mxu1 %v5450_v56  ;;  %v2261_v27 = vrot.slane %v1732_v54, 5  ;;  %v1813_v0 = vrot.slane %v1812_v15, 4  ;;  %v1850_v5 = vrot.slane %v1848_v6, 4  ;;  %v1853_v56 = vrot.slane %v1851_v51, 5  ;;  %v2192_v33 = vld [vmem:[#allocation2 + $0x60] sm:$0xe] }
  0x8b   :  { %4466 = vmatpush3.bf16.msra.mxu0 %v4689_v55  ;;  %4421 = vmatprep.mubr.bf16.mxu0 %v3816_v2  ;;  %v1840_v30 = vor.u32 %v1839_v60, %v1836_v62  ;;  %v1857_v47 = vshll.u32 %v1732_v54, 16  ;;  %v1804_v55 = vsel %vm4887_vm8, %v5482_v38, %v5484_v39  ;;  %v3924_v18 = vcombine.low %v5509_v29, %v5513_v10  ;;  %v5559_v13 = vld [vmem:[#allocation2 + $0x6c] sm:$0x1]  ;;  %v2193_v52 = vld [vmem:[#allocation2 + $0x68] sm:$0xe] }
  0x8c   :  { %4467 = vmatprep.subr.bf16.mxu0 %v4691_v31  ;;  %4503 = vmatprep.subr.bf16.mxu1 %v4696_v20  ;;  %v5541_v40 = vsel %vm5140_vm11, %v3896_v28, %v2257_v14  ;;  %v1827_v2 = vrot.slane %v1826_v44, 4  ;;  %v5551_v38 = vsel %vm5140_vm11, %v3897_v43, %v2261_v27  ;;  %v5555_v28 = vrot.slane %v1843_v59, 5  ;;  %v2194_v43 = vld [vmem:[#allocation2 + $0x70] sm:$0xe]  ;;  %v1733_v36 = vld [vmem:[#allocation2 + $0x58] sm:$0xf] }
  0x8d   :  { %4505 = vmatprep.mubr.bf16.mxu1 %v3922_v45  ;;  %v4697_v45 = vld [vmem:[%s6086_s3 + $0x100] sm:$0xff]   ;;  %v5553_v39 = vrot.slane %v1840_v30, 4  ;;  %v1854_v14 = vor.u32 %v1853_v56, %v1850_v5  ;;  %v3898_v29 = vrot.slane %v2191_v49, 9  ;;  %v2265_v10 = vrot.slane %v1734_v22, 5  ;;  %v4701_v27 = vld [vmem:[%s6086_s3 + $0x1b0] sm:$0xff]  }
  0x8e   :  { %4504 = vmatpush3.bf16.msra.mxu1 %v4696_v20  ;;  %v5557_v20 = vrot.slane %v1857_v47, 5  ;;  %v3899_v53 = vrot.slane %v2192_v33, 9  ;;  %v1818_v26 = vsel %vm4887_vm8, %v1813_v0, %v5520_v35  ;;  %v1832_v8 = vsel %vm4887_vm8, %v1827_v2, %v1831_v48  ;;  %v1737_v30 = vld [vmem:[#allocation2 + $0x68] sm:$0xf]  ;;  %v1739_v5 = vld [vmem:[#allocation2 + $0x70] sm:$0xf] }
  0x8f   :  { %4468 = vmatpush3.bf16.msra.mxu0 %v4691_v31  ;;  %4553 = vmatprep.subr.bf16.mxu1 %v4698_v24  ;;  %v5566_v23 = vrot.slane %v1854_v14, 4  ;;  %v2269_v61 = vrot.slane %v1736_v21, 5  ;;  %v5568_v31 = vld [vmem:[#allocation2 + $0x74] sm:$0x1]  ;;  %v5575_v58 = vsel %vm5140_vm11, %v3898_v29, %v2265_v10  ;;  %v3900_v4 = vrot.slane %v2193_v52, 9  ;;  %v4703_v29 = vld [vmem:[%s6086_s3 + $0x1a8] sm:$0xff]  }
  0x90   :  { %4469 = vmatprep.subr.bf16.mxu0 %v4695_v7  ;;  %v2273_v57 = vrot.slane %v5559_v13, 5  ;;  %v2277_v11 = vrot.slane %v5568_v31, 5  ;;  %v3875_v16 = vcombine.low %v1790_v37, %v1804_v55  ;;  %v1871_v15 = vshll.u32 %v1734_v22, 16  ;;  %v1735_v37 = vld [vmem:[#allocation2 + $0x60] sm:$0xf] }
  0x91   :  { %4506 = vmatmul.mubr.bf16.vlgmr.msra.gmra.mxu1 %v3923_v25  ;;  %v5589_v1 = vsel %vm5140_vm11, %v3899_v53, %v2269_v61  ;;  %v3901_v25 = vrot.slane %v2194_v43, 9  ;;  %v3925_v50 = vcombine.low %v5541_v40, %v5551_v38  ;;  %v1846_v42 = vsel %vm4887_vm8, %v5553_v39, %v5555_v28  ;;  %v4704_v40 = vld [vmem:[%s6086_s3 + $0x1e0] sm:$0xff]   ;;  %v2198_v3 = vld [vmem:[#allocation2 + $0x90] sm:$0xe] }
  0x92   :  { %4422 = vmatmul.mubr.bf16.gmra.mxu0 %v3817_v63  ;;  %4554 = vmatpush3.bf16.msra.mxu1 %v4698_v24  ;;  %v3876_v63 = vcombine.low %v1818_v26, %v1832_v8  ;;  %v1885_v35 = vshll.u32 %v1736_v21, 16  ;;  %v1860_v46 = vsel %vm4887_vm8, %v5566_v23, %v5557_v20  ;;  %v3926_v59 = vcombine.low %v5575_v58, %v5589_v1  ;;  %v1744_v43 = vld [vmem:[#allocation2 + $0x84] sm:$0x1] }
  0x93   :  { %4470 = vmatpush3.bf16.msra.mxu0 %v4695_v7  ;;  %4473 = vmatprep.mubr.bf16.mxu0 %v5495_v34  ;;  %v4699_v34 = vld [vmem:[%s6086_s3 + $0x1b8] sm:$0xff]   ;;  %v1862_v54 = vshrl.u32 %v1733_v36, 16  ;;  %v1865_v62 = vshll.u32 %v1733_v36, 16  ;;  %v5610_v60 = vrot.slane %v1871_v15, 5  ;;  %v1876_v6 = vshrl.u32 %v1735_v37, 16  ;;  %v4705_v20 = vld [vmem:[%s6086_s3 + $0x1a0] sm:$0xff]  }
  0x94   :  { %4471 = vmatprep.subr.bf16.mxu0 %v4697_v45  ;;  %4555 = vmatprep.subr.bf16.mxu1 %v4700_v17  ;;  %v1879_v51 = vshll.u32 %v1735_v37, 16  ;;  %v5612_v24 = vrot.slane %v1885_v35, 5  ;;  %v5619_v0 = vsel %vm5140_vm11, %v3900_v4, %v2273_v57  ;;  %v5623_v44 = vsel %vm5140_vm11, %v3901_v25, %v2277_v11  ;;  %v2195_v11 = vld [vmem:[#allocation2 + $0x78] sm:$0xe]  ;;  %v485_v36 = vld [vmem:[#allocation2 + $0x94] sm:$0x1] }
  0x95   :  { %4509 = vmatprep.mubr.bf16.mxu1 %v3924_v18  ;;  %v1864_v48 = vrot.slane %v1862_v54, 4  ;;  %v1867_v7 = vrot.slane %v1865_v62, 5  ;;  %v1878_v56 = vrot.slane %v1876_v6, 4  ;;  %v1890_v55 = vshrl.u32 %v1737_v30, 16  ;;  %v2197_v54 = vld [vmem:[#allocation2 + $0x88] sm:$0xe] }
  0x96   :  { %4556 = vmatpush3.bf16.msra.mxu1 %v4700_v17  ;;  %v1881_v47 = vrot.slane %v1879_v51, 5  ;;  %v1893_v18 = vshll.u32 %v1737_v30, 16  ;;  %v1899_v22 = vshll.u32 %v5559_v13, 16  ;;  %v1904_v21 = vshrl.u32 %v1739_v5, 16  ;;  %v1741_v6 = vld [vmem:[#allocation2 + $0x78] sm:$0xf] }
  0x97   :  { %4472 = vmatpush3.bf16.msra.mxu0 %v4697_v45  ;;  %4557 = vmatprep.subr.bf16.mxu1 %v4702_v32  ;;  %v1868_v2 = vor.u32 %v1867_v7, %v1864_v48  ;;  %v1907_v17 = vshll.u32 %v1739_v5, 16  ;;  %v5632_v45 = vld [vmem:[%s6086_s3 + $0x1d8] sm:$0xff]   ;;  %v1892_v14 = vrot.slane %v1890_v55, 4  ;;  %v1913_v33 = vshll.u32 %v5568_v31, 16 }
  0x98   :  { %4521 = vmatprep.subr.bf16.mxu0 %v4699_v34  ;;  %v1882_v38 = vor.u32 %v1881_v47, %v1878_v56  ;;  %v1895_v49 = vrot.slane %v1893_v18, 5  ;;  %v5638_v53 = vrot.slane %v1899_v22, 5  ;;  %v1906_v13 = vrot.slane %v1904_v21, 4  ;;  %v1742_v31 = vld [vmem:[#allocation2 + $0x7c] sm:$0x1] }
  0x99   :  { %4510 = vmatmul.mubr.bf16.gmra.mxu1 %v3925_v50  ;;  %v1869_v10 = vrot.slane %v1868_v2, 4  ;;  %v1909_v26 = vrot.slane %v1907_v17, 5  ;;  %v3927_v8 = vcombine.low %v5619_v0, %v5623_v44  ;;  %v1915_v58 = vrot.slane %v1913_v33, 5  ;;  %v1743_v0 = vld [vmem:[#allocation2 + $0x80] sm:$0xf]  ;;  %v4707_v7 = vld [vmem:[%s6086_s3 + $0x198] sm:$0xff]  }
  0x9a   :  { %4474 = vmatmul.mubr.bf16.vlgmr.msra.gmra.mxu0 %v3875_v16  ;;  %4558 = vmatpush3.bf16.msra.mxu1 %v4702_v32  ;;  %v1883_v61 = vrot.slane %v1882_v38, 4  ;;  %v1896_v52 = vor.u32 %v1895_v49, %v1892_v14  ;;  %v2196_v16 = vld [vmem:[#allocation2 + $0x80] sm:$0xe]  ;;  %v2281_v1 = vrot.slane %v1742_v31, 5  ;;  %v2285_v25 = vrot.slane %v1744_v43, 5 }
  0x9b   :  { %4522 = vmatpush3.bf16.msra.mxu0 %v4699_v34  ;;  %4477 = vmatprep.mubr.bf16.mxu0 %v3876_v63  ;;  %v1874_v4 = vsel %vm4887_vm8, %v1869_v10, %v5610_v60  ;;  %v1910_v57 = vor.u32 %v1909_v26, %v1906_v13  ;;  %v3902_v32 = vrot.slane %v2195_v11, 9  ;;  %v3903_v63 = vrot.slane %v2196_v16, 9  ;;  %v1745_v2 = vld [vmem:[#allocation2 + $0x88] sm:$0xf] }
  0x9c   :  { %4523 = vmatprep.subr.bf16.mxu0 %v4701_v27  ;;  %4559 = vmatprep.subr.bf16.mxu1 %v4704_v40  ;;  %v1888_v15 = vsel %vm4887_vm8, %v1883_v61, %v5612_v24  ;;  %v1897_v50 = vrot.slane %v1896_v52, 4  ;;  %v3877_v37 = vcombine.low %v1846_v42, %v1860_v46  ;;  %v486_v34 = vsel %vm4877_vm7, %v352_v9, %v485_v36  ;;  %v4708_v42 = vld [vmem:[%s6086_s3 + $0x1d0] sm:$0xff]   ;;  %v2750_v36 = vld [vmem:[#allocation2 + $0x18] sm:$0xf] }
  0x9d   :  { %4513 = vmatprep.mubr.bf16.mxu1 %v3926_v59  ;;  %v1911_v35 = vrot.slane %v1910_v57, 4  ;;  %v5662_v59 = vld [vmem:[#allocation2 + $0x8c] sm:$0x1]  ;;  %v1927_v62 = vshll.u32 %v1742_v31, 16  ;;  %v3878_v39 = vcombine.low %v1874_v4, %v1888_v15  ;;  %v2282_v28 = vsel %vm5140_vm11, %v3902_v32, %v2281_v1  ;;  %487 = vst [vmem:[#allocation2 + $0x94] sm:$0x1] %v486_v34 }
  0x9e   :  { %4560 = vmatpush3.bf16.msra.mxu1 %v4704_v40  ;;  %v2286_v12 = vsel %vm5140_vm11, %v3903_v63, %v2285_v25  ;;  %v1902_v9 = vsel %vm4887_vm8, %v1897_v50, %v5638_v53  ;;  %v3904_v60 = vrot.slane %v2197_v54, 9  ;;  %v2289_v51 = vrot.slane %v5662_v59, 5  ;;  %v4709_v53 = vld [vmem:[%s6086_s3 + $0x190] sm:$0xff]   ;;  %v4711_v34 = vld [vmem:[%s6086_s3 + $0x188] sm:$0xff]  }
  0x9f   :  { %4524 = vmatpush3.bf16.msra.mxu0 %v4701_v27  ;;  %4561 = vmatprep.subr.bf16.mxu1 %v5632_v45  ;;  %v1916_v23 = vsel %vm4887_vm8, %v1911_v35, %v1915_v58  ;;  %v3928_v46 = vcombine.low %v2282_v28, %v2286_v12  ;;  %v3905_v24 = vrot.slane %v2198_v3, 9  ;;  %v4710_v27 = vld [vmem:[%s6086_s3 + $0x1c8] sm:$0xff]   ;;  %v1918_v44 = vshrl.u32 %v1741_v6, 16  ;;  %v2748_v32 = vld [vmem:[#allocation2 + $0x10] sm:$0xf] }
  0xa0   :  { %4525 = vmatprep.subr.bf16.mxu0 %v4703_v29  ;;  %v1921_v48 = vshll.u32 %v1741_v6, 16  ;;  %v1929_v30 = vrot.slane %v1927_v62, 5  ;;  %v1932_v5 = vshrl.u32 %v1743_v0, 16  ;;  %v1935_v56 = vshll.u32 %v1743_v0, 16  ;;  %v5701_v63 = vld [vmem:[#allocation2 + $0x14] sm:$0x1] }
  0xa1   :  { %4514 = vmatmul.mubr.bf16.gmra.mxu1 %v3927_v8  ;;  %v1941_v47 = vshll.u32 %v1744_v43, 16  ;;  %v3879_v55 = vcombine.low %v1902_v9, %v1916_v23  ;;  %v1920_v18 = vrot.slane %v1918_v44, 4  ;;  %v1946_v38 = vshrl.u32 %v1745_v2, 16  ;;  %v5708_v62 = vld [vmem:[#allocation2 + $0x1c] sm:$0x1] }
  0xa2   :  { %4478 = vmatmul.mubr.bf16.gmra.mxu0 %v3877_v37  ;;  %4562 = vmatpush3.bf16.msra.mxu1 %v5632_v45  ;;  %v1923_v40 = vrot.slane %v1921_v48, 5  ;;  %v1934_v22 = vrot.slane %v1932_v5, 4  ;;  %v1937_v21 = vrot.slane %v1935_v56, 5  ;;  %v1747_v45 = vld [vmem:[#allocation2 + $0x90] sm:$0xf]  ;;  %v1949_v49 = vshll.u32 %v1745_v2, 16 }
  0xa3   :  { %4526 = vmatpush3.bf16.msra.mxu0 %v4703_v29  ;;  %4481 = vmatprep.mubr.bf16.mxu0 %v3878_v39  ;;  %v1943_v17 = vrot.slane %v1941_v47, 5  ;;  %v1955_v33 = vshll.u32 %v5662_v59, 16  ;;  %v1960_v10 = vshrl.u32 %v1747_v45, 16  ;;  %v4712_v29 = vld [vmem:[%s6086_s3 + $0x1c0] sm:$0xff]   ;;  %v2290_v26 = vsel %vm5140_vm11, %v3904_v60, %v2289_v51  ;;  %v5715_v23 = vld [vmem:[%s6086_s3 + $0x238] sm:$0xff]  }
  0xa4   :  { %4527 = vmatprep.subr.bf16.mxu0 %v4705_v20  ;;  %4563 = vmatprep.subr.bf16.mxu1 %v4708_v42  ;;  %v1924_v14 = vor.u32 %v1923_v40, %v1920_v18  ;;  %v1748_v13 = vld [vmem:[#allocation2 + $0x94] sm:$0x1]  ;;  %v1938_v8 = vor.u32 %v1937_v21, %v1934_v22  ;;  %v1948_v61 = vrot.slane %v1946_v38, 4  ;;  %v1963_v52 = vshll.u32 %v1747_v45, 16  ;;  %v5710_v9 = vld [vmem:[#allocation2 + $0x24] sm:$0x1] }
  0xa5   :  { %4517 = vmatprep.mubr.bf16.mxu1 %v3928_v46  ;;  %v2293_v58 = vrot.slane %v1748_v13, 5  ;;  %v1951_v43 = vrot.slane %v1949_v49, 5  ;;  %v1957_v4 = vrot.slane %v1955_v33, 5  ;;  %v1962_v11 = vrot.slane %v1960_v10, 4  ;;  %v2754_v51 = vld [vmem:[#allocation2 + $0x28] sm:$0xf] }
  0xa6   :  { %4564 = vmatpush3.bf16.msra.mxu1 %v4708_v42  ;;  %v1925_v31 = vrot.slane %v1924_v14, 4  ;;  %v1939_v57 = vrot.slane %v1938_v8, 4  ;;  %v1965_v16 = vrot.slane %v1963_v52, 5  ;;  %v1969_v1 = vshll.u32 %v1748_v13, 16  ;;  %v5721_v48 = vld [vmem:[#allocation2 + $0x2c] sm:$0x1] }
  0xa7   :  { %4528 = vmatpush3.bf16.msra.mxu0 %v4705_v20  ;;  %4565 = vmatprep.subr.bf16.mxu1 %v4710_v27  ;;  %v2294_v25 = vsel %vm5140_vm11, %v3905_v24, %v2293_v58  ;;  %v1952_v50 = vor.u32 %v1951_v43, %v1948_v61  ;;  %v2752_v20 = vld [vmem:[#allocation2 + $0x20] sm:$0xf]  ;;  %v2781_v12 = vshrl.u32 %v2748_v32, 16  ;;  %v2784_v3 = vshll.u32 %v2748_v32, 16  ;;  %v4715_v10 = vld [vmem:[#allocation2 + $0x10] ss:$8 sps:$4 sm:$0xff]  }
  0xa8   :  { %4529 = vmatprep.subr.bf16.mxu0 %v4707_v7  ;;  %v1930_v15 = vsel %vm4887_vm8, %v1925_v31, %v1929_v30  ;;  %v3929_v37 = vcombine.low %v2290_v26, %v2294_v25  ;;  %v1944_v35 = vsel %vm4887_vm8, %v1939_v57, %v1943_v17  ;;  %v1966_v59 = vor.u32 %v1965_v16, %v1962_v11  ;;  %v4713_v2 = vld [vmem:[%s6086_s3 + $0x180] sm:$0xff]   ;;  %v5735_v16 = vld [vmem:[#allocation2 + $0x34] sm:$0x1]  ;;  %v5737_v25 = vld [vmem:[#allocation2 + $0x3c] sm:$0x1] }
  0xa9   :  { %v1971_v54 = vrot.slane %v1969_v1, 5  ;;  %v3880_v39 = vcombine.low %v1930_v15, %v1944_v35  ;;  %v1953_v28 = vrot.slane %v1952_v50, 4  ;;  %v2790_v46 = vshll.u32 %v5701_v63, 16  ;;  %v4716_v43 = vld [vmem:[#allocation2 + $0x20] ss:$8 sps:$4 sm:$0xff]  }
  0xaa   :  { %4482 = vmatmul.mubr.bf16.gmra.mxu0 %v3879_v55  ;;  %4566 = vmatpush3.bf16.msra.mxu1 %v4710_v27  ;;  %v1967_v42 = vrot.slane %v1966_v59, 4  ;;  %v2795_v60 = vshrl.u32 %v2750_v36, 16  ;;  %v2798_v6 = vshll.u32 %v2750_v36, 16  ;;  %v2783_v27 = vrot.slane %v2781_v12, 4  ;;  %v2758_v1 = vld [vmem:[#allocation2 + $0x38] sm:$0xf] }
  0xab   :  { %4530 = vmatpush3.bf16.msra.mxu0 %v4707_v7  ;;  %4567 = vmatprep.subr.bf16.mxu1 %v4712_v29  ;;  %v1958_v24 = vsel %vm4887_vm8, %v1953_v28, %v1957_v4  ;;  %v2786_v0 = vrot.slane %v2784_v3, 5  ;;  %v2804_v44 = vshll.u32 %v5708_v62, 16  ;;  %v2792_v30 = vrot.slane %v2790_v46, 5  ;;  %v2756_v4 = vld [vmem:[#allocation2 + $0x30] sm:$0xf] }
  0xac   :  { %4531 = vmatprep.subr.bf16.mxu0 %v4709_v53  ;;  %4518 = vmatmul.mubr.bf16.gmra.mxu1 %v3929_v37  ;;  %v1972_v7 = vsel %vm4887_vm8, %v1967_v42, %v1971_v54  ;;  %v2797_v5 = vrot.slane %v2795_v60, 4  ;;  %v2800_v56 = vrot.slane %v2798_v6, 5  ;;  %v2809_v40 = vshrl.u32 %v2752_v20, 16  ;;  %v2760_v37 = vld [vmem:[#allocation2 + $0x40] sm:$0xf]  ;;  %v4717_v60 = vld [vmem:[%s6086_s3 + $0x230] sm:$0xff]  }
  0xad   :  { %4485 = vmatprep.mubr.bf16.mxu0 %v3880_v39  ;;  %v3881_v47 = vcombine.low %v1958_v24, %v1972_v7  ;;  %v2787_v55 = vor.u32 %v2786_v0, %v2783_v27  ;;  %v2806_v18 = vrot.slane %v2804_v44, 5  ;;  %v2812_v21 = vshll.u32 %v2752_v20, 16  ;;  %v5741_v20 = vld [vmem:[#allocation2 + $0x44] sm:$0x1]  ;;  %v2762_v42 = vld [vmem:[#allocation2 + $0x48] sm:$0xf] }
  0xae   :  { %4568 = vmatpush3.bf16.msra.mxu1 %v4712_v29  ;;  %v2801_v22 = vor.u32 %v2800_v56, %v2797_v5  ;;  %v2818_v17 = vshll.u32 %v5710_v9, 16  ;;  %v2823_v45 = vshrl.u32 %v2754_v51, 16  ;;  %v2811_v14 = vrot.slane %v2809_v40, 4  ;;  %v5751_v27 = vld [vmem:[#allocation2 + $0x4c] sm:$0x1] }
  0xaf   :  { %4532 = vmatpush3.bf16.msra.mxu0 %v4709_v53  ;;  %4617 = vmatprep.subr.bf16.mxu1 %v5715_v23  ;;  %v2788_v38 = vrot.slane %v2787_v55, 4  ;;  %v2826_v49 = vshll.u32 %v2754_v51, 16  ;;  %v2832_v33 = vshll.u32 %v5721_v48, 16  ;;  %v2814_v53 = vrot.slane %v2812_v21, 5  ;;  %v4718_v21 = vld [vmem:[%s6086_s3 + $0x228] sm:$0xff]  }
  0xb0   :  { %4533 = vmatprep.subr.bf16.mxu0 %v4711_v34  ;;  %v2802_v29 = vrot.slane %v2801_v22, 4  ;;  %v2825_v13 = vrot.slane %v2823_v45, 4  ;;  %v2820_v8 = vrot.slane %v2818_v17, 5  ;;  %v2837_v50 = vshrl.u32 %v2756_v4, 16 }
  0xb1   :  { %v2793_v26 = vsel %vm4887_vm8, %v2788_v38, %v2792_v30  ;;  %v2828_v61 = vrot.slane %v2826_v49, 5  ;;  %v2834_v52 = vrot.slane %v2832_v33, 5  ;;  %v2815_v31 = vor.u32 %v2814_v53, %v2811_v14  ;;  %v4719_v49 = vld [vmem:[#allocation2 + $0x30] ss:$8 sps:$4 sm:$0xff]  }
  0xb2   :  { %4486 = vmatmul.mubr.bf16.gmra.mxu0 %v3881_v47  ;;  %v2807_v58 = vsel %vm4887_vm8, %v2802_v29, %v2806_v18  ;;  %v2840_v32 = vshll.u32 %v2756_v4, 16  ;;  %v2846_v36 = vshll.u32 %v5735_v16, 16  ;;  %v2854_v59 = vshll.u32 %v2758_v1, 16  ;;  %v2766_v4 = vld [vmem:[#allocation2 + $0x68] sm:$0xf] }
  0xb3   :  { %4534 = vmatpush3.bf16.msra.mxu0 %v4711_v34  ;;  %4537 = vmatprep.mubr.bf16.mxu0 %v4715_v10  ;;  %v3986_v57 = vcombine.low %v2793_v26, %v2807_v58  ;;  %v2829_v11 = vor.u32 %v2828_v61, %v2825_v13  ;;  %v2816_v15 = vrot.slane %v2815_v31, 4  ;;  %v2851_v34 = vshrl.u32 %v2758_v1, 16  ;;  %v5765_v58 = vld [vmem:[#allocation2 + $0x64] sm:$0x1] }
  0xb4   :  { %4535 = vmatprep.subr.bf16.mxu0 %v4713_v2  ;;  %v2860_v54 = vshll.u32 %v5737_v25, 16  ;;  %v2839_v28 = vrot.slane %v2837_v50, 4  ;;  %v2842_v12 = vrot.slane %v2840_v32, 5  ;;  %v2848_v3 = vrot.slane %v2846_v36, 5 }
  0xb5   :  { %4569 = vmatprep.mubr.bf16.mxu1 %v3986_v57  ;;  %v2830_v35 = vrot.slane %v2829_v11, 4  ;;  %v2821_v39 = vsel %vm4887_vm8, %v2816_v15, %v2820_v8  ;;  %v2853_v6 = vrot.slane %v2851_v34, 4  ;;  %v2856_v51 = vrot.slane %v2854_v59, 5  ;;  %v5768_v57 = vld [vmem:[#allocation2 + $0x6c] sm:$0x1]  ;;  %v4721_v15 = vld [vmem:[%s6086_s3 + $0x220] sm:$0xff]  }
  0xb6   :  { %v2862_v24 = vrot.slane %v2860_v54, 5  ;;  %v2843_v44 = vor.u32 %v2842_v12, %v2839_v28  ;;  %v2865_v7 = vshrl.u32 %v2760_v37, 16  ;;  %v2868_v30 = vshll.u32 %v2760_v37, 16  ;;  %v2768_v37 = vld [vmem:[#allocation2 + $0x70] sm:$0xf] }
  0xb7   :  { %4536 = vmatpush3.bf16.msra.mxu0 %v4713_v2  ;;  %v2835_v46 = vsel %vm4887_vm8, %v2830_v35, %v2834_v52  ;;  %v2857_v5 = vor.u32 %v2856_v51, %v2853_v6  ;;  %v2874_v56 = vshll.u32 %v5741_v20, 16  ;;  %v2879_v47 = vshrl.u32 %v2762_v42, 16  ;;  %v2764_v52 = vld [vmem:[#allocation2 + $0x60] sm:$0xf]  ;;  %v5781_v51 = vld [vmem:[#allocation2 + $0x7c] sm:$0x1] }
  0xb8   :  { %4585 = vmatprep.subr.bf16.mxu0 %v5715_v23  ;;  %v3987_v0 = vcombine.low %v2821_v39, %v2835_v46  ;;  %v2882_v55 = vshll.u32 %v2762_v42, 16  ;;  %v2844_v18 = vrot.slane %v2843_v44, 4  ;;  %v2867_v40 = vrot.slane %v2865_v7, 4  ;;  %v5779_v39 = vld [vmem:[#allocation2 + $0x74] sm:$0x1] }
  0xb9   :  { %v2870_v2 = vrot.slane %v2868_v30, 5  ;;  %v2888_v22 = vshll.u32 %v5751_v27, 16  ;;  %v2858_v17 = vrot.slane %v2857_v5, 4  ;;  %v2876_v45 = vrot.slane %v2874_v56, 5  ;;  %v2770_v46 = vld [vmem:[#allocation2 + $0x78] sm:$0xf] }
  0xba   :  { %4538 = vmatmul.mubr.bf16.vlgmr.msra.gmra.mxu0 %v4716_v43  ;;  %4570 = vmatmul.mubr.bf16.vlgmr.msra.gmra.mxu1 %v3987_v0  ;;  %v2881_v38 = vrot.slane %v2879_v47, 4  ;;  %v2884_v14 = vrot.slane %v2882_v55, 5  ;;  %v2849_v33 = vsel %vm4887_vm8, %v2844_v18, %v2848_v3  ;;  %v3264_v53 = vrot.slane %v5701_v63, 5  ;;  %v4722_v56 = vld [vmem:[%s6086_s3 + $0x218] sm:$0xff]  }
  0xbb   :  { %4586 = vmatpush3.bf16.msra.mxu0 %v5715_v23  ;;  %4625 = vmatpush3.bf16.msra.mxu1 %v5715_v23  ;;  %v2871_v10 = vor.u32 %v2870_v2, %v2867_v40  ;;  %v2890_v29 = vrot.slane %v2888_v22, 5  ;;  %v2863_v13 = vsel %vm4887_vm8, %v2858_v17, %v2862_v24  ;;  %v4720_v23 = vld [vmem:[#allocation2 + $0x40] ss:$8 sps:$4 sm:$0xff]   ;;  %v3268_v31 = vrot.slane %v5708_v62, 5 }
  0xbc   :  { %4587 = vmatprep.subr.bf16.mxu0 %v4717_v60  ;;  %4618 = vmatprep.subr.bf16.mxu1 %v4717_v60  ;;  %v2885_v26 = vor.u32 %v2884_v14, %v2881_v38  ;;  %v3988_v8 = vcombine.low %v2849_v33, %v2863_v13  ;;  %v2893_v11 = vshrl.u32 %v2764_v52, 16  ;;  %v2896_v50 = vshll.u32 %v2764_v52, 16  ;;  %v4725_v33 = vld [vmem:[%s6086_s3 + $0x210] sm:$0xff]  }
  0xbd   :  { %4541 = vmatprep.mubr.bf16.mxu0 %v4719_v49  ;;  %v2872_v61 = vrot.slane %v2871_v10, 4  ;;  %v2902_v32 = vshll.u32 %v5765_v58, 16  ;;  %v2907_v36 = vshrl.u32 %v2766_v4, 16  ;;  %v2910_v59 = vshll.u32 %v2766_v4, 16  ;;  %v4724_v52 = vld [vmem:[#allocation2 + $0x70] ss:$8 sps:$4 sm:$0xff]  }
  0xbe   :  { %v2886_v43 = vrot.slane %v2885_v26, 4  ;;  %4573 = vmatprep.mubr.bf16.mxu1 %v3988_v8  ;;  %v2895_v34 = vrot.slane %v2893_v11, 4  ;;  %v2916_v54 = vshll.u32 %v5768_v57, 16  ;;  %v2898_v12 = vrot.slane %v2896_v50, 5  ;;  %v4723_v26 = vld [vmem:[#allocation2 + $0x60] ss:$8 sps:$4 sm:$0xff]  }
  0xbf   :  { %4588 = vmatpush3.bf16.msra.mxu0 %v4717_v60  ;;  %4626 = vmatpush3.bf16.msra.mxu1 %v4717_v60  ;;  %v2877_v1 = vsel %vm4887_vm8, %v2872_v61, %v2876_v45  ;;  %v2904_v3 = vrot.slane %v2902_v32, 5  ;;  %v2909_v42 = vrot.slane %v2907_v36, 4  ;;  %v2912_v60 = vrot.slane %v2910_v59, 5  ;;  %v2772_v50 = vld [vmem:[#allocation2 + $0x80] sm:$0xf] }
  0xc0   :  { %4589 = vmatprep.subr.bf16.mxu0 %v4718_v21  ;;  %4619 = vmatprep.subr.bf16.mxu1 %v4718_v21  ;;  %v2891_v35 = vsel %vm4887_vm8, %v2886_v43, %v2890_v29  ;;  %v2918_v6 = vrot.slane %v2916_v54, 5  ;;  %v2921_v24 = vshrl.u32 %v2768_v37, 16  ;;  %v2924_v0 = vshll.u32 %v2768_v37, 16  ;;  %v5802_v32 = vld [vmem:[#allocation2 + $0x84] sm:$0x1] }
  0xc1   :  { %v3989_v28 = vcombine.low %v2877_v1, %v2891_v35  ;;  %v2899_v44 = vor.u32 %v2898_v12, %v2895_v34  ;;  %v2930_v7 = vshll.u32 %v5779_v39, 16  ;;  %v2935_v30 = vshrl.u32 %v2770_v46, 16  ;;  %v2774_v36 = vld [vmem:[#allocation2 + $0x88] sm:$0xf]  ;;  %v5806_v35 = vld [vmem:[#allocation2 + $0x8c] sm:$0x1] }
  0xc2   :  { %4542 = vmatmul.mubr.bf16.gmra.mxu0 %v4720_v23  ;;  %v2938_v5 = vshll.u32 %v2770_v46, 16  ;;  %v2913_v47 = vor.u32 %v2912_v60, %v2909_v42  ;;  %v2923_v55 = vrot.slane %v2921_v24, 4  ;;  %v2926_v18 = vrot.slane %v2924_v0, 5  ;;  %v2776_v46 = vld [vmem:[#allocation2 + $0x90] sm:$0xf]  ;;  %v4726_v60 = vld [vmem:[%s6086_s3 + $0x208] sm:$0xff]  }
  0xc3   :  { %4590 = vmatpush3.bf16.msra.mxu0 %v4718_v21  ;;  %4627 = vmatpush3.bf16.msra.mxu1 %v4718_v21  ;;  %v2944_v40 = vshll.u32 %v5781_v51, 16  ;;  %v2900_v2 = vrot.slane %v2899_v44, 4  ;;  %v2932_v22 = vrot.slane %v2930_v7, 5  ;;  %v2937_v21 = vrot.slane %v2935_v30, 4  ;;  %v5813_v44 = vld [vmem:[#allocation2 + $0x94] sm:$0x1] }
  0xc4   :  { %4591 = vmatprep.subr.bf16.mxu0 %v4721_v15  ;;  %4574 = vmatmul.mubr.bf16.gmra.mxu1 %v3989_v28  ;;  %v2940_v17 = vrot.slane %v2938_v5, 5  ;;  %v2914_v45 = vrot.slane %v2913_v47, 4  ;;  %v2927_v38 = vor.u32 %v2926_v18, %v2923_v55  ;;  %v3304_v49 = vrot.slane %v5779_v39, 5  ;;  %v2778_v47 = vld [vmem:[#allocation2 + $0x98] sm:$0xf] }
  0xc5   :  { %4620 = vmatprep.subr.bf16.mxu1 %v4721_v15  ;;  %v2946_v14 = vrot.slane %v2944_v40, 5  ;;  %v2905_v10 = vsel %vm4887_vm8, %v2900_v2, %v2904_v3  ;;  %v3308_v13 = vrot.slane %v5781_v51, 5  ;;  %v3296_v23 = vrot.slane %v5765_v58, 5  ;;  %4545 = vmatprep.mubr.bf16.mxu0 %v4723_v26  ;;  %v5815_v40 = vld [vmem:[#allocation2 + $0x9c] sm:$0x1] }
  0xc6   :  { %v2941_v29 = vor.u32 %v2940_v17, %v2937_v21  ;;  %v2919_v8 = vsel %vm4887_vm8, %v2914_v45, %v2918_v6  ;;  %v2928_v61 = vrot.slane %v2927_v38, 4  ;;  %v3300_v43 = vrot.slane %v5768_v57, 5  ;;  %v3217_v58 = vld [vmem:[#allocation2 + $0x28] sm:$0xe] }
  0xc7   :  { %4592 = vmatpush3.bf16.msra.mxu0 %v4721_v15  ;;  %4628 = vmatpush3.bf16.msra.mxu1 %v4721_v15  ;;  %v3990_v4 = vcombine.low %v2905_v10, %v2919_v8  ;;  %v3272_v1 = vrot.slane %v5710_v9, 5  ;;  %v2949_v34 = vshrl.u32 %v2772_v50, 16  ;;  %v2952_v59 = vshll.u32 %v2772_v50, 16  ;;  %v4729_v10 = vld [vmem:[%s6086_s3 + $0x200] sm:$0xff]  }
  0xc8   :  { %4593 = vmatprep.subr.bf16.mxu0 %v4722_v56  ;;  %4621 = vmatprep.subr.bf16.mxu1 %v4722_v56  ;;  %v2942_v11 = vrot.slane %v2941_v29, 4  ;;  %v2933_v15 = vsel %vm4887_vm8, %v2928_v61, %v2932_v22  ;;  %v2958_v54 = vshll.u32 %v5802_v32, 16  ;;  %v2963_v12 = vshrl.u32 %v2774_v36, 16  ;;  %v4727_v50 = vld [vmem:[#allocation2 + $0x80] ss:$8 sps:$4 sm:$0xff]  }
  0xc9   :  { %4577 = vmatprep.mubr.bf16.mxu1 %v3990_v4  ;;  %v2966_v3 = vshll.u32 %v2774_v36, 16  ;;  %v2972_v42 = vshll.u32 %v5806_v35, 16  ;;  %v2951_v6 = vrot.slane %v2949_v34, 4  ;;  %v2954_v24 = vrot.slane %v2952_v59, 5  ;;  %v4728_v59 = vld [vmem:[#allocation2 + $0x90] ss:$8 sps:$4 sm:$0xff]  }
  0xca   :  { %4546 = vmatmul.mubr.bf16.gmra.mxu0 %v4724_v52  ;;  %v2947_v37 = vsel %vm4887_vm8, %v2942_v11, %v2946_v14  ;;  %v2960_v0 = vrot.slane %v2958_v54, 5  ;;  %v2977_v7 = vshrl.u32 %v2776_v46, 16  ;;  %v2965_v30 = vrot.slane %v2963_v12, 4 }
  0xcb   :  { %4594 = vmatpush3.bf16.msra.mxu0 %v4722_v56  ;;  %4629 = vmatpush3.bf16.msra.mxu1 %v4722_v56  ;;  %v3991_v28 = vcombine.low %v2933_v15, %v2947_v37  ;;  %v2968_v5 = vrot.slane %v2966_v3, 5  ;;  %v2974_v56 = vrot.slane %v2972_v42, 5  ;;  %v2980_v55 = vshll.u32 %v2776_v46, 16  ;;  %v3223_v42 = vld [vmem:[#allocation2 + $0x68] sm:$0xe] }
  0xcc   :  { %4622 = vmatprep.subr.bf16.mxu1 %v4725_v33  ;;  %4595 = vmatprep.subr.bf16.mxu0 %v4725_v33  ;;  %v2955_v18 = vor.u32 %v2954_v24, %v2951_v6  ;;  %v2979_v2 = vrot.slane %v2977_v7, 4  ;;  %v2986_v22 = vshll.u32 %v5813_v44, 16  ;;  %v2991_v21 = vshrl.u32 %v2778_v47, 16  ;;  %v3225_v24 = vld [vmem:[#allocation2 + $0x78] sm:$0xe] }
  0xcd   :  { %4578 = vmatmul.mubr.bf16.gmra.mxu1 %v3991_v28  ;;  %v2969_v17 = vor.u32 %v2968_v5, %v2965_v30  ;;  %v2982_v45 = vrot.slane %v2980_v55, 5  ;;  %v2994_v38 = vshll.u32 %v2778_v47, 16  ;;  %v3000_v14 = vshll.u32 %v5815_v40, 16  ;;  %4549 = vmatprep.mubr.bf16.mxu0 %v4727_v50  ;;  %v3222_v28 = vld [vmem:[#allocation2 + $0x60] sm:$0xe] }
  0xce   :  { %v2956_v29 = vrot.slane %v2955_v18, 4  ;;  %v2988_v26 = vrot.slane %v2986_v22, 5  ;;  %v3276_v8 = vrot.slane %v5721_v48, 5  ;;  %v3312_v54 = vrot.slane %v5802_v32, 5  ;;  %v3214_v7 = vld [vmem:[#allocation2 + $0x10] sm:$0xe] }
  0xcf   :  { %4596 = vmatpush3.bf16.msra.mxu0 %v4725_v33  ;;  %4630 = vmatpush3.bf16.msra.mxu1 %v4725_v33  ;;  %v2993_v33 = vrot.slane %v2991_v21, 4  ;;  %v2970_v61 = vrot.slane %v2969_v17, 4  ;;  %v2983_v52 = vor.u32 %v2982_v45, %v2979_v2  ;;  %v2996_v4 = vrot.slane %v2994_v38, 5  ;;  %v3216_v55 = vld [vmem:[#allocation2 + $0x20] sm:$0xe] }
  0xd0   :  { %4597 = vmatprep.subr.bf16.mxu0 %v4726_v60  ;;  %4623 = vmatprep.subr.bf16.mxu1 %v4726_v60  ;;  %v3002_v11 = vrot.slane %v3000_v14, 5  ;;  %v2961_v15 = vsel %vm4887_vm8, %v2956_v29, %v2960_v0  ;;  %v4010_v46 = vrot.slane %v3222_v28, 9  ;;  %v4011_v6 = vrot.slane %v3223_v42, 9  ;;  %v3226_v21 = vld [vmem:[#allocation2 + $0x80] sm:$0xe] }
  0xd1   :  { %v2975_v36 = vsel %vm4887_vm8, %v2970_v61, %v2974_v56  ;;  %v2984_v37 = vrot.slane %v2983_v52, 4  ;;  %v2997_v34 = vor.u32 %v2996_v4, %v2993_v33  ;;  %v4013_v5 = vrot.slane %v3225_v24, 9  ;;  %v3215_v56 = vld [vmem:[#allocation2 + $0x18] sm:$0xe]  ;;  %v3227_v45 = vld [vmem:[#allocation2 + $0x88] sm:$0xe] }
  0xd2   :  { %v3992_v48 = vcombine.low %v2961_v15, %v2975_v36  ;;  %4550 = vmatmul.mubr.bf16.gmra.mxu0 %v4728_v59  ;;  %v3297_v30 = vsel %vm5140_vm11, %v4010_v46, %v3296_v23  ;;  %v4002_v47 = vrot.slane %v3214_v7, 9  ;;  %v3301_v2 = vsel %vm5140_vm11, %v4011_v6, %v3300_v43  ;;  %v3228_v14 = vld [vmem:[#allocation2 + $0x90] sm:$0xe]  ;;  %v3219_v33 = vld [vmem:[#allocation2 + $0x38] sm:$0xe] }
  0xd3   :  { %4598 = vmatpush3.bf16.msra.mxu0 %v4726_v60  ;;  %4631 = vmatpush3.bf16.msra.mxu1 %v4726_v60  ;;  %v2989_v12 = vsel %vm4887_vm8, %v2984_v37, %v2988_v26  ;;  %v2998_v3 = vrot.slane %v2997_v34, 4  ;;  %v3224_v60 = vld [vmem:[#allocation2 + $0x70] sm:$0xe]  ;;  %v4003_v22 = vrot.slane %v3215_v56, 9  ;;  %v4038_v17 = vcombine.low %v3297_v30, %v3301_v2  ;;  %v3220_v61 = vld [vmem:[#allocation2 + $0x40] sm:$0xe] }
  0xd4   :  { %4599 = vmatprep.subr.bf16.mxu0 %v4729_v10  ;;  %4624 = vmatprep.subr.bf16.mxu1 %v4729_v10  ;;  %v4012_v0 = vrot.slane %v3224_v60, 9  ;;  %v3309_v23 = vsel %vm5140_vm11, %v4013_v5, %v3308_v13  ;;  %v3265_v57 = vsel %vm5140_vm11, %v4002_v47, %v3264_v53  ;;  %v4004_v43 = vrot.slane %v3216_v55, 9  ;;  %v3218_v29 = vld [vmem:[#allocation2 + $0x30] sm:$0xe] }
  0xd5   :  { %4581 = vmatprep.mubr.bf16.mxu1 %v3992_v48  ;;  %v3003_v32 = vsel %vm4887_vm8, %v2998_v3, %v3002_v11  ;;  %v3269_v39 = vsel %vm5140_vm11, %v4003_v22, %v3268_v31  ;;  %v4014_v38 = vrot.slane %v3226_v21, 9  ;;  %v4015_v13 = vrot.slane %v3227_v45, 9 }
  0xd6   :  { %v3993_v18 = vcombine.low %v2989_v12, %v3003_v32  ;;  %v3305_v19 = vsel %vm5140_vm11, %v4012_v0, %v3304_v49  ;;  %v4005_v49 = vrot.slane %v3217_v58, 9  ;;  %v4034_v51 = vcombine.low %v3265_v57, %v3269_v39 }
  0xd7   :  { %4600 = vmatpush3.bf16.msra.mxu0 %v4729_v10  ;;  %4632 = vmatpush3.bf16.msra.mxu1 %v4729_v10  ;;  %v3273_v63 = vsel %vm5140_vm11, %v4004_v43, %v3272_v1  ;;  %v3316_v53 = vrot.slane %v5806_v35, 5  ;;  %v3229_v10 = vld [vmem:[#allocation2 + $0x98] sm:$0xe]  ;;  %v4039_v26 = vcombine.low %v3305_v19, %v3309_v23  ;;  %v3313_v31 = vsel %vm5140_vm11, %v4014_v38, %v3312_v54  ;;  %v3221_v35 = vld [vmem:[#allocation2 + $0x48] sm:$0xe] }
  0xd8   :  { %4582 = vmatmul.mubr.bf16.gmra.mxu1 %v3993_v18  ;;  %v3277_v62 = vsel %vm5140_vm11, %v4005_v49, %v3276_v8  ;;  %4601 = vmatprep.mubr.bf16.mxu0 %v4034_v51  ;;  %v4016_v1 = vrot.slane %v3228_v14, 9  ;;  %v3320_v4 = vrot.slane %v5813_v44, 5  ;;  %v4017_v11 = vrot.slane %v3229_v10, 9 }
  0xd9   :  { %4609 = vmatprep.mubr.bf16.mxu1 %v4038_v17  ;;  %v4035_v52 = vcombine.low %v3273_v63, %v3277_v62  ;;  %v3317_v9 = vsel %vm5140_vm11, %v4015_v13, %v3316_v53  ;;  %v3324_v15 = vrot.slane %v5815_v40, 5  ;;  %v4006_v50 = vrot.slane %v3218_v29, 9 }
  0xda   :  { %v3280_v8 = vrot.slane %v5735_v16, 5  ;;  %v4040_v36 = vcombine.low %v3313_v31, %v3317_v9  ;;  %v4007_v37 = vrot.slane %v3219_v33, 9  ;;  %v3284_v34 = vrot.slane %v5737_v25, 5 }
  0xdb   :  { %4602 = vmatmul.mubr.bf16.vlgmr.msra.gmra.mxu0 %v4035_v52  ;;  %v4008_v59 = vrot.slane %v3220_v61, 9  ;;  %v3288_v48 = vrot.slane %v5741_v20, 5  ;;  %v4009_v28 = vrot.slane %v3221_v35, 9  ;;  %v3292_v40 = vrot.slane %v5751_v27, 5 }
  0xdc   :  { %v3281_v54 = vsel %vm5140_vm11, %v4006_v50, %v3280_v8  ;;  %v3285_v44 = vsel %vm5140_vm11, %v4007_v37, %v3284_v34  ;;  %v3321_v25 = vsel %vm5140_vm11, %v4016_v1, %v3320_v4  ;;  %v3325_v3 = vsel %vm5140_vm11, %v4017_v11, %v3324_v15 }
  0xdd   :  { %v4036_v12 = vcombine.low %v3281_v54, %v3285_v44  ;;  %v3289_v16 = vsel %vm5140_vm11, %v4008_v59, %v3288_v48  ;;  %v3293_v20 = vsel %vm5140_vm11, %v4009_v28, %v3292_v40  ;;  %v4041_v46 = vcombine.low %v3321_v25, %v3325_v3 }
  0xde   :  { %v4037_v42 = vcombine.low %v3289_v16, %v3293_v20 }
  0xdf   :  { %4605 = vmatprep.mubr.bf16.mxu0 %v4036_v12 }
  0xe0   :  { %4610 = vmatmul.mubr.bf16.vlgmr.msra.gmra.mxu1 %v4039_v26 }
  0xe1   :  { %4613 = vmatprep.mubr.bf16.mxu1 %v4040_v36 }
  0xe3   :  { %4606 = vmatmul.mubr.bf16.gmra.mxu0 %v4037_v42 }
  0xe8   :  { %4614 = vmatmul.mubr.bf16.gmra.mxu1 %v4041_v46 }
  0xea   :  { %v4379_v27 = vpop.f32.mrf.mxu1 }
  0xec   :  { %v1087_v60 = vpop.f32.mrf.mxu1 }
  0xee   :  { %v4380_v0 = vpop.f32.mrf.mxu1 }
  0xf0   :  { %v1090_v56 = vpop.f32.mrf.mxu1 }
  0xf3   :  { %v4347_v6 = vpop.f32.mrf.mxu0 }
  0xf4   :  { %v1096_v24 = vadd.f32 %v4379_v27, %v4347_v6 }
  0xf5   :  { %v894_v7 = vpop.f32.mrf.mxu0 }
  0xf6   :  { %v1088_v32 = vadd.f32 %v1087_v60, %v894_v7 }
  0xf7   :  { %v4348_v30 = vpop.f32.mrf.mxu0 }
  0xf8   :  { %v1099_v5 = vadd.f32 %v4380_v0, %v4348_v30 }
  0xf9   :  { %v897_v47 = vpop.f32.mrf.mxu0 }
  0xfa   :  { %v1091_v55 = vadd.f32 %v1090_v56, %v897_v47 }
 0x101   :  { %v4383_v18 = vpop.f32.mrf.mxu1 }
 0x103   :  { %v1103_v41 = vpop.f32.mrf.mxu1 }
 0x105   :  { %v4384_v22 = vpop.f32.mrf.mxu1 }
 0x107   :  { %v1106_v57 = vpop.f32.mrf.mxu1 }
 0x109   :  { %v4351_v2 = vpop.f32.mrf.mxu0 }
 0x10a   :  { %v1112_v19 = vadd.f32 %v4383_v18, %v4351_v2 }
 0x10b   :  { %v910_v58 = vpop.f32.mrf.mxu0 }
 0x10c   :  { %v1104_v21 = vadd.f32 %v1103_v41, %v910_v58 }
 0x10d   :  { %v4352_v17 = vpop.f32.mrf.mxu0 }
 0x10e   :  { %v1115_v23 = vadd.f32 %v4384_v22, %v4352_v17 }
 0x10f   :  { %v913_v43 = vpop.f32.mrf.mxu0 }
 0x110   :  { %v1107_v45 = vadd.f32 %v1106_v57, %v913_v43 }
 0x113   :  { %v4387_v39 = vpop.f32.mrf.mxu1 }
 0x115   :  { %v1119_v49 = vpop.f32.mrf.mxu1 }
 0x117   :  { %v4388_v51 = vpop.f32.mrf.mxu1 }
 0x119   :  { %v1122_v29 = vpop.f32.mrf.mxu1 }
 0x11b   :  { %v4355_v38 = vpop.f32.mrf.mxu0 }
 0x11c   :  { %v1128_v14 = vadd.f32 %v4387_v39, %v4355_v38 }
 0x11d   :  { %v926_v63 = vpop.f32.mrf.mxu0 }
 0x11e   :  { %v1120_v13 = vadd.f32 %v1119_v49, %v926_v63 }
 0x11f   :  { %v4356_v53 = vpop.f32.mrf.mxu0 }
 0x120   :  { %v1131_v10 = vadd.f32 %v4388_v51, %v4356_v53 }
 0x121   :  { %v929_v26 = vpop.f32.mrf.mxu0 }
 0x122   :  { %v1123_v62 = vadd.f32 %v1122_v29, %v929_v26 }
 0x129   :  { %v4391_v31 = vpop.f32.mrf.mxu1 }
 0x12b   :  { %v1135_v33 = vpop.f32.mrf.mxu1 }
 0x12d   :  { %v4392_v61 = vpop.f32.mrf.mxu1 }
 0x12f   :  { %v1138_v52 = vpop.f32.mrf.mxu1 }
 0x131   :  { %v4443_v9 = vpop.f32.mrf.mxu1 }
 0x132   :  { %v4359_v1 = vpop.f32.mrf.mxu0 }
 0x133   :  { %v1144_v4 = vadd.f32 %v4391_v31, %v4359_v1  ;;  %v1638_v35 = vpop.f32.mrf.mxu1 }
 0x134   :  { %v942_v11 = vpop.f32.mrf.mxu0 }
 0x135   :  { %v1136_v15 = vadd.f32 %v1135_v33, %v942_v11  ;;  %v4444_v50 = vpop.f32.mrf.mxu1 }
 0x136   :  { %v4360_v8 = vpop.f32.mrf.mxu0 }
 0x137   :  { %v1147_v36 = vadd.f32 %v4392_v61, %v4360_v8  ;;  %v1641_v37 = vpop.f32.mrf.mxu1 }
 0x138   :  { %v945_v34 = vpop.f32.mrf.mxu0 }
 0x139   :  { %v1139_v59 = vadd.f32 %v1138_v52, %v945_v34  ;;  %v4447_v54 = vpop.f32.mrf.mxu1 }
 0x13a   :  { %v4411_v48 = vpop.f32.mrf.mxu0 }
 0x13b   :  { %v1461_v28 = vadd.f32 %v4411_v48, %v1096_v24  ;;  %v1654_v44 = vpop.f32.mrf.mxu1 }
 0x13c   :  { %v1396_v40 = vpop.f32.mrf.mxu0 }
 0x13d   :  { %v1459_v12 = vadd.f32 %v1396_v40, %v1088_v32  ;;  %v4448_v16 = vpop.f32.mrf.mxu1  ;;  %v5885_v25 = vadd.f32 %v4443_v9, %v1461_v28 }
 0x13e   :  { %v4412_v3 = vpop.f32.mrf.mxu0 }
 0x13f   :  { %v1462_v20 = vadd.f32 %v4412_v3, %v1099_v5  ;;  %v1657_v42 = vpop.f32.mrf.mxu1  ;;  %v5887_v46 = vadd.f32 %v1638_v35, %v1459_v12 }
 0x140   :  { %v1399_v27 = vpop.f32.mrf.mxu0 }
 0x141   :  { %v1460_v60 = vadd.f32 %v1399_v27, %v1091_v55  ;;  %v4451_v6 = vpop.f32.mrf.mxu1  ;;  %v5889_v0 = vadd.f32 %v4444_v50, %v1462_v20 }
 0x142   :  { %v4415_v7 = vpop.f32.mrf.mxu0 }
 0x143   :  { %v1465_v30 = vadd.f32 %v4415_v7, %v1112_v19  ;;  %v1670_v56 = vpop.f32.mrf.mxu1  ;;  %v5891_v24 = vadd.f32 %v1641_v37, %v1460_v60 }
 0x144   :  { %v1412_v47 = vpop.f32.mrf.mxu0 }
 0x145   :  { %v1463_v32 = vadd.f32 %v1412_v47, %v1104_v21  ;;  %v4452_v18 = vpop.f32.mrf.mxu1  ;;  %v5893_v41 = vadd.f32 %v4447_v54, %v1465_v30 }
 0x146   :  { %v4416_v2 = vpop.f32.mrf.mxu0 }
 0x147   :  { %v1466_v5 = vadd.f32 %v4416_v2, %v1115_v23  ;;  %v1673_v22 = vpop.f32.mrf.mxu1  ;;  %v5895_v58 = vadd.f32 %v1654_v44, %v1463_v32 }
 0x148   :  { %v1415_v17 = vpop.f32.mrf.mxu0 }
 0x149   :  { %v1464_v55 = vadd.f32 %v1415_v17, %v1107_v45  ;;  %v4455_v57 = vpop.f32.mrf.mxu1  ;;  %v5897_v43 = vadd.f32 %v4448_v16, %v1466_v5 }
 0x14a   :  { %v4419_v39 = vpop.f32.mrf.mxu0 }
 0x14b   :  { %v1469_v19 = vadd.f32 %v4419_v39, %v1128_v14  ;;  %v1686_v49 = vpop.f32.mrf.mxu1  ;;  %v5899_v38 = vadd.f32 %v1657_v42, %v1464_v55 }
 0x14c   :  { %v1428_v51 = vpop.f32.mrf.mxu0 }
 0x14d   :  { %v1467_v21 = vadd.f32 %v1428_v51, %v1120_v13  ;;  %v4456_v63 = vpop.f32.mrf.mxu1  ;;  %v5901_v53 = vadd.f32 %v4451_v6, %v1469_v19 }
 0x14e   :  { %v4420_v29 = vpop.f32.mrf.mxu0 }
 0x14f   :  { %v1470_v23 = vadd.f32 %v4420_v29, %v1131_v10  ;;  %v1689_v26 = vpop.f32.mrf.mxu1  ;;  %v5903_v31 = vadd.f32 %v1670_v56, %v1467_v21 }
 0x150   :  { %v1431_v33 = vpop.f32.mrf.mxu0 }
 0x151   :  { %v1468_v45 = vadd.f32 %v1431_v33, %v1123_v62  ;;  %v5905_v61 = vpop.f32.mrf.mxu1  ;;  %v5907_v52 = vadd.f32 %v4452_v18, %v1470_v23 }
 0x152   :  { %v4423_v14 = vpop.f32.mrf.mxu0 }
 0x153   :  { %v1473_v9 = vadd.f32 %v4423_v14, %v1144_v4  ;;  %v5909_v1 = vpop.f32.mrf.mxu1  ;;  %v5911_v35 = vadd.f32 %v1673_v22, %v1468_v45 }
 0x154   :  { %v1444_v13 = vpop.f32.mrf.mxu0 }
 0x155   :  { %v1471_v11 = vadd.f32 %v1444_v13, %v1136_v15  ;;  %v5913_v50 = vpop.f32.mrf.mxu1  ;;  %v5915_v10 = vadd.f32 %v4455_v57, %v1473_v9 }
 0x156   :  { %v4424_v8 = vpop.f32.mrf.mxu0 }
 0x157   :  { %v1474_v37 = vadd.f32 %v4424_v8, %v1147_v36  ;;  %v5917_v34 = vpop.f32.mrf.mxu1  ;;  %v5919_v62 = vadd.f32 %v1686_v49, %v1471_v11 }
 0x158   :  { %v1447_v54 = vpop.f32.mrf.mxu0 }
 0x159   :  { %v1472_v48 = vadd.f32 %v1447_v54, %v1139_v59  ;;  %v5921_v28 = vpop.f32.mrf.mxu1  ;;  %v5923_v4 = vadd.f32 %v4456_v63, %v1474_v37 }
 0x15a   :  { %v4475_v44 = vpop.f32.mrf.mxu0 }
 0x15b   :  { %v5925_v40 = vpop.f32.mrf.mxu1  ;;  %v5927_v15 = vadd.f32 %v1689_v26, %v1472_v48 }
 0x15c   :  { %v2104_v12 = vpop.f32.mrf.mxu0 }
 0x15d   :  { %v5929_v16 = vpop.f32.mrf.mxu1 }
 0x15e   :  { %v4476_v3 = vpop.f32.mrf.mxu0 }
 0x15f   :  { %v5931_v36 = vpop.f32.mrf.mxu1 }
 0x160   :  { %v2107_v20 = vpop.f32.mrf.mxu0 }
 0x161   :  { %v5933_v42 = vpop.f32.mrf.mxu1 }
 0x162   :  { %v4479_v27 = vpop.f32.mrf.mxu0 }
 0x163   :  { %v5935_v59 = vpop.f32.mrf.mxu1 }
 0x164   :  { %v2120_v60 = vpop.f32.mrf.mxu0 }
 0x165   :  { %v5937_v6 = vpop.f32.mrf.mxu1 }
 0x166   :  { %6101 = vst [vmem:[#allocation3_spill] sm:$0xff] %v5937_v6  ;;  %v4480_v7 = vpop.f32.mrf.mxu0 }
 0x167   :  { %v5939_v56 = vpop.f32.mrf.mxu1 }
 0x168   :  { %v2123_v30 = vpop.f32.mrf.mxu0  ;;  %6102 = vst [vmem:[#allocation4_spill] sm:$0xff] %v5939_v56  ;;  %v2173_v56 = vadd.f32 %v4479_v27, %v5893_v41 }
 0x16a   :  { %v4483_v47 = vpop.f32.mrf.mxu0 }
 0x16c   :  { %v2136_v32 = vpop.f32.mrf.mxu0  ;;  %v5941_v18 = vpop.f32.mrf.mxu1 }
 0x16d   :  { %6103 = vst [vmem:[#allocation5_spill] sm:$0xff] %v5941_v18  ;;  %v2170_v18 = vadd.f32 %v4476_v3, %v5889_v0  ;;  %v2175_v0 = vadd.f32 %v2136_v32, %v5903_v31 }
 0x16e   :  { %v4484_v2 = vpop.f32.mrf.mxu0  ;;  %v5943_v22 = vpop.f32.mrf.mxu1 }
 0x16f   :  { %6104 = vst [vmem:[#allocation6_spill] sm:$0xff] %v5943_v22  ;;  %v2492_v41 = vadd.f32 %v5913_v50, %v2170_v18 }
 0x170   :  { %v2139_v5 = vpop.f32.mrf.mxu0  ;;  %v5945_v55 = vpop.f32.mrf.mxu1 }
 0x171   :  { %6105 = vst [vmem:[#allocation7_spill] sm:$0xff] %v5945_v55 }
 0x172   :  { %v4487_v17 = vpop.f32.mrf.mxu0  ;;  %v5947_v19 = vpop.f32.mrf.mxu1 }
 0x173   :  { %6106 = vst [vmem:[#allocation8_spill] sm:$0xff] %v5947_v19 }
 0x174   :  { %v2152_v57 = vpop.f32.mrf.mxu0 }
 0x176   :  { %v4488_v39 = vpop.f32.mrf.mxu0 }
 0x177   :  { %v2182_v31 = vadd.f32 %v4488_v39, %v5923_v4 }
 0x178   :  { %v2155_v49 = vpop.f32.mrf.mxu0 }
 0x17a   :  { %v4539_v51 = vpop.f32.mrf.mxu0  ;;  %v5949_v21 = vpop.f32.mrf.mxu1 }
 0x17b   :  { %6107 = vst [vmem:[#allocation9_spill] sm:$0xff] %v5949_v21 }
 0x17c   :  { %v2669_v63 = vpop.f32.mrf.mxu0  ;;  %v5951_v29 = vpop.f32.mrf.mxu1 }
 0x17d   :  { %6108 = vst [vmem:[#allocation10_spill] sm:$0xff] %v5951_v29 }
 0x17e   :  { %v4540_v23 = vpop.f32.mrf.mxu0  ;;  %v5953_v26 = vpop.f32.mrf.mxu1 }
 0x17f   :  { %6109 = vst [vmem:[#allocation11_spill] sm:$0xff] %v5953_v26 }
 0x180   :  { %v2672_v33 = vpop.f32.mrf.mxu0  ;;  %v5955_v45 = vpop.f32.mrf.mxu1 }
 0x181   :  { %6110 = vst [vmem:[#allocation12_spill] sm:$0xff] %v5955_v45 }
 0x182   :  { %v4543_v14 = vpop.f32.mrf.mxu0 }
 0x184   :  { %v2685_v9 = vpop.f32.mrf.mxu0  ;;  %v5957_v13 = vpop.f32.mrf.mxu1 }
 0x185   :  { %6111 = vst [vmem:[#allocation13_spill] sm:$0xff] %v5957_v13  ;;  %v2169_v13 = vadd.f32 %v4475_v44, %v5885_v25  ;;  %v2177_v25 = vadd.f32 %v4483_v47, %v5901_v53  ;;  %v2178_v44 = vadd.f32 %v4484_v2, %v5907_v52 }
 0x186   :  { %v4544_v11 = vpop.f32.mrf.mxu0  ;;  %v5959_v8 = vpop.f32.mrf.mxu1 }
 0x187   :  { %6112 = vst [vmem:[#allocation14_spill] sm:$0xff] %v5959_v8  ;;  %v2167_v8 = vadd.f32 %v2104_v12, %v5887_v46  ;;  %v2491_v46 = vadd.f32 %v5905_v61, %v2169_v13  ;;  %v2179_v61 = vadd.f32 %v2152_v57, %v5919_v62  ;;  %v6119_v62 = vld [vmem:[#allocation3_spill] sm:$0xff] }
 0x188   :  { %v2688_v37 = vpop.f32.mrf.mxu0  ;;  %v5961_v54 = vpop.f32.mrf.mxu1 }
 0x189   :  { %6113 = vst [vmem:[#allocation15_spill] sm:$0xff] %v5961_v54 }
 0x18a   :  { %v5963_v48 = vpop.f32.mrf.mxu1  ;;  %v4547_v19 = vpop.f32.mrf.mxu0 }
 0x18b   :  { %6114 = vst [vmem:[#allocation16_spill] sm:$0xff] %v5963_v48  ;;  %v2168_v48 = vadd.f32 %v2107_v20, %v5891_v24  ;;  %v2489_v24 = vadd.f32 %v5909_v1, %v2167_v8  ;;  %v2734_v20 = vadd.f32 %v4539_v51, %v2491_v46  ;;  %v6125_v51 = vld [vmem:[#allocation10_spill] sm:$0xff]  ;;  %v6128_v46 = vld [vmem:[#allocation12_spill] sm:$0xff] }
 0x18c   :  { %v2701_v29 = vpop.f32.mrf.mxu0 }
 0x18d   :  { %v5965_v21 = vpop.f32.mrf.mxu1  ;;  %v2490_v3 = vadd.f32 %v5917_v34, %v2168_v48  ;;  %v2732_v27 = vadd.f32 %v2669_v63, %v2489_v24 }
 0x18e   :  { %6115 = vst [vmem:[#allocation17_spill] sm:$0xff] %v5965_v21  ;;  %v4548_v26 = vpop.f32.mrf.mxu0  ;;  %v2171_v21 = vadd.f32 %v2120_v60, %v5895_v58  ;;  %v2176_v58 = vadd.f32 %v2139_v5, %v5911_v35  ;;  %v2735_v60 = vadd.f32 %v4540_v23, %v2492_v41 }
 0x18f   :  { %v5967_v55 = vpop.f32.mrf.mxu1  ;;  %v2733_v4 = vadd.f32 %v2672_v33, %v2490_v3  ;;  %v6126_v33 = vld [vmem:[#allocation8_spill] sm:$0xff] }
 0x190   :  { %6116 = vst [vmem:[#allocation18_spill] sm:$0xff] %v5967_v55  ;;  %v5969_v45 = vpop.f32.mrf.mxu0  ;;  %v2174_v55 = vadd.f32 %v4480_v7, %v5897_v43  ;;  %v2181_v43 = vadd.f32 %v4487_v17, %v5915_v10  ;;  %v2493_v52 = vadd.f32 %v5925_v40, %v2171_v21  ;;  %v2499_v10 = vadd.f32 %v5933_v42, %v2177_v25  ;;  %v6120_v40 = vld [vmem:[#allocation4_spill] sm:$0xff]  ;;  %v6123_v42 = vld [vmem:[#allocation7_spill] sm:$0xff] }
 0x191   :  { %6117 = vst [vmem:[#allocation19_spill] sm:$0xff] %v5969_v45  ;;  %v5971_v22 = vpop.f32.mrf.mxu1  ;;  %v2497_v7 = vadd.f32 %v5935_v59, %v2175_v0  ;;  %v2498_v47 = vadd.f32 %v6120_v40, %v2176_v58  ;;  %v2504_v17 = vadd.f32 %v6123_v42, %v2182_v31  ;;  %v6124_v59 = vld [vmem:[#allocation9_spill] sm:$0xff]  ;;  %v3198_v21 = vadd.f32 %v6125_v51, %v2732_v27 }
 0x192   :  { %6118 = vst [vmem:[#allocation20_spill] sm:$0xff] %v5971_v22  ;;  %v4551_v54 = vpop.f32.mrf.mxu0  ;;  %v2172_v22 = vadd.f32 %v2123_v30, %v5899_v38  ;;  %v2495_v38 = vadd.f32 %v5921_v28, %v2173_v56  ;;  %v2496_v1 = vadd.f32 %v5929_v16, %v2174_v55  ;;  %v2180_v28 = vadd.f32 %v2155_v49, %v5927_v15  ;;  %v6121_v16 = vld [vmem:[#allocation5_spill] sm:$0xff] }
 0x193   :  { %v5978_v6 = vpop.f32.mrf.mxu1  ;;  %v2500_v30 = vadd.f32 %v6119_v62, %v2178_v44  ;;  %v2503_v32 = vadd.f32 %v6121_v16, %v2181_v43  ;;  %v2736_v2 = vadd.f32 %v2685_v9, %v2493_v52  ;;  %v2742_v5 = vadd.f32 %v4547_v19, %v2499_v10  ;;  %v6127_v9 = vld [vmem:[#allocation11_spill] sm:$0xff] }
 0x194   :  { %v2717_v45 = vpop.f32.mrf.mxu0  ;;  %v2494_v35 = vadd.f32 %v5931_v36, %v2172_v22  ;;  %v2738_v56 = vadd.f32 %v4543_v14, %v2495_v38  ;;  %v6122_v36 = vld [vmem:[#allocation6_spill] sm:$0xff]  ;;  %v2739_v15 = vadd.f32 %v4544_v11, %v2496_v1  ;;  %v3200_v49 = vadd.f32 %v6124_v59, %v2734_v20  ;;  %v6129_v11 = vld [vmem:[#allocation13_spill] sm:$0xff]  ;;  %v6133_v52 = vld [vmem:[#allocation15_spill] sm:$0xff] }
 0x195   :  { %v2501_v22 = vadd.f32 %v6122_v36, %v2179_v61  ;;  %v2740_v63 = vadd.f32 %v2701_v29, %v2497_v7  ;;  %v2743_v23 = vadd.f32 %v4548_v26, %v2500_v30  ;;  %v2502_v14 = vadd.f32 %v6126_v33, %v2180_v28  ;;  %v6131_v58 = vld [vmem:[#allocation17_spill] sm:$0xff]  ;;  %v6132_v29 = vld [vmem:[#allocation14_spill] sm:$0xff]  ;;  %v6134_v20 = vld [vmem:[#allocation16_spill] sm:$0xff] }
 0x196   :  { %v4552_v12 = vpop.f32.mrf.mxu0  ;;  %v2737_v57 = vadd.f32 %v2688_v37, %v2494_v35  ;;  %v3201_v19 = vadd.f32 %v6127_v9, %v2735_v60  ;;  %v3199_v0 = vadd.f32 %v6128_v46, %v2733_v4  ;;  %v3204_v37 = vadd.f32 %v6129_v11, %v2738_v56  ;;  %v6024_v28 = vld [vmem:[%s6090_s4] ss:$0 sm:$0xff] }
 0x197   :  { %v2746_v41 = vadd.f32 %v4551_v54, %v2503_v32  ;;  %v3208_v43 = vadd.f32 %v6131_v58, %v2742_v5  ;;  %v3202_v26 = vadd.f32 %v6132_v29, %v2736_v2  ;;  %v2744_v38 = vadd.f32 %v2717_v45, %v2501_v22  ;;  %v6135_v54 = vld [vmem:[#allocation18_spill] sm:$0xff] }
 0x198   :  { %v5993_v53 = vpop.f32.mrf.mxu1  ;;  %v2720_v50 = vpop.f32.mrf.mxu0  ;;  %v6130_v44 = vld [vmem:[#allocation19_spill] sm:$0xff]  ;;  %v3205_v1 = vadd.f32 %v6133_v52, %v2739_v15  ;;  %v3203_v27 = vadd.f32 %v6134_v20, %v2737_v57  ;;  %v2747_v35 = vadd.f32 %v4552_v12, %v2504_v17  ;;  %v3206_v60 = vadd.f32 %v6135_v54, %v2740_v63 }
 0x199   :  { %v2741_v24 = vadd.f32 %v6130_v44, %v2498_v47  ;;  %v6136_v7 = vld [vmem:[#allocation20_spill] sm:$0xff]  ;;  %v3212_v2 = vadd.f32 %v5993_v53, %v2746_v41  ;;  %v2745_v36 = vadd.f32 %v2720_v50, %v2502_v14 }
 0x19a   :  { %v3183_v34 = vpop.f32.mrf.mxu1  ;;  %v3209_v62 = vadd.f32 %v6136_v7, %v2743_v23 }
 0x19b   :  { %v4603_v55 = vpop.f32.mrf.mxu0  ;;  %v3207_v32 = vadd.f32 %v5978_v6, %v2741_v24 }
 0x19c   :  { %v4584_v18 = vpop.f32.mrf.mxu1  ;;  %v3522_v48 = vadd.f32 %v4603_v55, %v3200_v49  ;;  %v3210_v55 = vadd.f32 %v3183_v34, %v2744_v38 }
 0x19d   :  { %v3457_v13 = vpop.f32.mrf.mxu0  ;;  %v3213_v49 = vadd.f32 %v4584_v18, %v2747_v35 }
 0x19e   :  { %v6008_v39 = vpop.f32.mrf.mxu1  ;;  %v3520_v25 = vadd.f32 %v3457_v13, %v3198_v21  ;;  %v3545_v45 = vadd.f32 %v6024_v28, %v3522_v48 }
 0x19f   :  { %v4604_v3 = vpop.f32.mrf.mxu0  ;;  %v3211_v11 = vadd.f32 %v6008_v39, %v2745_v36 }
 0x1a0   :  { %v4611_v8 = vpop.f32.mrf.mxu1  ;;  %v3523_v31 = vadd.f32 %v4604_v3, %v3201_v19  ;;  %v3543_v56 = vadd.f32 %v6024_v28, %v3520_v25  ;;  %v3662_v18 = vmul.f32 %v3545_v45, %v3545_v45 }
 0x1a1   :  { %v3530_v10 = vadd.f32 %v4611_v8, %v3208_v43  ;;  %v3460_v30 = vpop.f32.mrf.mxu0 }
 0x1a2   :  { %v3489_v61 = vpop.f32.mrf.mxu1  ;;  %v3546_v40 = vadd.f32 %v6024_v28, %v3523_v31  ;;  %v3521_v47 = vadd.f32 %v3460_v30, %v3199_v0  ;;  %v3660_v21 = vmul.f32 %v3543_v56, %v3543_v56 }
 0x1a3   :  { %v3528_v12 = vadd.f32 %v3489_v61, %v3206_v60  ;;  %v4607_v5 = vpop.f32.mrf.mxu0  ;;  %v6035_v15 = vadd.f32 %v6024_v28, %v3530_v10 }
 0x1a4   :  { %v4612_v4 = vpop.f32.mrf.mxu1  ;;  %v4139_v42 = vpack.c.bf16 %v3546_v40, %v3545_v45  ;;  %v3544_v17 = vadd.f32 %v6024_v28, %v3521_v47  ;;  %v3526_v14 = vadd.f32 %v4607_v5, %v3204_v37  ;;  %v3663_v46 = vmul.f32 %v3546_v40, %v3546_v40 }
 0x1a5   :  { %v3531_v16 = vadd.f32 %v4612_v4, %v3209_v62  ;;  %v3473_v51 = vpop.f32.mrf.mxu0  ;;  %v3551_v34 = vadd.f32 %v6024_v28, %v3528_v12 }
 0x1a6   :  { %v3492_v22 = vpop.f32.mrf.mxu1  ;;  %4178 = vst [vmem:[%s6091_s5 + $0x8] sm:$0xff] %v4139_v42   ;;  %v4134_v53 = vpack.c.bf16 %v3544_v17, %v3543_v56  ;;  %v3639_v50 = vadd.f32 %v3544_v17, %v3543_v56  ;;  %v3661_v63 = vmul.f32 %v3544_v17, %v3544_v17  ;;  %v3524_v48 = vadd.f32 %v3473_v51, %v3202_v26 }
 0x1a7   :  { %v6038_v57 = vadd.f32 %v6024_v28, %v3531_v16  ;;  %v3529_v59 = vadd.f32 %v3492_v22, %v3207_v32  ;;  %v4608_v13 = vpop.f32.mrf.mxu0  ;;  %v3549_v29 = vadd.f32 %v6024_v28, %v3526_v14  ;;  %v3668_v5 = vmul.f32 %v3551_v34, %v3551_v34 }
 0x1a8   :  { %v4615_v6 = vpop.f32.mrf.mxu1  ;;  %4135 = vst [vmem:[%s6091_s5] sm:$0xff] %v4134_v53   ;;  %v3640_v9 = vadd.f32 %v3639_v50, %v3545_v45  ;;  %v3676_v19 = vadd.f32 %v3661_v63, %v3660_v21  ;;  %v3547_v41 = vadd.f32 %v6024_v28, %v3524_v48  ;;  %v3527_v43 = vadd.f32 %v4608_v13, %v3205_v1 }
 0x1a9   :  { %v4159_v23 = vpack.c.bf16 %v6038_v57, %v6035_v15  ;;  %v3552_v33 = vadd.f32 %v6024_v28, %v3529_v59  ;;  %v3534_v0 = vadd.f32 %v4615_v6, %v3212_v2  ;;  %v3476_v37 = vpop.f32.mrf.mxu0  ;;  %v3666_v47 = vmul.f32 %v3549_v29, %v3549_v29 }
 0x1aa   :  { %v3505_v8 = vpop.f32.mrf.mxu1  ;;  %v3677_v44 = vadd.f32 %v3676_v19, %v3662_v18  ;;  %v3641_v58 = vadd.f32 %v3640_v9, %v3546_v40  ;;  %v3525_v38 = vadd.f32 %v3476_v37, %v3203_v27  ;;  %v3664_v31 = vmul.f32 %v3547_v41, %v3547_v41 }
 0x1ab   :  { %4182 = vst [vmem:[%s6091_s5 + $0x28] sm:$0xff] %v4159_v23   ;;  %v4154_v25 = vpack.c.bf16 %v3552_v33, %v3551_v34  ;;  %v3532_v3 = vadd.f32 %v3505_v8, %v3210_v55  ;;  %v3550_v20 = vadd.f32 %v6024_v28, %v3527_v43  ;;  %v3557_v35 = vadd.f32 %v6024_v28, %v3534_v0 }
 0x1ac   :  { %v4616_v24 = vpop.f32.mrf.mxu1  ;;  %v3642_v61 = vadd.f32 %v3641_v58, %v3547_v41  ;;  %v3678_v52 = vadd.f32 %v3677_v44, %v3663_v46  ;;  %v3548_v54 = vadd.f32 %v6024_v28, %v3525_v38  ;;  %v3669_v42 = vmul.f32 %v3552_v33, %v3552_v33 }
 0x1ad   :  { %4181 = vst [vmem:[%s6091_s5 + $0x20] sm:$0xff] %v4154_v25   ;;  %v3535_v26 = vadd.f32 %v4616_v24, %v3213_v49  ;;  %v4149_v7 = vpack.c.bf16 %v3550_v20, %v3549_v29  ;;  %v3555_v62 = vadd.f32 %v6024_v28, %v3532_v3  ;;  %v3670_v59 = vmul.f32 %v6035_v15, %v6035_v15 }
 0x1ae   :  { %v3508_v39 = vpop.f32.mrf.mxu1  ;;  %v3679_v60 = vadd.f32 %v3678_v52, %v3664_v31  ;;  %v4144_v45 = vpack.c.bf16 %v3548_v54, %v3547_v41  ;;  %v3643_v4 = vadd.f32 %v3642_v61, %v3548_v54  ;;  %v3665_v56 = vmul.f32 %v3548_v54, %v3548_v54 }
 0x1af   :  { %v3558_v10 = vadd.f32 %v6024_v28, %v3535_v26  ;;  %v3533_v1 = vadd.f32 %v3508_v39, %v3211_v11  ;;  %4180 = vst [vmem:[%s6091_s5 + $0x18] sm:$0xff] %v4149_v7   ;;  %v3671_v21 = vmul.f32 %v6038_v57, %v6038_v57  ;;  %v3672_v50 = vmul.f32 %v3555_v62, %v3555_v62 }
 0x1b0   :  { %4179 = vst [vmem:[%s6091_s5 + $0x10] sm:$0xff] %v4144_v45   ;;  %v3644_v12 = vadd.f32 %v3643_v4, %v3549_v29  ;;  %v3680_v16 = vadd.f32 %v3679_v60, %v3665_v56  ;;  %v3697_v46 = vlaneseq }
 0x1b1   :  { %v4169_v30 = vpack.c.bf16 %v3558_v10, %v3557_v35  ;;  %v3556_v27 = vadd.f32 %v6024_v28, %v3533_v1  ;;  %v3667_v28 = vmul.f32 %v3550_v20, %v3550_v20  ;;  %v3675_v19 = vmul.f32 %v3558_v10, %v3558_v10 }
 0x1b2   :  { %v3645_v32 = vadd.f32 %v3644_v12, %v3550_v20  ;;  %v3681_v2 = vadd.f32 %v3680_v16, %v3666_v47  ;;  %v3698_v44 = vshrl.u32 %v3697_v46, 7 }
 0x1b3   :  { %4184 = vst [vmem:[%s6091_s5 + $0x38] sm:$0xff] %v4169_v30   ;;  %v4164_v40 = vpack.c.bf16 %v3556_v27, %v3555_v62 }
 0x1b4   :  { %v3646_v36 = vadd.f32 %v3645_v32, %v3551_v34  ;;  %v3682_v22 = vadd.f32 %v3681_v2, %v3667_v28  ;;  %v3673_v34 = vmul.f32 %v3556_v27, %v3556_v27  ;;  %vm3699_vm12 = vcmp.eq.s32.totalorder %v3698_v44, 0 }
 0x1b5   :  { %4183 = vst [vmem:[%s6091_s5 + $0x30] sm:$0xff] %v4164_v40   ;;  %vm3701_vm13 = vcmp.eq.s32.totalorder %v3698_v44, 1 }
 0x1b6   :  { %v3647_v17 = vadd.f32 %v3646_v36, %v3552_v33  ;;  %v3683_v55 = vadd.f32 %v3682_v22, %v3668_v5  ;;  %v3674_v33 = vmul.f32 %v3557_v35, %v3557_v35 }
 0x1b8   :  { %v3648_v49 = vadd.f32 %v3647_v17, %v6035_v15  ;;  %v3684_v51 = vadd.f32 %v3683_v55, %v3669_v42 }
 0x1ba   :  { %v3649_v6 = vadd.f32 %v3648_v49, %v6038_v57  ;;  %v3685_v53 = vadd.f32 %v3684_v51, %v3670_v59 }
 0x1bc   :  { %v3650_v63 = vadd.f32 %v3649_v6, %v3555_v62  ;;  %v3686_v23 = vadd.f32 %v3685_v53, %v3671_v21 }
 0x1be   :  { %v3651_v14 = vadd.f32 %v3650_v63, %v3556_v27  ;;  %v3687_v13 = vadd.f32 %v3686_v23, %v3672_v50 }
 0x1c0   :  { %v3652_v18 = vadd.f32 %v3651_v14, %v3557_v35  ;;  %v3688_v9 = vadd.f32 %v3687_v13, %v3673_v34 }
 0x1c2   :  { %v3653_v8 = vadd.f32 %v3652_v18, %v3558_v10  ;;  %v3689_v48 = vadd.f32 %v3688_v9, %v3674_v33 }
 0x1c4   :  { %v3654_v15 = vrot.slane %v3653_v8, 4  ;;  %v3690_v25 = vadd.f32 %v3689_v48, %v3675_v19 }
 0x1c6   :  { %v3655_v0 = vadd.f32 %v3654_v15, %v3653_v8  ;;  %v3691_v11 = vrot.slane %v3690_v25, 4 }
 0x1c8   :  { %v3656_v37 = vrot.slane %v3655_v0, 2  ;;  %v3692_v57 = vadd.f32 %v3691_v11, %v3690_v25 }
 0x1ca   :  { %v3657_v24 = vadd.f32 %v3656_v37, %v3655_v0  ;;  %v3693_v41 = vrot.slane %v3692_v57, 2 }
 0x1cc   :  { %v3658_v58 = vrot.slane %v3657_v24, 1  ;;  %v3694_v43 = vadd.f32 %v3693_v41, %v3692_v57 }
 0x1ce   :  { %v3659_v3 = vadd.f32 %v3658_v58, %v3657_v24  ;;  %v3695_v29 = vrot.slane %v3694_v43, 1 }
 0x1d0   :  { %v3696_v26 = vadd.f32 %v3695_v29, %v3694_v43  ;;  %v3700_v38 = vsel %vm3699_vm12, %v3659_v3, 0.0 }
 0x1d2   :  { %v3702_v61 = vsel %vm3701_vm13, %v3696_v26, %v3700_v38 }
 0x1d3   :  { %3703 = vst [vmem:[%s6092_s6] sm:$0xff] %v3702_v61 }

</bundles_post_ra>
